<compile_context>
chip_gen: v5e
topology: v5e:2x2
jax: 0.10.0
libtpu: 0.0.40
codegen_flags: <defaults>
</compile_context>

<pallas_src>
import functools
import math

import jax
import jax.numpy as jnp
from jax.experimental import pallas as pl
from jax.experimental.pallas import tpu as pltpu

GN_EPS = 1e-5
NUM_GROUPS = 8
_INV_SQRT2 = 0.7071067811865476


def _gelu_exact(x):
    # Matches torch.nn.GELU() default (erf-based, approximate='none').
    return 0.5 * x * (1.0 + jax.lax.erf(x * _INV_SQRT2))


def _group_norm_cf(y, p, gamma, beta, inv_count):
    """GroupNorm(8) on a channels-first (C, HW) f32 tile.

    p:          (C, C) precomputed membership matrix, p[i, j] = 1 iff channels
                i and j are in the same group (hoisted out of the kernel loop).
    gamma/beta: (C, 1) affine params.
    inv_count:  1 / (HW * group_size).
    One-pass stats: var = E[y^2] - E[y]^2; the (C,C)@(C,HW) matmuls are
    lane-dense (N = HW) and directly yield per-channel group sums.
    """
    g1 = jnp.dot(p, y, preferred_element_type=jnp.float32)          # (C, HW)
    g2 = jnp.dot(p, y * y, preferred_element_type=jnp.float32)      # (C, HW)
    mean = jnp.sum(g1, axis=1, keepdims=True) * inv_count            # (C, 1)
    ex2 = jnp.sum(g2, axis=1, keepdims=True) * inv_count             # (C, 1)
    var = jnp.maximum(ex2 - mean * mean, 0.0)
    inv_std = jax.lax.rsqrt(var + GN_EPS)                            # (C, 1)
    scale = gamma * inv_std
    shift = beta - mean * scale
    return y * scale + shift                                         # (C, HW)


def _fused_irb_kernel(x_ref, we_ref, ge_ref, be_ref, wdw_ref,
                      wp_ref, gp_ref, bp_ref, wpr_ref, gpr_ref, bpr_ref,
                      ph_ref, pc_ref, o_ref, acc_ref,
                      *, height, width, hw, inv_nh, inv_nc):
    x = x_ref[0]                                                     # (Cin, HW) f32

    # ---- expand: 1x1 conv (bf16 MXU, f32 acc) + GroupNorm + GELU ----------
    y0 = jnp.dot(we_ref[...], x.astype(jnp.bfloat16),
                 preferred_element_type=jnp.float32)                 # (hid, HW)
    h1 = _gelu_exact(_group_norm_cf(y0, ph_ref[...], ge_ref[...], be_ref[...],
                                    inv_nh))

    # ---- depthwise 3x3 (stride 1, pad 1): lane rolls + boundary masks -----
    q = jax.lax.broadcasted_iota(jnp.int32, (1, hw), 1)              # flat HW idx
    col = q % width
    has_up = q >= width                         # neighbor (h-1, w) exists
    has_down = q < (height - 1) * width         # neighbor (h+1, w) exists
    has_left = col > 0                          # neighbor (h, w-1) exists
    has_right = col < (width - 1)               # neighbor (h, w+1) exists

    acc_ref[...] = h1 * wdw_ref[4]              # center tap (dh=1, dw=1)
    for dh in range(3):
        for dw in range(3):
            if dh == 1 and dw == 1:
                continue
            off = (dh - 1) * width + (dw - 1)   # neighbor offset in flat HW
            # t[:, p] = h1[:, p + off]  (XLU lane rotation, no sublane slicing)
            t = pltpu.roll(h1, shift=(-off) % hw, axis=1)
            mask = None
            if dh == 0:
                mask = has_up
            elif dh == 2:
                mask = has_down
            if dw == 0:
                mask = has_left if mask is None else jnp.logical_and(mask, has_left)
            elif dw == 2:
                mask = has_right if mask is None else jnp.logical_and(mask, has_right)
            t = jnp.where(mask, t, 0.0)         # zero-padding semantics
            acc_ref[...] = acc_ref[...] + t * wdw_ref[dh * 3 + dw]
    d = acc_ref[...]                                                 # (hid, HW)

    # ---- pointwise 1x1 + GroupNorm + GELU ---------------------------------
    y1 = jnp.dot(wp_ref[...], d.astype(jnp.bfloat16),
                 preferred_element_type=jnp.float32)                 # (hid, HW)
    h2 = _gelu_exact(_group_norm_cf(y1, ph_ref[...], gp_ref[...], bp_ref[...],
                                    inv_nh))

    # ---- project 1x1 + GroupNorm (no activation) --------------------------
    y2 = jnp.dot(wpr_ref[...], h2.astype(jnp.bfloat16),
                 preferred_element_type=jnp.float32)                 # (Cin, HW)
    z = _group_norm_cf(y2, pc_ref[...], gpr_ref[...], bpr_ref[...], inv_nc)

    o_ref[0] = z.astype(o_ref.dtype)            # lane-dense (Cin, HW) store


def _group_membership(channels, groups):
    gs = channels // groups
    gid = jnp.arange(channels, dtype=jnp.int32) // gs
    return (gid[:, None] == gid[None, :]).astype(jnp.float32)        # (C, C)


def inverted_residual_block(x_nchw, params):
    n, cin, height, width = x_nchw.shape
    hw = height * width
    hidden = params["w_expand"].shape[0]
    assert cin % NUM_GROUPS == 0 and hidden % NUM_GROUPS == 0
    use_residual = (hidden == cin)   # module: stride == 1 and in_ch == hidden_dim

    x = x_nchw.reshape(n, cin, hw).astype(jnp.float32)   # free reshape, no transpose
    p_h = _group_membership(hidden, NUM_GROUPS)
    p_c = _group_membership(cin, NUM_GROUPS)
    inv_nh = 1.0 / float(hw * (hidden // NUM_GROUPS))
    inv_nc = 1.0 / float(hw * (cin // NUM_GROUPS))

    kernel = functools.partial(_fused_irb_kernel, height=height, width=width,
                               hw=hw, inv_nh=inv_nh, inv_nc=inv_nc)

    # Advisory cost estimate so XLA schedules surrounding ops around the call.
    conv_flops = 2 * hw * (cin * hidden + hidden * hidden + hidden * cin) \
        + 2 * 9 * hw * hidden
    gn_flops = 4 * hw * (2 * hidden * hidden + cin * cin) \
        + 8 * hw * (2 * hidden + cin)
    flops = n * (conv_flops + gn_flops)
    transcendentals = n * (2 * hw * hidden + 3 * (2 * hidden + cin))
    param_bytes = sum(int(v.size) * v.dtype.itemsize for v in params.values())
    bytes_accessed = 2 * n * cin * hw * 4 + param_bytes \
        + (hidden * hidden + cin * cin) * 4

    const2 = lambda b: (0, 0)
    const3 = lambda b: (0, 0, 0)
    out = pl.pallas_call(
        kernel,
        out_shape=jax.ShapeDtypeStruct((n, cin, hw), jnp.float32),
        grid_spec=pltpu.PrefetchScalarGridSpec(
            num_scalar_prefetch=0,
            grid=(n,),
            in_specs=[
                pl.BlockSpec((1, cin, hw), lambda b: (b, 0, 0)),   # x (per sample)
                pl.BlockSpec((hidden, cin), const2),               # w_expand (bf16)
                pl.BlockSpec((hidden, 1), const2),                 # gamma_expand
                pl.BlockSpec((hidden, 1), const2),                 # beta_expand
                pl.BlockSpec((9, hidden, 1), const3),              # depthwise taps
                pl.BlockSpec((hidden, hidden), const2),            # w_pointwise (bf16)
                pl.BlockSpec((hidden, 1), const2),                 # gamma_pw
                pl.BlockSpec((hidden, 1), const2),                 # beta_pw
                pl.BlockSpec((cin, hidden), const2),               # w_project (bf16)
                pl.BlockSpec((cin, 1), const2),                    # gamma_proj
                pl.BlockSpec((cin, 1), const2),                    # beta_proj
                pl.BlockSpec((hidden, hidden), const2),            # group membership (hidden)
                pl.BlockSpec((cin, cin), const2),                  # group membership (cin)
            ],
            out_specs=pl.BlockSpec((1, cin, hw), lambda b: (b, 0, 0)),
            scratch_shapes=[pltpu.VMEM((hidden, hw), jnp.float32)],  # dw accumulator
        ),
        compiler_params=pltpu.CompilerParams(
            dimension_semantics=("parallel",),
            vmem_limit_bytes=32 * 1024 * 1024,
        ),
        cost_estimate=pl.CostEstimate(flops=int(flops),
                                      transcendentals=int(transcendentals),
                                      bytes_accessed=int(bytes_accessed)),
    )(x, params["w_expand"], params["g_expand"], params["b_expand"],
      params["w_dw"], params["w_pw"], params["g_pw"], params["b_pw"],
      params["w_proj"], params["g_proj"], params["b_proj"], p_h, p_c)

    out = out.reshape(n, cin, height, width)
    if use_residual:   # False for expand_ratio=4 (hidden_dim != in_channels)
        out = out + x_nchw.astype(jnp.float32)
    return out


def init_params(key, in_channels, expand_ratio):
    hidden = in_channels * expand_ratio
    ks = jax.random.split(key, 10)

    def conv1x1(k, cout, cin):
        # = PyTorch Conv2d(cin, cout, 1, bias=False).weight[:, :, 0, 0];
        # stored bf16 so the MXU runs native precision (accumulation is f32).
        w = jax.random.normal(k, (cout, cin), jnp.float32) / math.sqrt(cin)
        return w.astype(jnp.bfloat16)

    def affine(kg, kb, c):
        g = 1.0 + 0.1 * jax.random.normal(kg, (c, 1), jnp.float32)
        b = 0.1 * jax.random.normal(kb, (c, 1), jnp.float32)
        return g, b

    g_e, b_e = affine(ks[1], ks[2], hidden)
    g_p, b_p = affine(ks[5], ks[6], hidden)
    g_r, b_r = affine(ks[8], ks[9], in_channels)
    # Depthwise taps: PyTorch (C, 1, 3, 3) -> (C, 9) -> (9, C, 1); tap k = dh*3+dw.
    w_dw = jnp.transpose(
        0.2 * jax.random.normal(ks[3], (hidden, 9), jnp.float32))[:, :, None]
    return {
        "w_expand": conv1x1(ks[0], hidden, in_channels),
        "g_expand": g_e, "b_expand": b_e,
        "w_dw": w_dw,
        "w_pw": conv1x1(ks[4], hidden, hidden),
        "g_pw": g_p, "b_pw": b_p,
        "w_proj": conv1x1(ks[7], in_channels, hidden),
        "g_proj": g_r, "b_proj": b_r,
    }


if __name__ == "__main__":
    key = jax.random.PRNGKey(0)
    kx, kp = jax.random.split(key)

    # in_channels must be divisible by 8 (GroupNorm(8, C)); expand_ratio=4 is
    # the module default -> hidden = 64, use_residual = False.
    N, C, H, W = 2, 16, 16, 16
    expand_ratio = 4

    x = jax.random.normal(kx, (N, C, H, W), jnp.float32)   # PyTorch-style NCHW
    params = init_params(kp, C, expand_ratio)

    y = jax.jit(inverted_residual_block)(x, params)
    y = jax.block_until_ready(y)

    assert y.shape == (N, C, H, W), y.shape
    assert bool(jnp.all(jnp.isfinite(y)))
    print("KERNEL_OK")
</pallas_src>

<mosaic_0001>
module attributes {stable_mosaic.version = 11 : i64} {
  func.func @_fused_irb_kernel(%arg0: i32, %arg1: memref<1x16x256xf32, #tpu.memory_space<vmem>>, %arg2: memref<64x16xbf16, #tpu.memory_space<vmem>>, %arg3: memref<64x1xf32, #tpu.memory_space<vmem>>, %arg4: memref<64x1xf32, #tpu.memory_space<vmem>>, %arg5: memref<9x64x1xf32, #tpu.memory_space<vmem>>, %arg6: memref<64x64xbf16, #tpu.memory_space<vmem>>, %arg7: memref<64x1xf32, #tpu.memory_space<vmem>>, %arg8: memref<64x1xf32, #tpu.memory_space<vmem>>, %arg9: memref<16x64xbf16, #tpu.memory_space<vmem>>, %arg10: memref<16x1xf32, #tpu.memory_space<vmem>>, %arg11: memref<16x1xf32, #tpu.memory_space<vmem>>, %arg12: memref<64x64xf32, #tpu.memory_space<vmem>>, %arg13: memref<16x16xf32, #tpu.memory_space<vmem>>, %arg14: memref<1x16x256xf32, #tpu.memory_space<vmem>>, %arg15: memref<64x256xf32, #tpu.memory_space<vmem>>) attributes {dimension_semantics = [#tpu.dimension_semantics<parallel>], iteration_bounds = array<i64: 2>, scalar_prefetch = 0 : i64, scratch_operands = 1 : i64, tpu.core_type = #tpu.core_type<tc>, window_params = [{transform_indices = @transform_0, window_bounds = array<i64: 1, 16, 256>}, {pipeline_mode = #tpu.pipeline_mode<synchronous>, transform_indices = @transform_1, window_bounds = array<i64: 64, 16>}, {pipeline_mode = #tpu.pipeline_mode<synchronous>, transform_indices = @transform_2, window_bounds = array<i64: 64, 1>}, {pipeline_mode = #tpu.pipeline_mode<synchronous>, transform_indices = @transform_3, window_bounds = array<i64: 64, 1>}, {pipeline_mode = #tpu.pipeline_mode<synchronous>, transform_indices = @transform_4, window_bounds = array<i64: 9, 64, 1>}, {pipeline_mode = #tpu.pipeline_mode<synchronous>, transform_indices = @transform_5, window_bounds = array<i64: 64, 64>}, {pipeline_mode = #tpu.pipeline_mode<synchronous>, transform_indices = @transform_6, window_bounds = array<i64: 64, 1>}, {pipeline_mode = #tpu.pipeline_mode<synchronous>, transform_indices = @transform_7, window_bounds = array<i64: 64, 1>}, {pipeline_mode = #tpu.pipeline_mode<synchronous>, transform_indices = @transform_8, window_bounds = array<i64: 16, 64>}, {pipeline_mode = #tpu.pipeline_mode<synchronous>, transform_indices = @transform_9, window_bounds = array<i64: 16, 1>}, {pipeline_mode = #tpu.pipeline_mode<synchronous>, transform_indices = @transform_10, window_bounds = array<i64: 16, 1>}, {pipeline_mode = #tpu.pipeline_mode<synchronous>, transform_indices = @transform_11, window_bounds = array<i64: 64, 64>}, {pipeline_mode = #tpu.pipeline_mode<synchronous>, transform_indices = @transform_12, window_bounds = array<i64: 16, 16>}, {transform_indices = @transform_13, window_bounds = array<i64: 1, 16, 256>}]} {
    %c0 = arith.constant 0 : index
    %c0_0 = arith.constant 0 : index
    %c0_1 = arith.constant 0 : index
    %0 = vector.load %arg1[%c0, %c0_0, %c0_1] : memref<1x16x256xf32, #tpu.memory_space<vmem>>, vector<1x16x256xf32>
    %1 = vector.shape_cast %0 : vector<1x16x256xf32> to vector<16x256xf32>
    %c0_2 = arith.constant 0 : index
    %c0_3 = arith.constant 0 : index
    %2 = vector.load %arg2[%c0_2, %c0_3] : memref<64x16xbf16, #tpu.memory_space<vmem>>, vector<64x16xbf16>
    %3 = arith.truncf %1 : vector<16x256xf32> to vector<16x256xbf16>
    %cst = arith.constant dense<0.000000e+00> : vector<64x256xf32>
    %4 = tpu.matmul %2, %3, %cst {dimension_numbers = #tpu.dot_dimension_numbers<[1], [0], [0], [1], [0, 0, 1, 1], [], []>} : vector<64x16xbf16>, vector<16x256xbf16>, vector<64x256xf32> -> vector<64x256xf32>
    %c0_4 = arith.constant 0 : index
    %c0_5 = arith.constant 0 : index
    %5 = vector.load %arg12[%c0_4, %c0_5] : memref<64x64xf32, #tpu.memory_space<vmem>>, vector<64x64xf32>
    %c0_6 = arith.constant 0 : index
    %c0_7 = arith.constant 0 : index
    %6 = vector.load %arg3[%c0_6, %c0_7] : memref<64x1xf32, #tpu.memory_space<vmem>>, vector<64x1xf32>
    %c0_8 = arith.constant 0 : index
    %c0_9 = arith.constant 0 : index
    %7 = vector.load %arg4[%c0_8, %c0_9] : memref<64x1xf32, #tpu.memory_space<vmem>>, vector<64x1xf32>
    %cst_10 = arith.constant dense<0.000000e+00> : vector<64x256xf32>
    %8 = tpu.matmul %5, %4, %cst_10 {dimension_numbers = #tpu.dot_dimension_numbers<[1], [0], [0], [1], [0, 0, 1, 1], [], []>} : vector<64x64xf32>, vector<64x256xf32>, vector<64x256xf32> -> vector<64x256xf32>
    %9 = arith.mulf %4, %4 : vector<64x256xf32>
    %cst_11 = arith.constant dense<0.000000e+00> : vector<64x256xf32>
    %10 = tpu.matmul %5, %9, %cst_11 {dimension_numbers = #tpu.dot_dimension_numbers<[1], [0], [0], [1], [0, 0, 1, 1], [], []>} : vector<64x64xf32>, vector<64x256xf32>, vector<64x256xf32> -> vector<64x256xf32>
    %cst_12 = arith.constant dense<0.000000e+00> : vector<64xf32>
    %11 = vector.multi_reduction <add>, %8, %cst_12 [1] : vector<64x256xf32> to vector<64xf32>
    %12 = vector.shape_cast %11 : vector<64xf32> to vector<64x1xf32>
    %cst_13 = arith.constant 4.8828125E-4 : f32
    %13 = vector.broadcast %cst_13 : f32 to vector<64x1xf32>
    %14 = arith.mulf %12, %13 : vector<64x1xf32>
    %cst_14 = arith.constant dense<0.000000e+00> : vector<64xf32>
    %15 = vector.multi_reduction <add>, %10, %cst_14 [1] : vector<64x256xf32> to vector<64xf32>
    %16 = vector.shape_cast %15 : vector<64xf32> to vector<64x1xf32>
    %cst_15 = arith.constant 4.8828125E-4 : f32
    %17 = vector.broadcast %cst_15 : f32 to vector<64x1xf32>
    %18 = arith.mulf %16, %17 : vector<64x1xf32>
    %19 = arith.mulf %14, %14 : vector<64x1xf32>
    %20 = arith.subf %18, %19 : vector<64x1xf32>
    %cst_16 = arith.constant 0.000000e+00 : f32
    %21 = vector.broadcast %cst_16 : f32 to vector<64x1xf32>
    %22 = arith.maximumf %20, %21 : vector<64x1xf32>
    %cst_17 = arith.constant 9.99999974E-6 : f32
    %23 = vector.broadcast %cst_17 : f32 to vector<64x1xf32>
    %24 = arith.addf %22, %23 : vector<64x1xf32>
    %25 = math.rsqrt %24 : vector<64x1xf32>
    %26 = arith.mulf %6, %25 : vector<64x1xf32>
    %27 = arith.mulf %14, %26 : vector<64x1xf32>
    %28 = arith.subf %7, %27 : vector<64x1xf32>
    %29 = vector.broadcast %26 : vector<64x1xf32> to vector<64x256xf32>
    %30 = arith.mulf %4, %29 : vector<64x256xf32>
    %31 = vector.broadcast %28 : vector<64x1xf32> to vector<64x256xf32>
    %32 = arith.addf %30, %31 : vector<64x256xf32>
    %cst_18 = arith.constant 5.000000e-01 : f32
    %33 = vector.broadcast %cst_18 : f32 to vector<64x256xf32>
    %34 = arith.mulf %33, %32 : vector<64x256xf32>
    %cst_19 = arith.constant 0.707106769 : f32
    %35 = vector.broadcast %cst_19 : f32 to vector<64x256xf32>
    %36 = arith.mulf %32, %35 : vector<64x256xf32>
    %37 = math.erf %36 : vector<64x256xf32>
    %cst_20 = arith.constant 1.000000e+00 : f32
    %38 = vector.broadcast %cst_20 : f32 to vector<64x256xf32>
    %39 = arith.addf %38, %37 : vector<64x256xf32>
    %40 = arith.mulf %34, %39 : vector<64x256xf32>
    %41 = tpu.iota {dimensions = array<i32: 1>} : vector<1x256xi32>
    %c16_i32 = arith.constant 16 : i32
    %c0_i32 = arith.constant 0 : i32
    %42 = arith.cmpi eq, %c16_i32, %c0_i32 : i32
    %c1_i32 = arith.constant 1 : i32
    %43 = arith.select %42, %c1_i32, %c16_i32 : i32
    %44 = vector.broadcast %43 : i32 to vector<1x256xi32>
    %45 = arith.remsi %41, %44 : vector<1x256xi32>
    %c0_i32_21 = arith.constant 0 : i32
    %46 = vector.broadcast %c0_i32_21 : i32 to vector<1x256xi32>
    %47 = arith.cmpi ne, %45, %46 : vector<1x256xi32>
    %c0_i32_22 = arith.constant 0 : i32
    %48 = vector.broadcast %c0_i32_22 : i32 to vector<1x256xi32>
    %49 = arith.cmpi slt, %45, %48 : vector<1x256xi32>
    %c0_i32_23 = arith.constant 0 : i32
    %50 = arith.cmpi slt, %43, %c0_i32_23 : i32
    %51 = vector.broadcast %50 : i1 to vector<1x256xi1>
    %52 = vector.broadcast %51 : vector<1x256xi1> to vector<1x256xi1>
    %53 = arith.xori %49, %52 : vector<1x256xi1>
    %54 = arith.andi %53, %47 : vector<1x256xi1>
    %55 = vector.broadcast %43 : i32 to vector<1x256xi32>
    %56 = arith.addi %45, %55 : vector<1x256xi32>
    %57 = arith.select %54, %56, %45 : vector<1x256xi1>, vector<1x256xi32>
    %c16_i32_24 = arith.constant 16 : i32
    %58 = vector.broadcast %c16_i32_24 : i32 to vector<1x256xi32>
    %59 = arith.cmpi sge, %41, %58 : vector<1x256xi32>
    %c240_i32 = arith.constant 240 : i32
    %60 = vector.broadcast %c240_i32 : i32 to vector<1x256xi32>
    %61 = arith.cmpi slt, %41, %60 : vector<1x256xi32>
    %c0_i32_25 = arith.constant 0 : i32
    %62 = vector.broadcast %c0_i32_25 : i32 to vector<1x256xi32>
    %63 = arith.cmpi sgt, %57, %62 : vector<1x256xi32>
    %c15_i32 = arith.constant 15 : i32
    %64 = vector.broadcast %c15_i32 : i32 to vector<1x256xi32>
    %65 = arith.cmpi slt, %57, %64 : vector<1x256xi32>
    %c4 = arith.constant 4 : index
    %c0_26 = arith.constant 0 : index
    %c0_27 = arith.constant 0 : index
    %66 = vector.load %arg5[%c4, %c0_26, %c0_27] : memref<9x64x1xf32, #tpu.memory_space<vmem>>, vector<1x64x1xf32>
    %67 = vector.shape_cast %66 : vector<1x64x1xf32> to vector<64x1xf32>
    %68 = vector.broadcast %67 : vector<64x1xf32> to vector<64x256xf32>
    %69 = arith.mulf %40, %68 : vector<64x256xf32>
    %c0_28 = arith.constant 0 : index
    %c0_29 = arith.constant 0 : index
    %70 = vector.load %arg15[%c0_28, %c0_29] : memref<64x256xf32, #tpu.memory_space<vmem>>, vector<64x256xf32>
    tpu.vector_store %arg15[%c0_28, %c0_29], %69 {strides = array<i32>} : memref<64x256xf32, #tpu.memory_space<vmem>>, vector<64x256xf32>,
    %c17_i32 = arith.constant 17 : i32
    %71 = tpu.dynamic_rotate %40 by %c17_i32 dim 1 : vector<64x256xf32>, i32 -> vector<64x256xf32>
    %72 = arith.andi %59, %63 : vector<1x256xi1>
    %cst_30 = arith.constant 0.000000e+00 : f32
    %73 = vector.shape_cast %72 : vector<1x256xi1> to vector<1x256xi1>
    %74 = vector.broadcast %73 : vector<1x256xi1> to vector<64x256xi1>
    %75 = vector.broadcast %cst_30 : f32 to vector<64x256xf32>
    %76 = arith.select %74, %71, %75 : vector<64x256xi1>, vector<64x256xf32>
    %c0_31 = arith.constant 0 : index
    %c0_32 = arith.constant 0 : index
    %77 = vector.load %arg15[%c0_31, %c0_32] : memref<64x256xf32, #tpu.memory_space<vmem>>, vector<64x256xf32>
    %c0_33 = arith.constant 0 : index
    %c0_34 = arith.constant 0 : index
    %c0_35 = arith.constant 0 : index
    %78 = vector.load %arg5[%c0_33, %c0_34, %c0_35] : memref<9x64x1xf32, #tpu.memory_space<vmem>>, vector<1x64x1xf32>
    %79 = vector.shape_cast %78 : vector<1x64x1xf32> to vector<64x1xf32>
    %80 = vector.broadcast %79 : vector<64x1xf32> to vector<64x256xf32>
    %81 = arith.mulf %76, %80 : vector<64x256xf32>
    %82 = arith.addf %77, %81 : vector<64x256xf32>
    %c0_36 = arith.constant 0 : index
    %c0_37 = arith.constant 0 : index
    %83 = vector.load %arg15[%c0_36, %c0_37] : memref<64x256xf32, #tpu.memory_space<vmem>>, vector<64x256xf32>
    tpu.vector_store %arg15[%c0_36, %c0_37], %82 {strides = array<i32>} : memref<64x256xf32, #tpu.memory_space<vmem>>, vector<64x256xf32>,
    %c16_i32_38 = arith.constant 16 : i32
    %84 = tpu.dynamic_rotate %40 by %c16_i32_38 dim 1 : vector<64x256xf32>, i32 -> vector<64x256xf32>
    %cst_39 = arith.constant 0.000000e+00 : f32
    %85 = vector.shape_cast %59 : vector<1x256xi1> to vector<1x256xi1>
    %86 = vector.broadcast %85 : vector<1x256xi1> to vector<64x256xi1>
    %87 = vector.broadcast %cst_39 : f32 to vector<64x256xf32>
    %88 = arith.select %86, %84, %87 : vector<64x256xi1>, vector<64x256xf32>
    %c0_40 = arith.constant 0 : index
    %c0_41 = arith.constant 0 : index
    %89 = vector.load %arg15[%c0_40, %c0_41] : memref<64x256xf32, #tpu.memory_space<vmem>>, vector<64x256xf32>
    %c1 = arith.constant 1 : index
    %c0_42 = arith.constant 0 : index
    %c0_43 = arith.constant 0 : index
    %90 = vector.load %arg5[%c1, %c0_42, %c0_43] : memref<9x64x1xf32, #tpu.memory_space<vmem>>, vector<1x64x1xf32>
    %91 = vector.shape_cast %90 : vector<1x64x1xf32> to vector<64x1xf32>
    %92 = vector.broadcast %91 : vector<64x1xf32> to vector<64x256xf32>
    %93 = arith.mulf %88, %92 : vector<64x256xf32>
    %94 = arith.addf %89, %93 : vector<64x256xf32>
    %c0_44 = arith.constant 0 : index
    %c0_45 = arith.constant 0 : index
    %95 = vector.load %arg15[%c0_44, %c0_45] : memref<64x256xf32, #tpu.memory_space<vmem>>, vector<64x256xf32>
    tpu.vector_store %arg15[%c0_44, %c0_45], %94 {strides = array<i32>} : memref<64x256xf32, #tpu.memory_space<vmem>>, vector<64x256xf32>,
    %c15_i32_46 = arith.constant 15 : i32
    %96 = tpu.dynamic_rotate %40 by %c15_i32_46 dim 1 : vector<64x256xf32>, i32 -> vector<64x256xf32>
    %97 = arith.andi %59, %65 : vector<1x256xi1>
    %cst_47 = arith.constant 0.000000e+00 : f32
    %98 = vector.shape_cast %97 : vector<1x256xi1> to vector<1x256xi1>
    %99 = vector.broadcast %98 : vector<1x256xi1> to vector<64x256xi1>
    %100 = vector.broadcast %cst_47 : f32 to vector<64x256xf32>
    %101 = arith.select %99, %96, %100 : vector<64x256xi1>, vector<64x256xf32>
    %c0_48 = arith.constant 0 : index
    %c0_49 = arith.constant 0 : index
    %102 = vector.load %arg15[%c0_48, %c0_49] : memref<64x256xf32, #tpu.memory_space<vmem>>, vector<64x256xf32>
    %c2 = arith.constant 2 : index
    %c0_50 = arith.constant 0 : index
    %c0_51 = arith.constant 0 : index
    %103 = vector.load %arg5[%c2, %c0_50, %c0_51] : memref<9x64x1xf32, #tpu.memory_space<vmem>>, vector<1x64x1xf32>
    %104 = vector.shape_cast %103 : vector<1x64x1xf32> to vector<64x1xf32>
    %105 = vector.broadcast %104 : vector<64x1xf32> to vector<64x256xf32>
    %106 = arith.mulf %101, %105 : vector<64x256xf32>
    %107 = arith.addf %102, %106 : vector<64x256xf32>
    %c0_52 = arith.constant 0 : index
    %c0_53 = arith.constant 0 : index
    %108 = vector.load %arg15[%c0_52, %c0_53] : memref<64x256xf32, #tpu.memory_space<vmem>>, vector<64x256xf32>
    tpu.vector_store %arg15[%c0_52, %c0_53], %107 {strides = array<i32>} : memref<64x256xf32, #tpu.memory_space<vmem>>, vector<64x256xf32>,
    %c1_i32_54 = arith.constant 1 : i32
    %109 = tpu.dynamic_rotate %40 by %c1_i32_54 dim 1 : vector<64x256xf32>, i32 -> vector<64x256xf32>
    %cst_55 = arith.constant 0.000000e+00 : f32
    %110 = vector.shape_cast %63 : vector<1x256xi1> to vector<1x256xi1>
    %111 = vector.broadcast %110 : vector<1x256xi1> to vector<64x256xi1>
    %112 = vector.broadcast %cst_55 : f32 to vector<64x256xf32>
    %113 = arith.select %111, %109, %112 : vector<64x256xi1>, vector<64x256xf32>
    %c0_56 = arith.constant 0 : index
    %c0_57 = arith.constant 0 : index
    %114 = vector.load %arg15[%c0_56, %c0_57] : memref<64x256xf32, #tpu.memory_space<vmem>>, vector<64x256xf32>
    %c3 = arith.constant 3 : index
    %c0_58 = arith.constant 0 : index
    %c0_59 = arith.constant 0 : index
    %115 = vector.load %arg5[%c3, %c0_58, %c0_59] : memref<9x64x1xf32, #tpu.memory_space<vmem>>, vector<1x64x1xf32>
    %116 = vector.shape_cast %115 : vector<1x64x1xf32> to vector<64x1xf32>
    %117 = vector.broadcast %116 : vector<64x1xf32> to vector<64x256xf32>
    %118 = arith.mulf %113, %117 : vector<64x256xf32>
    %119 = arith.addf %114, %118 : vector<64x256xf32>
    %c0_60 = arith.constant 0 : index
    %c0_61 = arith.constant 0 : index
    %120 = vector.load %arg15[%c0_60, %c0_61] : memref<64x256xf32, #tpu.memory_space<vmem>>, vector<64x256xf32>
    tpu.vector_store %arg15[%c0_60, %c0_61], %119 {strides = array<i32>} : memref<64x256xf32, #tpu.memory_space<vmem>>, vector<64x256xf32>,
    %c255_i32 = arith.constant 255 : i32
    %121 = tpu.dynamic_rotate %40 by %c255_i32 dim 1 : vector<64x256xf32>, i32 -> vector<64x256xf32>
    %cst_62 = arith.constant 0.000000e+00 : f32
    %122 = vector.shape_cast %65 : vector<1x256xi1> to vector<1x256xi1>
    %123 = vector.broadcast %122 : vector<1x256xi1> to vector<64x256xi1>
    %124 = vector.broadcast %cst_62 : f32 to vector<64x256xf32>
    %125 = arith.select %123, %121, %124 : vector<64x256xi1>, vector<64x256xf32>
    %c0_63 = arith.constant 0 : index
    %c0_64 = arith.constant 0 : index
    %126 = vector.load %arg15[%c0_63, %c0_64] : memref<64x256xf32, #tpu.memory_space<vmem>>, vector<64x256xf32>
    %c5 = arith.constant 5 : index
    %c0_65 = arith.constant 0 : index
    %c0_66 = arith.constant 0 : index
    %127 = vector.load %arg5[%c5, %c0_65, %c0_66] : memref<9x64x1xf32, #tpu.memory_space<vmem>>, vector<1x64x1xf32>
    %128 = vector.shape_cast %127 : vector<1x64x1xf32> to vector<64x1xf32>
    %129 = vector.broadcast %128 : vector<64x1xf32> to vector<64x256xf32>
    %130 = arith.mulf %125, %129 : vector<64x256xf32>
    %131 = arith.addf %126, %130 : vector<64x256xf32>
    %c0_67 = arith.constant 0 : index
    %c0_68 = arith.constant 0 : index
    %132 = vector.load %arg15[%c0_67, %c0_68] : memref<64x256xf32, #tpu.memory_space<vmem>>, vector<64x256xf32>
    tpu.vector_store %arg15[%c0_67, %c0_68], %131 {strides = array<i32>} : memref<64x256xf32, #tpu.memory_space<vmem>>, vector<64x256xf32>,
    %c241_i32 = arith.constant 241 : i32
    %133 = tpu.dynamic_rotate %40 by %c241_i32 dim 1 : vector<64x256xf32>, i32 -> vector<64x256xf32>
    %134 = arith.andi %61, %63 : vector<1x256xi1>
    %cst_69 = arith.constant 0.000000e+00 : f32
    %135 = vector.shape_cast %134 : vector<1x256xi1> to vector<1x256xi1>
    %136 = vector.broadcast %135 : vector<1x256xi1> to vector<64x256xi1>
    %137 = vector.broadcast %cst_69 : f32 to vector<64x256xf32>
    %138 = arith.select %136, %133, %137 : vector<64x256xi1>, vector<64x256xf32>
    %c0_70 = arith.constant 0 : index
    %c0_71 = arith.constant 0 : index
    %139 = vector.load %arg15[%c0_70, %c0_71] : memref<64x256xf32, #tpu.memory_space<vmem>>, vector<64x256xf32>
    %c6 = arith.constant 6 : index
    %c0_72 = arith.constant 0 : index
    %c0_73 = arith.constant 0 : index
    %140 = vector.load %arg5[%c6, %c0_72, %c0_73] : memref<9x64x1xf32, #tpu.memory_space<vmem>>, vector<1x64x1xf32>
    %141 = vector.shape_cast %140 : vector<1x64x1xf32> to vector<64x1xf32>
    %142 = vector.broadcast %141 : vector<64x1xf32> to vector<64x256xf32>
    %143 = arith.mulf %138, %142 : vector<64x256xf32>
    %144 = arith.addf %139, %143 : vector<64x256xf32>
    %c0_74 = arith.constant 0 : index
    %c0_75 = arith.constant 0 : index
    %145 = vector.load %arg15[%c0_74, %c0_75] : memref<64x256xf32, #tpu.memory_space<vmem>>, vector<64x256xf32>
    tpu.vector_store %arg15[%c0_74, %c0_75], %144 {strides = array<i32>} : memref<64x256xf32, #tpu.memory_space<vmem>>, vector<64x256xf32>,
    %c240_i32_76 = arith.constant 240 : i32
    %146 = tpu.dynamic_rotate %40 by %c240_i32_76 dim 1 : vector<64x256xf32>, i32 -> vector<64x256xf32>
    %cst_77 = arith.constant 0.000000e+00 : f32
    %147 = vector.shape_cast %61 : vector<1x256xi1> to vector<1x256xi1>
    %148 = vector.broadcast %147 : vector<1x256xi1> to vector<64x256xi1>
    %149 = vector.broadcast %cst_77 : f32 to vector<64x256xf32>
    %150 = arith.select %148, %146, %149 : vector<64x256xi1>, vector<64x256xf32>
    %c0_78 = arith.constant 0 : index
    %c0_79 = arith.constant 0 : index
    %151 = vector.load %arg15[%c0_78, %c0_79] : memref<64x256xf32, #tpu.memory_space<vmem>>, vector<64x256xf32>
    %c7 = arith.constant 7 : index
    %c0_80 = arith.constant 0 : index
    %c0_81 = arith.constant 0 : index
    %152 = vector.load %arg5[%c7, %c0_80, %c0_81] : memref<9x64x1xf32, #tpu.memory_space<vmem>>, vector<1x64x1xf32>
    %153 = vector.shape_cast %152 : vector<1x64x1xf32> to vector<64x1xf32>
    %154 = vector.broadcast %153 : vector<64x1xf32> to vector<64x256xf32>
    %155 = arith.mulf %150, %154 : vector<64x256xf32>
    %156 = arith.addf %151, %155 : vector<64x256xf32>
    %c0_82 = arith.constant 0 : index
    %c0_83 = arith.constant 0 : index
    %157 = vector.load %arg15[%c0_82, %c0_83] : memref<64x256xf32, #tpu.memory_space<vmem>>, vector<64x256xf32>
    tpu.vector_store %arg15[%c0_82, %c0_83], %156 {strides = array<i32>} : memref<64x256xf32, #tpu.memory_space<vmem>>, vector<64x256xf32>,
    %c239_i32 = arith.constant 239 : i32
    %158 = tpu.dynamic_rotate %40 by %c239_i32 dim 1 : vector<64x256xf32>, i32 -> vector<64x256xf32>
    %159 = arith.andi %61, %65 : vector<1x256xi1>
    %cst_84 = arith.constant 0.000000e+00 : f32
    %160 = vector.shape_cast %159 : vector<1x256xi1> to vector<1x256xi1>
    %161 = vector.broadcast %160 : vector<1x256xi1> to vector<64x256xi1>
    %162 = vector.broadcast %cst_84 : f32 to vector<64x256xf32>
    %163 = arith.select %161, %158, %162 : vector<64x256xi1>, vector<64x256xf32>
    %c0_85 = arith.constant 0 : index
    %c0_86 = arith.constant 0 : index
    %164 = vector.load %arg15[%c0_85, %c0_86] : memref<64x256xf32, #tpu.memory_space<vmem>>, vector<64x256xf32>
    %c8 = arith.constant 8 : index
    %c0_87 = arith.constant 0 : index
    %c0_88 = arith.constant 0 : index
    %165 = vector.load %arg5[%c8, %c0_87, %c0_88] : memref<9x64x1xf32, #tpu.memory_space<vmem>>, vector<1x64x1xf32>
    %166 = vector.shape_cast %165 : vector<1x64x1xf32> to vector<64x1xf32>
    %167 = vector.broadcast %166 : vector<64x1xf32> to vector<64x256xf32>
    %168 = arith.mulf %163, %167 : vector<64x256xf32>
    %169 = arith.addf %164, %168 : vector<64x256xf32>
    %c0_89 = arith.constant 0 : index
    %c0_90 = arith.constant 0 : index
    %170 = vector.load %arg15[%c0_89, %c0_90] : memref<64x256xf32, #tpu.memory_space<vmem>>, vector<64x256xf32>
    tpu.vector_store %arg15[%c0_89, %c0_90], %169 {strides = array<i32>} : memref<64x256xf32, #tpu.memory_space<vmem>>, vector<64x256xf32>,
    %c0_91 = arith.constant 0 : index
    %c0_92 = arith.constant 0 : index
    %171 = vector.load %arg15[%c0_91, %c0_92] : memref<64x256xf32, #tpu.memory_space<vmem>>, vector<64x256xf32>
    %c0_93 = arith.constant 0 : index
    %c0_94 = arith.constant 0 : index
    %172 = vector.load %arg6[%c0_93, %c0_94] : memref<64x64xbf16, #tpu.memory_space<vmem>>, vector<64x64xbf16>
    %173 = arith.truncf %171 : vector<64x256xf32> to vector<64x256xbf16>
    %cst_95 = arith.constant dense<0.000000e+00> : vector<64x256xf32>
    %174 = tpu.matmul %172, %173, %cst_95 {dimension_numbers = #tpu.dot_dimension_numbers<[1], [0], [0], [1], [0, 0, 1, 1], [], []>} : vector<64x64xbf16>, vector<64x256xbf16>, vector<64x256xf32> -> vector<64x256xf32>
    %c0_96 = arith.constant 0 : index
    %c0_97 = arith.constant 0 : index
    %175 = vector.load %arg12[%c0_96, %c0_97] : memref<64x64xf32, #tpu.memory_space<vmem>>, vector<64x64xf32>
    %c0_98 = arith.constant 0 : index
    %c0_99 = arith.constant 0 : index
    %176 = vector.load %arg7[%c0_98, %c0_99] : memref<64x1xf32, #tpu.memory_space<vmem>>, vector<64x1xf32>
    %c0_100 = arith.constant 0 : index
    %c0_101 = arith.constant 0 : index
    %177 = vector.load %arg8[%c0_100, %c0_101] : memref<64x1xf32, #tpu.memory_space<vmem>>, vector<64x1xf32>
    %cst_102 = arith.constant dense<0.000000e+00> : vector<64x256xf32>
    %178 = tpu.matmul %175, %174, %cst_102 {dimension_numbers = #tpu.dot_dimension_numbers<[1], [0], [0], [1], [0, 0, 1, 1], [], []>} : vector<64x64xf32>, vector<64x256xf32>, vector<64x256xf32> -> vector<64x256xf32>
    %179 = arith.mulf %174, %174 : vector<64x256xf32>
    %cst_103 = arith.constant dense<0.000000e+00> : vector<64x256xf32>
    %180 = tpu.matmul %175, %179, %cst_103 {dimension_numbers = #tpu.dot_dimension_numbers<[1], [0], [0], [1], [0, 0, 1, 1], [], []>} : vector<64x64xf32>, vector<64x256xf32>, vector<64x256xf32> -> vector<64x256xf32>
    %cst_104 = arith.constant dense<0.000000e+00> : vector<64xf32>
    %181 = vector.multi_reduction <add>, %178, %cst_104 [1] : vector<64x256xf32> to vector<64xf32>
    %182 = vector.shape_cast %181 : vector<64xf32> to vector<64x1xf32>
    %cst_105 = arith.constant 4.8828125E-4 : f32
    %183 = vector.broadcast %cst_105 : f32 to vector<64x1xf32>
    %184 = arith.mulf %182, %183 : vector<64x1xf32>
    %cst_106 = arith.constant dense<0.000000e+00> : vector<64xf32>
    %185 = vector.multi_reduction <add>, %180, %cst_106 [1] : vector<64x256xf32> to vector<64xf32>
    %186 = vector.shape_cast %185 : vector<64xf32> to vector<64x1xf32>
    %cst_107 = arith.constant 4.8828125E-4 : f32
    %187 = vector.broadcast %cst_107 : f32 to vector<64x1xf32>
    %188 = arith.mulf %186, %187 : vector<64x1xf32>
    %189 = arith.mulf %184, %184 : vector<64x1xf32>
    %190 = arith.subf %188, %189 : vector<64x1xf32>
    %cst_108 = arith.constant 0.000000e+00 : f32
    %191 = vector.broadcast %cst_108 : f32 to vector<64x1xf32>
    %192 = arith.maximumf %190, %191 : vector<64x1xf32>
    %cst_109 = arith.constant 9.99999974E-6 : f32
    %193 = vector.broadcast %cst_109 : f32 to vector<64x1xf32>
    %194 = arith.addf %192, %193 : vector<64x1xf32>
    %195 = math.rsqrt %194 : vector<64x1xf32>
    %196 = arith.mulf %176, %195 : vector<64x1xf32>
    %197 = arith.mulf %184, %196 : vector<64x1xf32>
    %198 = arith.subf %177, %197 : vector<64x1xf32>
    %199 = vector.broadcast %196 : vector<64x1xf32> to vector<64x256xf32>
    %200 = arith.mulf %174, %199 : vector<64x256xf32>
    %201 = vector.broadcast %198 : vector<64x1xf32> to vector<64x256xf32>
    %202 = arith.addf %200, %201 : vector<64x256xf32>
    %cst_110 = arith.constant 5.000000e-01 : f32
    %203 = vector.broadcast %cst_110 : f32 to vector<64x256xf32>
    %204 = arith.mulf %203, %202 : vector<64x256xf32>
    %cst_111 = arith.constant 0.707106769 : f32
    %205 = vector.broadcast %cst_111 : f32 to vector<64x256xf32>
    %206 = arith.mulf %202, %205 : vector<64x256xf32>
    %207 = math.erf %206 : vector<64x256xf32>
    %cst_112 = arith.constant 1.000000e+00 : f32
    %208 = vector.broadcast %cst_112 : f32 to vector<64x256xf32>
    %209 = arith.addf %208, %207 : vector<64x256xf32>
    %210 = arith.mulf %204, %209 : vector<64x256xf32>
    %c0_113 = arith.constant 0 : index
    %c0_114 = arith.constant 0 : index
    %211 = vector.load %arg9[%c0_113, %c0_114] : memref<16x64xbf16, #tpu.memory_space<vmem>>, vector<16x64xbf16>
    %212 = arith.truncf %210 : vector<64x256xf32> to vector<64x256xbf16>
    %cst_115 = arith.constant dense<0.000000e+00> : vector<16x256xf32>
    %213 = tpu.matmul %211, %212, %cst_115 {dimension_numbers = #tpu.dot_dimension_numbers<[1], [0], [0], [1], [0, 0, 1, 1], [], []>} : vector<16x64xbf16>, vector<64x256xbf16>, vector<16x256xf32> -> vector<16x256xf32>
    %c0_116 = arith.constant 0 : index
    %c0_117 = arith.constant 0 : index
    %214 = vector.load %arg13[%c0_116, %c0_117] : memref<16x16xf32, #tpu.memory_space<vmem>>, vector<16x16xf32>
    %c0_118 = arith.constant 0 : index
    %c0_119 = arith.constant 0 : index
    %215 = vector.load %arg10[%c0_118, %c0_119] : memref<16x1xf32, #tpu.memory_space<vmem>>, vector<16x1xf32>
    %c0_120 = arith.constant 0 : index
    %c0_121 = arith.constant 0 : index
    %216 = vector.load %arg11[%c0_120, %c0_121] : memref<16x1xf32, #tpu.memory_space<vmem>>, vector<16x1xf32>
    %cst_122 = arith.constant dense<0.000000e+00> : vector<16x256xf32>
    %217 = tpu.matmul %214, %213, %cst_122 {dimension_numbers = #tpu.dot_dimension_numbers<[1], [0], [0], [1], [0, 0, 1, 1], [], []>} : vector<16x16xf32>, vector<16x256xf32>, vector<16x256xf32> -> vector<16x256xf32>
    %218 = arith.mulf %213, %213 : vector<16x256xf32>
    %cst_123 = arith.constant dense<0.000000e+00> : vector<16x256xf32>
    %219 = tpu.matmul %214, %218, %cst_123 {dimension_numbers = #tpu.dot_dimension_numbers<[1], [0], [0], [1], [0, 0, 1, 1], [], []>} : vector<16x16xf32>, vector<16x256xf32>, vector<16x256xf32> -> vector<16x256xf32>
    %cst_124 = arith.constant dense<0.000000e+00> : vector<16xf32>
    %220 = vector.multi_reduction <add>, %217, %cst_124 [1] : vector<16x256xf32> to vector<16xf32>
    %221 = vector.shape_cast %220 : vector<16xf32> to vector<16x1xf32>
    %cst_125 = arith.constant 0.001953125 : f32
    %222 = vector.broadcast %cst_125 : f32 to vector<16x1xf32>
    %223 = arith.mulf %221, %222 : vector<16x1xf32>
    %cst_126 = arith.constant dense<0.000000e+00> : vector<16xf32>
    %224 = vector.multi_reduction <add>, %219, %cst_126 [1] : vector<16x256xf32> to vector<16xf32>
    %225 = vector.shape_cast %224 : vector<16xf32> to vector<16x1xf32>
    %cst_127 = arith.constant 0.001953125 : f32
    %226 = vector.broadcast %cst_127 : f32 to vector<16x1xf32>
    %227 = arith.mulf %225, %226 : vector<16x1xf32>
    %228 = arith.mulf %223, %223 : vector<16x1xf32>
    %229 = arith.subf %227, %228 : vector<16x1xf32>
    %cst_128 = arith.constant 0.000000e+00 : f32
    %230 = vector.broadcast %cst_128 : f32 to vector<16x1xf32>
    %231 = arith.maximumf %229, %230 : vector<16x1xf32>
    %cst_129 = arith.constant 9.99999974E-6 : f32
    %232 = vector.broadcast %cst_129 : f32 to vector<16x1xf32>
    %233 = arith.addf %231, %232 : vector<16x1xf32>
    %234 = math.rsqrt %233 : vector<16x1xf32>
    %235 = arith.mulf %215, %234 : vector<16x1xf32>
    %236 = arith.mulf %223, %235 : vector<16x1xf32>
    %237 = arith.subf %216, %236 : vector<16x1xf32>
    %238 = vector.broadcast %235 : vector<16x1xf32> to vector<16x256xf32>
    %239 = arith.mulf %213, %238 : vector<16x256xf32>
    %240 = vector.broadcast %237 : vector<16x1xf32> to vector<16x256xf32>
    %241 = arith.addf %239, %240 : vector<16x256xf32>
    %c0_130 = arith.constant 0 : index
    %c0_131 = arith.constant 0 : index
    %c0_132 = arith.constant 0 : index
    %242 = vector.load %arg14[%c0_130, %c0_131, %c0_132] : memref<1x16x256xf32, #tpu.memory_space<vmem>>, vector<1x16x256xf32>
    %243 = vector.shape_cast %242 : vector<1x16x256xf32> to vector<16x256xf32>
    %244 = vector.shape_cast %241 : vector<16x256xf32> to vector<1x16x256xf32>
    tpu.vector_store %arg14[%c0_130, %c0_131, %c0_132], %244 {strides = array<i32>} : memref<1x16x256xf32, #tpu.memory_space<vmem>>, vector<1x16x256xf32>,
    return
  }
  func.func @transform_0(%arg0: i32) -> (i32, i32, i32) {
    %c0_i32 = arith.constant 0 : i32
    %c0_i32_0 = arith.constant 0 : i32
    %c0_i32_1 = arith.constant 0 : i32
    return %arg0, %c0_i32, %c0_i32_0 : i32, i32, i32
  }
  func.func @transform_1(%arg0: i32) -> (i32, i32) {
    %c0_i32 = arith.constant 0 : i32
    %c0_i32_0 = arith.constant 0 : i32
    %c0_i32_1 = arith.constant 0 : i32
    return %c0_i32, %c0_i32_0 : i32, i32
  }
  func.func @transform_2(%arg0: i32) -> (i32, i32) {
    %c0_i32 = arith.constant 0 : i32
    %c0_i32_0 = arith.constant 0 : i32
    %c0_i32_1 = arith.constant 0 : i32
    return %c0_i32, %c0_i32_0 : i32, i32
  }
  func.func @transform_3(%arg0: i32) -> (i32, i32) {
    %c0_i32 = arith.constant 0 : i32
    %c0_i32_0 = arith.constant 0 : i32
    %c0_i32_1 = arith.constant 0 : i32
    return %c0_i32, %c0_i32_0 : i32, i32
  }
  func.func @transform_4(%arg0: i32) -> (i32, i32, i32) {
    %c0_i32 = arith.constant 0 : i32
    %c0_i32_0 = arith.constant 0 : i32
    %c0_i32_1 = arith.constant 0 : i32
    %c0_i32_2 = arith.constant 0 : i32
    return %c0_i32, %c0_i32_0, %c0_i32_1 : i32, i32, i32
  }
  func.func @transform_5(%arg0: i32) -> (i32, i32) {
    %c0_i32 = arith.constant 0 : i32
    %c0_i32_0 = arith.constant 0 : i32
    %c0_i32_1 = arith.constant 0 : i32
    return %c0_i32, %c0_i32_0 : i32, i32
  }
  func.func @transform_6(%arg0: i32) -> (i32, i32) {
    %c0_i32 = arith.constant 0 : i32
    %c0_i32_0 = arith.constant 0 : i32
    %c0_i32_1 = arith.constant 0 : i32
    return %c0_i32, %c0_i32_0 : i32, i32
  }
  func.func @transform_7(%arg0: i32) -> (i32, i32) {
    %c0_i32 = arith.constant 0 : i32
    %c0_i32_0 = arith.constant 0 : i32
    %c0_i32_1 = arith.constant 0 : i32
    return %c0_i32, %c0_i32_0 : i32, i32
  }
  func.func @transform_8(%arg0: i32) -> (i32, i32) {
    %c0_i32 = arith.constant 0 : i32
    %c0_i32_0 = arith.constant 0 : i32
    %c0_i32_1 = arith.constant 0 : i32
    return %c0_i32, %c0_i32_0 : i32, i32
  }
  func.func @transform_9(%arg0: i32) -> (i32, i32) {
    %c0_i32 = arith.constant 0 : i32
    %c0_i32_0 = arith.constant 0 : i32
    %c0_i32_1 = arith.constant 0 : i32
    return %c0_i32, %c0_i32_0 : i32, i32
  }
  func.func @transform_10(%arg0: i32) -> (i32, i32) {
    %c0_i32 = arith.constant 0 : i32
    %c0_i32_0 = arith.constant 0 : i32
    %c0_i32_1 = arith.constant 0 : i32
    return %c0_i32, %c0_i32_0 : i32, i32
  }
  func.func @transform_11(%arg0: i32) -> (i32, i32) {
    %c0_i32 = arith.constant 0 : i32
    %c0_i32_0 = arith.constant 0 : i32
    %c0_i32_1 = arith.constant 0 : i32
    return %c0_i32, %c0_i32_0 : i32, i32
  }
  func.func @transform_12(%arg0: i32) -> (i32, i32) {
    %c0_i32 = arith.constant 0 : i32
    %c0_i32_0 = arith.constant 0 : i32
    %c0_i32_1 = arith.constant 0 : i32
    return %c0_i32, %c0_i32_0 : i32, i32
  }
  func.func @transform_13(%arg0: i32) -> (i32, i32, i32) {
    %c0_i32 = arith.constant 0 : i32
    %c0_i32_0 = arith.constant 0 : i32
    %c0_i32_1 = arith.constant 0 : i32
    return %arg0, %c0_i32, %c0_i32_0 : i32, i32, i32
  }
}

</mosaic_0001>

<bundles_post_ra>
// kernel: inverted_residual_block.1
= control target key start
LH: loop header
LB: loop body
LE: loop exit
PB: predicated region body
PF: predicated region fallthrough
CT: control target
= control target key end

     0   :  { %s5479_s25 = smov 0   ;;  %s8978_s0 = inlined_call_operand.vmem [shape: f32[2,16,256], index: 0, kind: input, shape index: {}]   ;;  %s8979_s1 = inlined_call_operand.vmem [shape: bf16[64,16], index: 1, kind: input, shape index: {}]   ;;  %s8980_s2 = inlined_call_operand.vmem [shape: f32[64,1], index: 2, kind: input, shape index: {}]   ;;  %s8981_s3 = inlined_call_operand.vmem [shape: f32[64,1], index: 3, kind: input, shape index: {}]   ;;  %s8982_s4 = inlined_call_operand.vmem [shape: f32[9,64,1], index: 4, kind: input, shape index: {}]   ;;  %s8983_s5 = inlined_call_operand.vmem [shape: bf16[64,64], index: 5, kind: input, shape index: {}]   ;;  %s8984_s6 = inlined_call_operand.vmem [shape: f32[64,1], index: 6, kind: input, shape index: {}]   ;;  %s8985_s7 = inlined_call_operand.vmem [shape: f32[64,1], index: 7, kind: input, shape index: {}]   ;;  %s8986_s8 = inlined_call_operand.vmem [shape: bf16[16,64], index: 8, kind: input, shape index: {}]   ;;  %s8987_s9 = inlined_call_operand.vmem [shape: f32[16,1], index: 9, kind: input, shape index: {}]   ;;  %s8988_s10 = inlined_call_operand.vmem [shape: f32[16,1], index: 10, kind: input, shape index: {}]   ;;  %s8989_s11 = inlined_call_operand.vmem [shape: f32[64,64], index: 11, kind: input, shape index: {}]   ;;  %s8990_s12 = inlined_call_operand.vmem [shape: f32[16,16], index: 12, kind: input, shape index: {}]   ;;  %s8991_s13 = inlined_call_operand.vmem [shape: f32[2,16,256], index: 13, kind: output, shape index: {}]  }
   0x1 LB: > { %s5028_s26 = sadd.s32 4294967295, %s5398_s25   ;;  %p5032_p0 = scmp.ge.s32.totalorder %s5398_s25, 1  ;;  %s5398_s25 = sphi %s5479_s25, %s23_s25  }
   0x2   : > { %p387_p1 = scmp.lt.s32.totalorder %s5398_s25, 3 }
   0x4   : > { %p388_p2 = pnand %p5032_p0, %p387_p1 }
   0x6   : > { %391 = sbr.rel (%p388_p2) target bundleno = 2552 (0x9f8), region = 72 }
   0xb   : > { %v2001_v0 = vld [vmem:[%s8982_s4 + $0x30] sm:$0xff]  ;;  %v5116_v1 = vld [vmem:[%s8982_s4 + $0x138] sm:$0xff]  ;;  %p431_p3 = scmp.lt.s32.totalorder %s5028_s26, 1  ;;  %v5400_v3 = vmov 0   ;;  %v1999_v9 = vld [vmem:[%s8982_s4 + $0x20] sm:$0xff]  ;;  %vm9063_vm0 = vcmask 130048  }
   0xc   : > { %v5115_v2 = vld [vmem:[%s8982_s4 + $0x130] sm:$0xff]  ;;  %5291 = vset.pattern.permute.xlu2 %v5400_v3  ;;  %5290 = vset.pattern.permute.xlu0 %v5400_v3  ;;  %v5124_v11 = vld [vmem:[%s8982_s4 + $0x78] sm:$0xff]  ;;  %v5263_v13 = vld [vmem:[%s8979_s1] sm:$0xff]  ;;  %vm9064_vm1 = vcmask 523264   ;;  %s5401_s30 = smov 17   ;;  %s5402_s14 = smov 16  }
   0xd   : > { %5289 = vset.pattern.permute.xlu1 %v5400_v3  ;;  %2035 = vperm.xlu2 %5291, %v2001_v0   ;;  %s9443_s26 = smov (!%p431_p3, %s5028_s26), 1  ;;  %v2002_v12 = vld [vmem:[%s8982_s4 + $0x38] sm:$0xff]  ;;  %v5131_v14 = vld [vmem:[%s8982_s4 + $0xb0] sm:$0xff]  ;;  %v5114_v15 = vld [vmem:[%s8982_s4 + $0x128] sm:$0xff]  ;;  %s5403_s15 = smov 1  }
   0xe   : > { %1873 = vperm.xlu0 %5290, %v5116_v1   ;;  %1868 = vperm.xlu1 %5289, %v5115_v2   ;;  %s5261_s16 = sshll.u32 %s9443_s26, 5  ;;  %v5123_v16 = vld [vmem:[%s8982_s4 + $0x70] sm:$0xff]  ;;  %v5122_v18 = vld [vmem:[%s8982_s4 + $0x68] sm:$0xff]  ;;  %v5113_v19 = vld [vmem:[%s8982_s4 + $0x120] sm:$0xff]  ;;  %s5404_s17 = smov 15  }
   0xf   : > { %s435_s19 = scalar_lea.vmem %s8978_s0, %s5261_s16  ;;  %v1997_v17 = vld [vmem:[%s8982_s4 + $0x10] sm:$0xff]  ;;  %v5264_v20 = vld [vmem:[%s8979_s1 + $0x8] sm:$0xff]  ;;  %v5129_v21 = vld [vmem:[%s8982_s4 + $0xa0] sm:$0xff]  ;;  %s5405_s18 = smov 127  }
  0x10   : > { %v442_v4 = vld [vmem:[%s435_s19] sm:$0xff]  ;;  %v444_v5 = vld [vmem:[%s435_s19 + $0x10] sm:$0xff]  ;;  %v443_v6 = vld [vmem:[%s435_s19 + $0x8] sm:$0xff]  ;;  %s5407_s20 = smov 112   ;;  %s5408_s21 = smov 111  }
  0x11   : > { %v454_v7 = vpack.c.bf16 %v444_v5, %v442_v4  ;;  %v445_v8 = vld [vmem:[%s435_s19 + $0x18] sm:$0xff]  ;;  %v2000_v23 = vld [vmem:[%s8982_s4 + $0x28] sm:$0xff]  ;;  %v5147_v24 = vld [vmem:[%s8982_s4 + $0x170] sm:$0xff]  ;;  %s5406_s19 = smov 113  }
  0x12   : > { %v455_v10 = vpack.c.bf16 %v445_v8, %v443_v6  ;;  %v5140_v22 = vld [vmem:[%s8982_s4 + $0xf8] sm:$0xff]  ;;  %v5265_v27 = vld [vmem:[%s8979_s1 + $0x10] sm:$0xff]  ;;  %v1995_v28 = vld [vmem:[%s8982_s4] sm:$0xff] }
  0x13   : > { %496 = vmatpush.bf16.msra.mxu0 %v454_v7  ;;  %v5112_v25 = vld [vmem:[%s8982_s4 + $0x118] sm:$0xff]  ;;  %v5121_v30 = vld [vmem:[%s8982_s4 + $0x60] sm:$0xff]  ;;  %v5127_v31 = vld [vmem:[%s8982_s4 + $0x90] sm:$0xff] }
  0x14   : > { %525 = vmatpush.bf16.msra.mxu1 %v455_v10  ;;  %v5132_v26 = vld [vmem:[%s8982_s4 + $0xb8] sm:$0xff]  ;;  %v5138_v32 = vld [vmem:[%s8982_s4 + $0xe8] sm:$0xff]  ;;  %v5139_v33 = vld [vmem:[%s8982_s4 + $0xf0] sm:$0xff] }
  0x15   : > { %2025 = vperm.xlu2 %5291, %v1999_v9   ;;  %v5120_v29 = vld [vmem:[%s8982_s4 + $0x58] sm:$0xff]  ;;  %v5145_v35 = vld [vmem:[%s8982_s4 + $0x160] sm:$0xff]  ;;  %v5111_v37 = vld [vmem:[%s8982_s4 + $0x110] sm:$0xff] }
  0x16   : > { %2222 = vperm.xlu0 %5290, %v5124_v11   ;;  %2040 = vperm.xlu1 %5289, %v2002_v12   ;;  %v5266_v34 = vld [vmem:[%s8979_s1 + $0x18] sm:$0xff]  ;;  %v5163_v38 = vld [vmem:[%s8982_s4 + $0x1f0] sm:$0xff]  ;;  %v5110_v39 = vld [vmem:[%s8982_s4 + $0x108] sm:$0xff] }
  0x17   : > { %5053 = vmatmul.msk.bf16.vlgmr.msra.gmra.mxu0 %vm9063_vm0, %v5263_v13  ;;  %5057 = vmatmul.msk.bf16.vlgmr.msra.gmra.mxu1 %vm9063_vm0, %v5263_v13  ;;  %v5156_v36 = vld [vmem:[%s8982_s4 + $0x1b8] sm:$0xff]  ;;  %v5117_v41 = vld [vmem:[%s8982_s4 + $0x40] sm:$0xff]  ;;  %v5130_v43 = vld [vmem:[%s8982_s4 + $0xa8] sm:$0xff] }
  0x18   : > { %v1998_v40 = vld [vmem:[%s8982_s4 + $0x18] sm:$0xff]  ;;  %v5125_v42 = vld [vmem:[%s8982_s4 + $0x80] sm:$0xff]  ;;  %v5135_v44 = vld [vmem:[%s8982_s4 + $0xd0] sm:$0xff] }
  0x19   : > { %v5143_v45 = vld [vmem:[%s8982_s4 + $0x150] sm:$0xff]  ;;  %v5148_v46 = vld [vmem:[%s8982_s4 + $0x178] sm:$0xff]  ;;  %v5153_v47 = vld [vmem:[%s8982_s4 + $0x1a0] sm:$0xff] }
  0x1a   : > { %v5161_v48 = vld [vmem:[%s8982_s4 + $0x1e0] sm:$0xff]  ;;  %v5119_v49 = vld [vmem:[%s8982_s4 + $0x50] sm:$0xff]  ;;  %v5126_v53 = vld [vmem:[%s8982_s4 + $0x88] sm:$0xff] }
  0x1b   : > { %v5171_v50 = vld [vmem:[%s8982_s4 + $0x230] sm:$0xff]  ;;  %v5133_v51 = vld [vmem:[%s8982_s4 + $0xc0] sm:$0xff]  ;;  %v5144_v56 = vld [vmem:[%s8982_s4 + $0x158] sm:$0xff] }
  0x1c   : > { %v5137_v52 = vld [vmem:[%s8982_s4 + $0xe0] sm:$0xff]  ;;  %v5151_v54 = vld [vmem:[%s8982_s4 + $0x190] sm:$0xff]  ;;  %v5162_v59 = vld [vmem:[%s8982_s4 + $0x1e8] sm:$0xff] }
  0x1d   : > { %2401 = vperm.xlu2 %5291, %v5131_v14   ;;  %v5155_v55 = vld [vmem:[%s8982_s4 + $0x1b0] sm:$0xff]  ;;  %v5169_v57 = vld [vmem:[%s8982_s4 + $0x220] sm:$0xff]  ;;  %v5142_v60 = vld [vmem:[%s8982_s4 + $0x148] sm:$0xff] }
  0x1e   : > { %1863 = vperm.xlu0 %5290, %v5114_v15   ;;  %2217 = vperm.xlu1 %5289, %v5123_v16   ;;  %v5109_v58 = vld [vmem:[%s8982_s4 + $0x100] sm:$0xff]  ;;  %v1996_v61 = vld [vmem:[%s8982_s4 + $0x8] sm:$0xff]  ;;  %v5160_v63 = vld [vmem:[%s8982_s4 + $0x1d8] sm:$0xff] }
  0x1f   : > { %v5134_v62 = vld [vmem:[%s8982_s4 + $0xc8] sm:$0xff]  ;;  %v5128_v0 = vld [vmem:[%s8982_s4 + $0x98] sm:$0xff]  ;;  %v5157_v13 = vld [vmem:[%s8982_s4 + $0x1c0] sm:$0xff] }
  0x20   : > { %v5152_v3 = vld [vmem:[%s8982_s4 + $0x198] sm:$0xff]  ;;  %v5150_v4 = vld [vmem:[%s8982_s4 + $0x188] sm:$0xff] }
  0x21   : > { %v5146_v5 = vld [vmem:[%s8982_s4 + $0x168] sm:$0xff]  ;;  %v5168_v9 = vld [vmem:[%s8982_s4 + $0x218] sm:$0xff] }
  0x22   : > { %v5170_v8 = vld [vmem:[%s8982_s4 + $0x228] sm:$0xff]  ;;  %v5164_v10 = vld [vmem:[%s8982_s4 + $0x1f8] sm:$0xff] }
  0x23   : > { %v5118_v14 = vld [vmem:[%s8982_s4 + $0x48] sm:$0xff] }
  0x25   : > { %2015 = vperm.xlu2 %5291, %v1997_v17   ;;  %v5136_v17 = vld [vmem:[%s8982_s4 + $0xd8] sm:$0xff] }
  0x26   : > { %2212 = vperm.xlu0 %5290, %v5122_v18   ;;  %1858 = vperm.xlu1 %5289, %v5113_v19  }
  0x27   : > { %5054 = vmatmul.msk.bf16.gmra.mxu0 %vm9063_vm0, %v5264_v20  ;;  %5058 = vmatmul.msk.bf16.gmra.mxu1 %vm9063_vm0, %v5264_v20  ;;  %v5154_v20 = vld [vmem:[%s8982_s4 + $0x1a8] sm:$0xff] }
  0x2d   : > { %2391 = vperm.xlu2 %5291, %v5129_v21  }
  0x2e   : > { %2588 = vperm.xlu0 %5290, %v5140_v22   ;;  %2030 = vperm.xlu1 %5289, %v2000_v23  }
  0x35   : > { %2765 = vperm.xlu2 %5291, %v5147_v24   ;;  %v5172_v24 = vld [vmem:[%s8982_s4 + $0x238] sm:$0xff] }
  0x36   : > { %1853 = vperm.xlu0 %5290, %v5112_v25   ;;  %2406 = vperm.xlu1 %5289, %v5132_v26  }
  0x37   : > { %5055 = vmatmul.msk.bf16.gmra.mxu0 %vm9063_vm0, %v5265_v27  ;;  %5059 = vmatmul.msk.bf16.gmra.mxu1 %vm9063_vm0, %v5265_v27 }
  0x3d   : > { %2005 = vperm.xlu2 %5291, %v1995_v28   ;;  %v5141_v28 = vld [vmem:[%s8982_s4 + $0x140] sm:$0xff] }
  0x3e   : > { %2202 = vperm.xlu0 %5290, %v5120_v29   ;;  %2207 = vperm.xlu1 %5289, %v5121_v30  }
  0x45   : > { %2381 = vperm.xlu2 %5291, %v5127_v31  }
  0x46   : > { %2578 = vperm.xlu0 %5290, %v5138_v32   ;;  %2583 = vperm.xlu1 %5289, %v5139_v33  }
  0x47   : > { %5056 = vmatmul.msk.bf16.gmra.mxu0 %vm9063_vm0, %v5266_v34  ;;  %5060 = vmatmul.msk.bf16.gmra.mxu1 %vm9063_vm0, %v5266_v34 }
  0x4d   : > { %2755 = vperm.xlu2 %5291, %v5145_v35  }
  0x4e   : > { %2954 = vperm.xlu0 %5290, %v5156_v36   ;;  %1848 = vperm.xlu1 %5289, %v5111_v37  }
  0x55   : > { %3131 = vperm.xlu2 %5291, %v5163_v38   ;;  %v5159_v38 = vld [vmem:[%s8982_s4 + $0x1d0] sm:$0xff] }
  0x56   : > { %1843 = vperm.xlu0 %5290, %v5110_v39   ;;  %2020 = vperm.xlu1 %5289, %v1998_v40  }
  0x5d   : > { %2187 = vperm.xlu2 %5291, %v5117_v41  }
  0x5e   : > { %2371 = vperm.xlu0 %5290, %v5125_v42   ;;  %2396 = vperm.xlu1 %5289, %v5130_v43  }
  0x65   : > { %2563 = vperm.xlu2 %5291, %v5135_v44  }
  0x66   : > { %2745 = vperm.xlu0 %5290, %v5143_v45   ;;  %2770 = vperm.xlu1 %5289, %v5148_v46   ;;  %v547_v46 = vld [vmem:[%s8989_s11] sm:$0xff] }
  0x6d   : > { %2939 = vperm.xlu2 %5291, %v5153_v47  }
  0x6e   : > { %3121 = vperm.xlu0 %5290, %v5161_v48   ;;  %2197 = vperm.xlu1 %5289, %v5119_v49   ;;  %v5149_v48 = vld [vmem:[%s8982_s4 + $0x180] sm:$0xff] }
  0x75   : > { %3315 = vperm.xlu2 %5291, %v5171_v50  }
  0x76   : > { %2553 = vperm.xlu0 %5290, %v5133_v51   ;;  %2573 = vperm.xlu1 %5289, %v5137_v52   ;;  %v548_v52 = vld [vmem:[%s8989_s11 + $0x8] sm:$0xff] }
  0x7d   : > { %2376 = vperm.xlu2 %5291, %v5126_v53   ;;  %v5167_v53 = vld [vmem:[%s8982_s4 + $0x210] sm:$0xff] }
  0x7e   : > { %2929 = vperm.xlu0 %5290, %v5151_v54   ;;  %2949 = vperm.xlu1 %5289, %v5155_v55   ;;  %v549_v55 = vld [vmem:[%s8989_s11 + $0x10] sm:$0xff] }
  0x80   : > { %v5731_v23 = vpop.permute.xlu1 %1868 }
  0x81   : > { %9079 = vst [vmem:[#allocation3_spill] sm:$0xff] %v5731_v23 }
  0x85   : > { %2750 = vperm.xlu2 %5291, %v5144_v56   ;;  %v5158_v56 = vld [vmem:[%s8982_s4 + $0x1c8] sm:$0xff] }
  0x86   : > { %3305 = vperm.xlu0 %5290, %v5169_v57   ;;  %1838 = vperm.xlu1 %5289, %v5109_v58   ;;  %v550_v58 = vld [vmem:[%s8989_s11 + $0x18] sm:$0xff] }
  0x88   : > { %v5740_v27 = vpop.permute.xlu1 %2040 }
  0x89   : > { %9080 = vst [vmem:[#allocation4_spill] sm:$0xff] %v5740_v27 }
  0x8d   : > { %3126 = vperm.xlu2 %5291, %v5162_v59  }
  0x8e   : > { %2740 = vperm.xlu0 %5290, %v5142_v60   ;;  %2010 = vperm.xlu1 %5289, %v1996_v61   ;;  %v551_v60 = vld [vmem:[%s8989_s11 + $0x20] sm:$0xff]  ;;  %v5854_v61 = vpop.permute.xlu2 %2035 }
  0x8f   : > { %9086 = vst [vmem:[#allocation10_spill] sm:$0xff] %v5854_v61 }
  0x90   : > { %v5764_v36 = vpop.permute.xlu1 %2217 }
  0x91   : > { %9081 = vst [vmem:[#allocation5_spill] sm:$0xff] %v5764_v36 }
  0x94   : > { %v5677_v1 = vpop.f32.mrf.mxu0  ;;  %v5679_v2 = vpop.f32.mrf.mxu1 }
  0x95   : > { %2558 = vperm.xlu2 %5291, %v5134_v62   ;;  %v678_v50 = vmul.f32 %v5677_v1, %v5677_v1  ;;  %v679_v51 = vmul.f32 %v5679_v2, %v5679_v2  ;;  %v552_v62 = vld [vmem:[%s8989_s11 + $0x28] sm:$0xff] }
  0x96   : > { %3116 = vperm.xlu0 %5290, %v5160_v63   ;;  %2386 = vperm.xlu1 %5289, %v5128_v0   ;;  %v553_v0 = vld [vmem:[%s8989_s11 + $0x30] sm:$0xff] }
  0x98   : > { %v5803_v49 = vpop.permute.xlu1 %1858 }
  0x99   : > { %9082 = vst [vmem:[#allocation6_spill] sm:$0xff] %v5803_v49 }
  0x9c   : > { %v5690_v6 = vpop.f32.mrf.mxu0  ;;  %v5692_v7 = vpop.f32.mrf.mxu1 }
  0x9d   : > { %2934 = vperm.xlu2 %5291, %v5152_v3   ;;  %v680_v45 = vmul.f32 %v5690_v6, %v5690_v6  ;;  %v681_v47 = vmul.f32 %v5692_v7, %v5692_v7  ;;  %v5868_v3 = vpop.permute.xlu2 %2025 }
  0x9e   : > { %2924 = vperm.xlu0 %5290, %v5150_v4   ;;  %2760 = vperm.xlu1 %5289, %v5146_v5   ;;  %9088 = vst [vmem:[#allocation12_spill] sm:$0xff] %v5868_v3  ;;  %v5874_v5 = vpop.permute.xlu0 %1873 }
  0x9f   : > { %9090 = vst [vmem:[#allocation14_spill] sm:$0xff] %v5874_v5 }
  0xa0   : > { %v5821_v54 = vpop.permute.xlu1 %2030 }
  0xa1   : > { %9083 = vst [vmem:[#allocation7_spill] sm:$0xff] %v5821_v54 }
  0xa4   : > { %v5703_v11 = vpop.f32.mrf.mxu0  ;;  %v5705_v12 = vpop.f32.mrf.mxu1 }
  0xa5   : > { %3310 = vperm.xlu2 %5291, %v5170_v8   ;;  %v682_v43 = vmul.f32 %v5703_v11, %v5703_v11  ;;  %v683_v44 = vmul.f32 %v5705_v12, %v5705_v12  ;;  %v554_v8 = vld [vmem:[%s8989_s11 + $0x38] sm:$0xff] }
  0xa6   : > { %3300 = vperm.xlu0 %5290, %v5168_v9   ;;  %3136 = vperm.xlu1 %5289, %v5164_v10   ;;  %v5882_v9 = vpop.permute.xlu2 %2401 }
  0xa7   : > { %9091 = vst [vmem:[#allocation15_spill] sm:$0xff] %v5882_v9 }
  0xa8   : > { %v5834_v57 = vpop.permute.xlu1 %2406 }
  0xa9   : > { %9084 = vst [vmem:[#allocation8_spill] sm:$0xff] %v5834_v57 }
  0xac   : > { %v5713_v15 = vpop.f32.mrf.mxu0  ;;  %v5715_v16 = vpop.f32.mrf.mxu1 }
  0xad   : > { %3101 = vperm.xlu2 %5291, %v5157_v13   ;;  %v684_v41 = vmul.f32 %v5713_v15, %v5713_v15  ;;  %v685_v42 = vmul.f32 %v5715_v16, %v5715_v16  ;;  %v5889_v13 = vpop.permute.xlu0 %2222 }
  0xae   : > { %2192 = vperm.xlu1 %5289, %v5118_v14   ;;  %9093 = vst [vmem:[#allocation17_spill] sm:$0xff] %v5889_v13  ;;  %v5891_v14 = vpop.permute.xlu2 %2015 }
  0xaf   : > { %9094 = vst [vmem:[#allocation18_spill] sm:$0xff] %v5891_v14 }
  0xb0   : > { %v5845_v59 = vpop.permute.xlu1 %2207 }
  0xb1   : > { %9085 = vst [vmem:[#allocation9_spill] sm:$0xff] %v5845_v59 }
  0xb4   : > { %v5720_v18 = vpop.f32.mrf.mxu0  ;;  %v5722_v19 = vpop.f32.mrf.mxu1 }
  0xb5   : > { %v686_v39 = vmul.f32 %v5720_v18, %v5720_v18  ;;  %v687_v40 = vmul.f32 %v5722_v19, %v5722_v19 }
  0xb6   : > { %2568 = vperm.xlu1 %5289, %v5136_v17  }
  0xb8   : > { %v5859_v63 = vpop.permute.xlu1 %2583 }
  0xb9   : > { %9087 = vst [vmem:[#allocation11_spill] sm:$0xff] %v5859_v63 }
  0xbc   : > { %v5727_v21 = vpop.f32.mrf.mxu0  ;;  %v5729_v22 = vpop.f32.mrf.mxu1 }
  0xbd   : > { %v688_v35 = vmul.f32 %v5727_v21, %v5727_v21  ;;  %v689_v37 = vmul.f32 %v5729_v22, %v5729_v22 }
  0xbe   : > { %2944 = vperm.xlu1 %5289, %v5154_v20   ;;  %v5895_v20 = vpop.permute.xlu0 %1863 }
  0xbf   : > { %9096 = vst [vmem:[#allocation20_spill] sm:$0xff] %v5895_v20 }
  0xc0   : > { %v5871_v4 = vpop.permute.xlu1 %1848 }
  0xc1   : > { %9089 = vst [vmem:[#allocation13_spill] sm:$0xff] %v5871_v4 }
  0xc4   : > { %v5736_v25 = vpop.f32.mrf.mxu0  ;;  %v5738_v26 = vpop.f32.mrf.mxu1 }
  0xc5   : > { %v690_v33 = vmul.f32 %v5736_v25, %v5736_v25  ;;  %v691_v34 = vmul.f32 %v5738_v26, %v5738_v26 }
  0xc6   : > { %3320 = vperm.xlu1 %5289, %v5172_v24   ;;  %v5897_v24 = vpop.permute.xlu2 %2391 }
  0xc7   : > { %9097 = vst [vmem:[#allocation21_spill] sm:$0xff] %v5897_v24 }
  0xc8   : > { %v5885_v10 = vpop.permute.xlu1 %2020 }
  0xc9   : > { %9092 = vst [vmem:[#allocation16_spill] sm:$0xff] %v5885_v10 }
  0xcc   : > { %v5745_v29 = vpop.f32.mrf.mxu0  ;;  %v5747_v30 = vpop.f32.mrf.mxu1 }
  0xcd   : > { %604 = vmatpush.msra.mxu2 %v5745_v29  ;;  %v692_v31 = vmul.f32 %v5745_v29, %v5745_v29  ;;  %645 = vmatpush.msra.mxu3 %v5747_v30  ;;  %v693_v32 = vmul.f32 %v5747_v30, %v5747_v30 }
  0xce   : > { %2735 = vperm.xlu1 %5289, %v5141_v28  }
  0xcf   : > { %605 = vmatpush.msra.mxu2 %v5736_v25  ;;  %702 = vmatpush.msrb.mxu0 %v692_v31  ;;  %v5901_v31 = vpop.permute.xlu0 %2212 }
  0xd0   : > { %646 = vmatpush.msra.mxu3 %v5738_v26  ;;  %743 = vmatpush.msrb.mxu1 %v693_v32  ;;  %v5893_v17 = vpop.permute.xlu1 %2396  ;;  %9099 = vst [vmem:[#allocation23_spill] sm:$0xff] %v5901_v31  ;;  %v5903_v32 = vpop.permute.xlu2 %2765 }
  0xd1   : > { %606 = vmatpush.msra.mxu2 %v5727_v21  ;;  %703 = vmatpush.msrb.mxu0 %v690_v33  ;;  %9095 = vst [vmem:[#allocation19_spill] sm:$0xff] %v5893_v17 }
  0xd2   : > { %647 = vmatpush.msra.mxu3 %v5729_v22  ;;  %744 = vmatpush.msrb.mxu1 %v691_v34  ;;  %9100 = vst [vmem:[#allocation24_spill] sm:$0xff] %v5903_v32 }
  0xd3   : > { %607 = vmatpush.msra.mxu2 %v5720_v18  ;;  %704 = vmatpush.msrb.mxu0 %v688_v35 }
  0xd4   : > { %648 = vmatpush.msra.mxu3 %v5722_v19  ;;  %745 = vmatpush.msrb.mxu1 %v689_v37 }
  0xd5   : > { %608 = vmatpush.msra.mxu2 %v5713_v15  ;;  %705 = vmatpush.msrb.mxu0 %v686_v39 }
  0xd6   : > { %3111 = vperm.xlu1 %5289, %v5159_v38   ;;  %649 = vmatpush.msra.mxu3 %v5715_v16 }
  0xd7   : > { %746 = vmatpush.msrb.mxu1 %v687_v40  ;;  %609 = vmatpush.msra.mxu2 %v5703_v11  ;;  %v5907_v34 = vpop.permute.xlu0 %2588 }
  0xd8   : > { %650 = vmatpush.msra.mxu3 %v5705_v12  ;;  %706 = vmatpush.msrb.mxu0 %v684_v41  ;;  %v5899_v28 = vpop.permute.xlu1 %2770  ;;  %9102 = vst [vmem:[#allocation26_spill] sm:$0xff] %v5907_v34  ;;  %v5909_v35 = vpop.permute.xlu2 %2005 }
  0xd9   : > { %747 = vmatpush.msrb.mxu1 %v685_v42  ;;  %610 = vmatpush.msra.mxu2 %v5690_v6  ;;  %9098 = vst [vmem:[#allocation22_spill] sm:$0xff] %v5899_v28 }
  0xda   : > { %651 = vmatpush.msra.mxu3 %v5692_v7  ;;  %707 = vmatpush.msrb.mxu0 %v682_v43 }
  0xdb   : > { %748 = vmatpush.msrb.mxu1 %v683_v44  ;;  %611 = vmatpush.msra.mxu2 %v5677_v1 }
  0xdc   : > { %652 = vmatpush.msra.mxu3 %v5679_v2  ;;  %708 = vmatpush.msrb.mxu0 %v680_v45 }
  0xdd   : > { %749 = vmatpush.msrb.mxu1 %v681_v47  ;;  %5061 = vmatmul.msk.f32.vlgmr.msra.gmra.mxu2 %vm9064_vm1, %v547_v46 }
  0xde   : > { %5069 = vmatmul.msk.f32.vlgmr.msra.gmra.mxu3 %vm9064_vm1, %v547_v46  ;;  %2919 = vperm.xlu1 %5289, %v5149_v48  }
  0xdf   : > { %709 = vmatpush.msrb.mxu0 %v678_v50  ;;  %750 = vmatpush.msrb.mxu1 %v679_v51  ;;  %v5913_v38 = vpop.permute.xlu0 %1853 }
  0xe0   : > { %5077 = vmatmul.msk.f32.vlgmr.msrb.gmra.mxu0 %vm9064_vm1, %v547_v46  ;;  %5085 = vmatmul.msk.f32.vlgmr.msrb.gmra.mxu1 %vm9064_vm1, %v547_v46  ;;  %v5905_v33 = vpop.permute.xlu1 %2197  ;;  %9104 = vst [vmem:[#allocation28_spill] sm:$0xff] %v5913_v38  ;;  %v5915_v39 = vpop.permute.xlu2 %2381 }
  0xe1   : > { %9101 = vst [vmem:[#allocation25_spill] sm:$0xff] %v5905_v33 }
  0xe2   : > { %9105 = vst [vmem:[#allocation29_spill] sm:$0xff] %v5915_v39 }
  0xe5   : > { %5062 = vmatmul.msk.f32.gmra.mxu2 %vm9064_vm1, %v548_v52 }
  0xe6   : > { %5070 = vmatmul.msk.f32.gmra.mxu3 %vm9064_vm1, %v548_v52  ;;  %3295 = vperm.xlu1 %5289, %v5167_v53  }
  0xe7   : > { %v5919_v41 = vpop.permute.xlu0 %2202 }
  0xe8   : > { %5078 = vmatmul.msk.f32.gmra.mxu0 %vm9064_vm1, %v548_v52  ;;  %5086 = vmatmul.msk.f32.gmra.mxu1 %vm9064_vm1, %v548_v52  ;;  %v5911_v37 = vpop.permute.xlu1 %2573  ;;  %9107 = vst [vmem:[#allocation31_spill] sm:$0xff] %v5919_v41  ;;  %v5921_v42 = vpop.permute.xlu2 %2755 }
  0xe9   : > { %9103 = vst [vmem:[#allocation27_spill] sm:$0xff] %v5911_v37 }
  0xea   : > { %9108 = vst [vmem:[#allocation32_spill] sm:$0xff] %v5921_v42 }
  0xed   : > { %5063 = vmatmul.msk.f32.gmra.mxu2 %vm9064_vm1, %v549_v55 }
  0xee   : > { %5071 = vmatmul.msk.f32.gmra.mxu3 %vm9064_vm1, %v549_v55  ;;  %3106 = vperm.xlu1 %5289, %v5158_v56  }
  0xef   : > { %v5925_v44 = vpop.permute.xlu0 %2578 }
  0xf0   : > { %5079 = vmatmul.msk.f32.gmra.mxu0 %vm9064_vm1, %v549_v55  ;;  %5087 = vmatmul.msk.f32.gmra.mxu1 %vm9064_vm1, %v549_v55  ;;  %v5917_v40 = vpop.permute.xlu1 %2949  ;;  %9109 = vst [vmem:[#allocation33_spill] sm:$0xff] %v5925_v44  ;;  %v5927_v45 = vpop.permute.xlu2 %3131 }
  0xf1   : > { %9106 = vst [vmem:[#allocation30_spill] sm:$0xff] %v5917_v40 }
  0xf2   : > { %9110 = vst [vmem:[#allocation34_spill] sm:$0xff] %v5927_v45 }
  0xf5   : > { %5064 = vmatmul.msk.f32.gmra.mxu2 %vm9064_vm1, %v550_v58 }
  0xf6   : > { %5072 = vmatmul.msk.f32.gmra.mxu3 %vm9064_vm1, %v550_v58 }
  0xf7   : > { %v5931_v51 = vpop.permute.xlu0 %2954 }
  0xf8   : > { %5080 = vmatmul.msk.f32.gmra.mxu0 %vm9064_vm1, %v550_v58  ;;  %5088 = vmatmul.msk.f32.gmra.mxu1 %vm9064_vm1, %v550_v58  ;;  %v5923_v43 = vpop.permute.xlu1 %1838  ;;  %9111 = vst [vmem:[#allocation35_spill] sm:$0xff] %v5931_v51 }
  0xfd   : > { %5065 = vmatmul.msk.f32.gmra.mxu2 %vm9064_vm1, %v551_v60 }
  0xfe   : > { %5073 = vmatmul.msk.f32.gmra.mxu3 %vm9064_vm1, %v551_v60 }
  0xff   : > { %v5937_v40 = vpop.permute.xlu0 %1843 }
 0x100   : > { %5081 = vmatmul.msk.f32.gmra.mxu0 %vm9064_vm1, %v551_v60  ;;  %5089 = vmatmul.msk.f32.gmra.mxu1 %vm9064_vm1, %v551_v60  ;;  %v5929_v48 = vpop.permute.xlu1 %2010  ;;  %v5933_v60 = vpop.permute.xlu2 %2187 }
 0x105   : > { %5066 = vmatmul.msk.f32.gmra.mxu2 %vm9064_vm1, %v552_v62 }
 0x106   : > { %5074 = vmatmul.msk.f32.gmra.mxu3 %vm9064_vm1, %v552_v62 }
 0x107   : > { %v5943_v57 = vpop.permute.xlu0 %2371 }
 0x108   : > { %5082 = vmatmul.msk.f32.gmra.mxu0 %vm9064_vm1, %v552_v62  ;;  %5090 = vmatmul.msk.f32.gmra.mxu1 %vm9064_vm1, %v552_v62  ;;  %v5935_v62 = vpop.permute.xlu1 %2386 }
 0x109   : > { %9112 = vst [vmem:[#allocation36_spill] sm:$0xff] %v5935_v62 }
 0x10d   : > { %5067 = vmatmul.msk.f32.gmra.mxu2 %vm9064_vm1, %v553_v0 }
 0x10e   : > { %5075 = vmatmul.msk.f32.gmra.mxu3 %vm9064_vm1, %v553_v0 }
 0x10f   : > { %v5949_v27 = vpop.permute.xlu0 %2745 }
 0x110   : > { %5083 = vmatmul.msk.f32.gmra.mxu0 %vm9064_vm1, %v553_v0  ;;  %5091 = vmatmul.msk.f32.gmra.mxu1 %vm9064_vm1, %v553_v0  ;;  %9117 = vst [vmem:[#allocation41_spill] sm:$0xff] %v5949_v27 }
 0x115   : > { %5068 = vmatmul.msk.f32.gmra.mxu2 %vm9064_vm1, %v554_v8 }
 0x116   : > { %5076 = vmatmul.msk.f32.gmra.mxu3 %vm9064_vm1, %v554_v8 }
 0x118   : > { %5084 = vmatmul.msk.f32.gmra.mxu0 %vm9064_vm1, %v554_v8  ;;  %5092 = vmatmul.msk.f32.gmra.mxu1 %vm9064_vm1, %v554_v8 }
 0x15d   : > { %v711_v46 = vpop.f32.mrf.mxu0  ;;  %v752_v47 = vpop.f32.mrf.mxu1 }
 0x15e   : > { %v808_v50 = vadd.f32 %v752_v47, %v711_v46 }
 0x160   : > { %v613_v52 = vpop.f32.mrf.mxu2  ;;  %809 = vadd.xlane.f32.xlu2 %v808_v50 }
 0x161   : > { %v654_v53 = vpop.f32.mrf.mxu3 }
 0x162   : > { %v776_v55 = vadd.f32 %v654_v53, %v613_v52  ;;  %v5939_v53 = vpop.permute.xlu2 %2563 }
 0x163   : > { %9113 = vst [vmem:[#allocation37_spill] sm:$0xff] %v5939_v53 }
 0x164   : > { %777 = vadd.xlane.f32.xlu0 %v776_v55  ;;  %v5941_v55 = vpop.permute.xlu1 %2760 }
 0x165   : > { %v714_v56 = vpop.f32.mrf.mxu0  ;;  %v755_v58 = vpop.f32.mrf.mxu1  ;;  %9114 = vst [vmem:[#allocation38_spill] sm:$0xff] %v5941_v55 }
 0x166   : > { %v811_v8 = vadd.f32 %v755_v58, %v714_v56 }
 0x168   : > { %v616_v0 = vpop.f32.mrf.mxu2 }
 0x169   : > { %v657_v45 = vpop.f32.mrf.mxu3 }
 0x16a   : > { %v779_v28 = vadd.f32 %v657_v45, %v616_v0 }
 0x16c   : > { %780 = vadd.xlane.f32.xlu1 %v779_v28  ;;  %812 = vadd.xlane.f32.xlu0 %v811_v8  ;;  %v5945_v8 = vpop.permute.xlu2 %2939  ;;  %v5947_v5 = vpop.permute.xlu1 %3136 }
 0x16d   : > { %v717_v46 = vpop.f32.mrf.mxu0  ;;  %v758_v47 = vpop.f32.mrf.mxu1  ;;  %9115 = vst [vmem:[#allocation39_spill] sm:$0xff] %v5945_v8 }
 0x16e   : > { %v814_v51 = vadd.f32 %v758_v47, %v717_v46  ;;  %9116 = vst [vmem:[#allocation40_spill] sm:$0xff] %v5947_v5 }
 0x170   : > { %v619_v50 = vpop.f32.mrf.mxu2 }
 0x171   : > { %v660_v52 = vpop.f32.mrf.mxu3 }
 0x172   : > { %v782_v34 = vadd.f32 %v660_v52, %v619_v50 }
 0x174   : > { %783 = vadd.xlane.f32.xlu2 %v782_v34  ;;  %815 = vadd.xlane.f32.xlu1 %v814_v51 }
 0x175   : > { %v720_v56 = vpop.f32.mrf.mxu0  ;;  %v761_v58 = vpop.f32.mrf.mxu1 }
 0x176   : > { %v817_v45 = vadd.f32 %v761_v58, %v720_v56  ;;  %v5951_v58 = vpop.permute.xlu2 %3315 }
 0x177   : > { %9118 = vst [vmem:[#allocation42_spill] sm:$0xff] %v5951_v58 }
 0x178   : > { %v622_v13 = vpop.f32.mrf.mxu2 }
 0x179   : > { %v663_v28 = vpop.f32.mrf.mxu3 }
 0x17a   : > { %v785_v0 = vadd.f32 %v663_v28, %v622_v13  ;;  %v5953_v28 = vpop.permute.xlu1 %2192 }
 0x17b   : > { %9119 = vst [vmem:[#allocation43_spill] sm:$0xff] %v5953_v28 }
 0x17c   : > { %818 = vadd.xlane.f32.xlu2 %v817_v45  ;;  %786 = vadd.xlane.f32.xlu0 %v785_v0  ;;  %v5955_v45 = vpop.permute.xlu0 %3121 }
 0x17d   : > { %v723_v46 = vpop.f32.mrf.mxu0  ;;  %v764_v47 = vpop.f32.mrf.mxu1  ;;  %9120 = vst [vmem:[#allocation44_spill] sm:$0xff] %v5955_v45 }
 0x17e   : > { %v820_v52 = vadd.f32 %v764_v47, %v723_v46 }
 0x180   : > { %v625_v50 = vpop.f32.mrf.mxu2 }
 0x181   : > { %v666_v34 = vpop.f32.mrf.mxu3 }
 0x182   : > { %v788_v51 = vadd.f32 %v666_v34, %v625_v50  ;;  %v5957_v50 = vpop.permute.xlu2 %2376  ;;  %v5959_v34 = vpop.permute.xlu1 %2568 }
 0x183   : > { %9121 = vst [vmem:[#allocation45_spill] sm:$0xff] %v5957_v50 }
 0x184   : > { %789 = vadd.xlane.f32.xlu2 %v788_v51  ;;  %821 = vadd.xlane.f32.xlu0 %v820_v52  ;;  %9122 = vst [vmem:[#allocation46_spill] sm:$0xff] %v5959_v34 }
 0x185   : > { %v726_v32 = vpop.f32.mrf.mxu0  ;;  %v767_v56 = vpop.f32.mrf.mxu1 }
 0x186   : > { %v823_v13 = vadd.f32 %v767_v56, %v726_v32  ;;  %v5961_v56 = vpop.permute.xlu0 %2553 }
 0x188   : > { %v628_v5 = vpop.f32.mrf.mxu2  ;;  %824 = vadd.xlane.f32.xlu1 %v823_v13 }
 0x189   : > { %v669_v0 = vpop.f32.mrf.mxu3 }
 0x18a   : > { %v791_v63 = vadd.f32 %v669_v0, %v628_v5  ;;  %v5963_v0 = vpop.permute.xlu2 %2750 }
 0x18b   : > { %9123 = vst [vmem:[#allocation47_spill] sm:$0xff] %v5963_v0 }
 0x18c   : > { %792 = vadd.xlane.f32.xlu2 %v791_v63 }
 0x18d   : > { %v729_v9 = vpop.f32.mrf.mxu0  ;;  %v770_v46 = vpop.f32.mrf.mxu1 }
 0x18e   : > { %v826_v47 = vadd.f32 %v770_v46, %v729_v9  ;;  %v5965_v9 = vpop.permute.xlu1 %2944  ;;  %v5967_v46 = vpop.permute.xlu0 %2929 }
 0x18f   : > { %9124 = vst [vmem:[#allocation48_spill] sm:$0xff] %v5965_v9 }
 0x190   : > { %v631_v52 = vpop.f32.mrf.mxu2  ;;  %827 = vadd.xlane.f32.xlu1 %v826_v47  ;;  %9125 = vst [vmem:[#allocation49_spill] sm:$0xff] %v5967_v46 }
 0x191   : > { %v672_v51 = vpop.f32.mrf.mxu3 }
 0x192   : > { %v794_v32 = vadd.f32 %v672_v51, %v631_v52  ;;  %v5969_v47 = vpop.permute.xlu2 %3126 }
 0x193   : > { %9126 = vst [vmem:[#allocation50_spill] sm:$0xff] %v5969_v47 }
 0x194   : > { %795 = vadd.xlane.f32.xlu0 %v794_v32 }
 0x195   : > { %v732_v13 = vpop.f32.mrf.mxu0  ;;  %v773_v58 = vpop.f32.mrf.mxu1 }
 0x196   : > { %v829_v36 = vadd.f32 %v773_v58, %v732_v13  ;;  %v5971_v52 = vpop.permute.xlu1 %3320  ;;  %v5973_v51 = vpop.permute.xlu0 %3305 }
 0x197   : > { %9127 = vst [vmem:[#allocation51_spill] sm:$0xff] %v5971_v52 }
 0x198   : > { %v634_v23 = vpop.f32.mrf.mxu2  ;;  %830 = vadd.xlane.f32.xlu1 %v829_v36  ;;  %9128 = vst [vmem:[#allocation52_spill] sm:$0xff] %v5973_v51 }
 0x199   : > { %v675_v63 = vpop.f32.mrf.mxu3 }
 0x19a   : > { %v797_v5 = vadd.f32 %v675_v63, %v634_v23  ;;  %v5975_v32 = vpop.permute.xlu2 %2558 }
 0x19b   : > { %9129 = vst [vmem:[#allocation53_spill] sm:$0xff] %v5975_v32 }
 0x19c   : > { %798 = vadd.xlane.f32.xlu0 %v797_v5 }
 0x19e   : > { %v5977_v58 = vpop.permute.xlu1 %2735  ;;  %v5979_v36 = vpop.permute.xlu0 %2740 }
 0x19f   : > { %9130 = vst [vmem:[#allocation54_spill] sm:$0xff] %v5979_v36 }
 0x1a2   : > { %v5981_v23 = vpop.permute.xlu2 %2934 }
 0x1a3   : > { %9131 = vst [vmem:[#allocation55_spill] sm:$0xff] %v5981_v23 }
 0x1a6   : > { %v5983_v13 = vpop.permute.xlu1 %3111  ;;  %v5985_v63 = vpop.permute.xlu0 %3116 }
 0x1a7   : > { %9132 = vst [vmem:[#allocation56_spill] sm:$0xff] %v5983_v13 }
 0x1a8   : > { %9133 = vst [vmem:[#allocation57_spill] sm:$0xff] %v5985_v63 }
 0x1aa   : > { %v5987_v5 = vpop.permute.xlu2 %3310 }
 0x1ab   : > { %9134 = vst [vmem:[#allocation58_spill] sm:$0xff] %v5987_v5 }
 0x1ae   : > { %v5989_v61 = vpop.permute.xlu1 %2919  ;;  %v5991_v47 = vpop.permute.xlu0 %2924 }
 0x1af   : > { %9135 = vst [vmem:[#allocation59_spill] sm:$0xff] %v5989_v61 }
 0x1b0   : > { %9136 = vst [vmem:[#allocation60_spill] sm:$0xff] %v5991_v47 }
 0x1b2   : > { %v5993_v52 = vpop.permute.xlu2 %3101 }
 0x1b3   : > { %9137 = vst [vmem:[#allocation61_spill] sm:$0xff] %v5993_v52 }
 0x1b6   : > { %v5995_v51 = vpop.permute.xlu1 %3295  ;;  %v5997_v9 = vpop.permute.xlu0 %3300 }
 0x1b7   : > { %9138 = vst [vmem:[#allocation62_spill] sm:$0xff] %v5995_v51 }
 0x1b8   : > { %9139 = vst [vmem:[#allocation63_spill] sm:$0xff] %v5997_v9 }
 0x1be   : > { %v5999_v44 = vpop.permute.xlu1 %3106 }
 0x1bf   : > { %9140 = vst [vmem:[#allocation64_spill] sm:$0xff] %v5999_v44 }
 0x1d3   : > { %v810_v55 = vpop.xlane.xlu2 %809 }
 0x1d4   : > { %v832_v20 = vmul.f32 0.00048828125, %v810_v55 }
 0x1d7   : > { %v778_v17 = vpop.xlane.xlu0 %777 }
 0x1d8   : > { %v800_v31 = vmul.f32 0.00048828125, %v778_v17 }
 0x1da   : > { %v840_v54 = vmul.f32 %v800_v31, %v800_v31 }
 0x1dc   : > { %v848_v45 = vsub.f32 %v832_v20, %v840_v54 }
 0x1de   : > { %v856_v8 = vmax.f32 %v848_v45, 0.0 }
 0x1df   : > { %v781_v5 = vpop.xlane.xlu1 %780  ;;  %v813_v42 = vpop.xlane.xlu0 %812 }
 0x1e0   : > { %v864_v61 = vadd.f32 1e-05, %v856_v8  ;;  %v6001_v37 = vmul.f32 0.00048828125, %v781_v5  ;;  %v833_v13 = vmul.f32 0.00048828125, %v813_v42 }
 0x1e2   : > { %5292 = vrsqrt.f32 %v864_v61  ;;  %v841_v52 = vmul.f32 %v6001_v37, %v6001_v37  ;;  %vm878_vm3 = vweird.f32 %v864_v61 }
 0x1e4   : > { %v849_v9 = vsub.f32 %v833_v13, %v841_v52 }
 0x1e6   : > { %v857_v51 = vmax.f32 %v849_v9, 0.0 }
 0x1e7   : > { %v784_v24 = vpop.xlane.xlu2 %783  ;;  %v816_v46 = vpop.xlane.xlu1 %815 }
 0x1e8   : > { %v5293_v59 = vpop.eup %5292  ;;  %v865_v17 = vadd.f32 1e-05, %v857_v51  ;;  %v6005_v55 = vmul.f32 0.00048828125, %v784_v24  ;;  %v834_v54 = vmul.f32 0.00048828125, %v816_v46  ;;  %v555_v46 = vld [vmem:[%s8980_s2] sm:$0xff] }
 0x1e9   : > { %v873_v20 = vmul.f32 %v5293_v59, %v864_v61  ;;  %vm879_vm2 = vweird.f32 %v5293_v59 }
 0x1ea   : > { %5294 = vrsqrt.f32 %v865_v17  ;;  %v842_v8 = vmul.f32 %v6005_v55, %v6005_v55  ;;  %vm880_vm4 = vmor %vm878_vm3, %vm879_vm2  ;;  %vm888_vm5 = vweird.f32 %v865_v17 }
 0x1eb   : > { %v874_v45 = vmul.f32 %v5293_v59, %v873_v20 }
 0x1ec   : > { %v850_v42 = vsub.f32 %v834_v54, %v842_v8 }
 0x1ed   : > { %v875_v5 = vmul.f32 0.5, %v874_v45 }
 0x1ee   : > { %v858_v3 = vmax.f32 %v850_v42, 0.0 }
 0x1ef   : > { %v819_v49 = vpop.xlane.xlu2 %818  ;;  %v787_v63 = vpop.xlane.xlu0 %786  ;;  %v876_v52 = vsub.f32 1.5, %v875_v5 }
 0x1f0   : > { %v5295_v9 = vpop.eup %5294  ;;  %v866_v13 = vadd.f32 1e-05, %v858_v3  ;;  %v835_v23 = vmul.f32 0.00048828125, %v819_v49  ;;  %v6009_v51 = vmul.f32 0.00048828125, %v787_v63  ;;  %v563_v49 = vld [vmem:[%s8981_s3] sm:$0xff] }
 0x1f1   : > { %v883_v24 = vmul.f32 %v5295_v9, %v865_v17  ;;  %v877_v0 = vmul.f32 %v5293_v59, %v876_v52  ;;  %vm889_vm6 = vweird.f32 %v5295_v9 }
 0x1f2   : > { %5296 = vrsqrt.f32 %v866_v13  ;;  %v843_v54 = vmul.f32 %v6009_v51, %v6009_v51  ;;  %vm890_vm7 = vmor %vm888_vm5, %vm889_vm6  ;;  %vm898_vm8 = vweird.f32 %v866_v13 }
 0x1f3   : > { %v884_v20 = vmul.f32 %v5295_v9, %v883_v24  ;;  %v881_v8 = vsel %vm880_vm4, %v5293_v59, %v877_v0  ;;  %v556_v24 = vld [vmem:[%s8980_s2 + $0x8] sm:$0xff] }
 0x1f4   : > { %v851_v45 = vsub.f32 %v835_v23, %v843_v54  ;;  %v952_v42 = vmul.f32 %v881_v8, %v555_v46 }
 0x1f5   : > { %v885_v3 = vmul.f32 0.5, %v884_v20 }
 0x1f6   : > { %v859_v63 = vmax.f32 %v851_v45, 0.0  ;;  %978 = vperm.xlu0 %5290, %v952_v42   ;;  %v960_v5 = vmul.f32 %v952_v42, %v800_v31 }
 0x1f7   : > { %v790_v61 = vpop.xlane.xlu2 %789  ;;  %v822_v52 = vpop.xlane.xlu0 %821  ;;  %v886_v34 = vsub.f32 1.5, %v885_v3  ;;  %v564_v3 = vld [vmem:[%s8981_s3 + $0x8] sm:$0xff] }
 0x1f8   : > { %v5297_v44 = vpop.eup %5296  ;;  %v867_v47 = vadd.f32 1e-05, %v859_v63  ;;  %v6019_v62 = vmul.f32 0.00048828125, %v790_v61  ;;  %v968_v59 = vsub.f32 %v563_v49, %v960_v5  ;;  %v836_v0 = vmul.f32 0.00048828125, %v822_v52 }
 0x1f9   : > { %v893_v23 = vmul.f32 %v5297_v44, %v866_v13  ;;  %v887_v17 = vmul.f32 %v5295_v9, %v886_v34  ;;  %vm899_vm9 = vweird.f32 %v5297_v44 }
 0x1fa   : > { %5298 = vrsqrt.f32 %v867_v47  ;;  %v844_v31 = vmul.f32 %v6019_v62, %v6019_v62  ;;  %1034 = vperm.xlu1 %5289, %v968_v59   ;;  %vm900_vm10 = vmor %vm898_vm8, %vm899_vm9  ;;  %vm908_vm11 = vweird.f32 %v867_v47 }
 0x1fb   : > { %v894_v46 = vmul.f32 %v5297_v44, %v893_v23  ;;  %v891_v54 = vsel %vm890_vm7, %v5295_v9, %v887_v17  ;;  %v825_v20 = vpop.xlane.xlu1 %824 }
 0x1fc   : > { %v852_v8 = vsub.f32 %v836_v0, %v844_v31  ;;  %v953_v45 = vmul.f32 %v891_v54, %v556_v24  ;;  %v837_v9 = vmul.f32 0.00048828125, %v825_v20  ;;  %v557_v24 = vld [vmem:[%s8980_s2 + $0x10] sm:$0xff] }
 0x1fd   : > { %v895_v42 = vmul.f32 0.5, %v894_v46  ;;  %v565_v20 = vld [vmem:[%s8981_s3 + $0x10] sm:$0xff] }
 0x1fe   : > { %v860_v49 = vmax.f32 %v852_v8, 0.0  ;;  %983 = vperm.xlu2 %5291, %v953_v45   ;;  %v961_v34 = vmul.f32 %v953_v45, %v6001_v37 }
 0x1ff   : > { %v793_v63 = vpop.xlane.xlu2 %792  ;;  %v896_v5 = vsub.f32 1.5, %v895_v42 }
 0x200   : > { %v5299_v61 = vpop.eup %5298  ;;  %v868_v52 = vadd.f32 1e-05, %v860_v49  ;;  %v6030_v59 = vmul.f32 0.00048828125, %v793_v63  ;;  %v969_v0 = vsub.f32 %v564_v3, %v961_v34 }
 0x201   : > { %v903_v23 = vmul.f32 %v5299_v61, %v867_v47  ;;  %v897_v13 = vmul.f32 %v5297_v44, %v896_v5  ;;  %vm909_vm12 = vweird.f32 %v5299_v61  ;;  %v558_v47 = vld [vmem:[%s8980_s2 + $0x18] sm:$0xff] }
 0x202   : > { %5300 = vrsqrt.f32 %v868_v52  ;;  %v845_v17 = vmul.f32 %v6030_v59, %v6030_v59  ;;  %1039 = vperm.xlu0 %5290, %v969_v0   ;;  %vm910_vm13 = vmor %vm908_vm11, %vm909_vm12  ;;  %vm918_vm14 = vweird.f32 %v868_v52 }
 0x203   : > { %v904_v37 = vmul.f32 %v5299_v61, %v903_v23  ;;  %v901_v31 = vsel %vm900_vm10, %v5297_v44, %v897_v13  ;;  %v828_v46 = vpop.xlane.xlu1 %827 }
 0x204   : > { %v853_v54 = vsub.f32 %v837_v9, %v845_v17  ;;  %v954_v8 = vmul.f32 %v901_v31, %v557_v24  ;;  %v838_v9 = vmul.f32 0.00048828125, %v828_v46  ;;  %v566_v46 = vld [vmem:[%s8981_s3 + $0x18] sm:$0xff] }
 0x205   : > { %v905_v45 = vmul.f32 0.5, %v904_v37 }
 0x206   : > { %v861_v42 = vmax.f32 %v853_v54, 0.0  ;;  %988 = vperm.xlu1 %5289, %v954_v8   ;;  %v962_v3 = vmul.f32 %v954_v8, %v6005_v55 }
 0x207   : > { %v906_v49 = vsub.f32 1.5, %v905_v45  ;;  %v796_v34 = vpop.xlane.xlu0 %795 }
 0x208   : > { %v5301_v63 = vpop.eup %5300  ;;  %v869_v5 = vadd.f32 1e-05, %v861_v42  ;;  %v6041_v44 = vmul.f32 0.00048828125, %v796_v34  ;;  %v970_v0 = vsub.f32 %v565_v20, %v962_v3 }
 0x209   : > { %v907_v23 = vmul.f32 %v5299_v61, %v906_v49  ;;  %v913_v24 = vmul.f32 %v5301_v63, %v868_v52  ;;  %vm919_vm15 = vweird.f32 %v5301_v63 }
 0x20a   : > { %5302 = vrsqrt.f32 %v869_v5  ;;  %v846_v13 = vmul.f32 %v6041_v44, %v6041_v44  ;;  %1044 = vperm.xlu2 %5291, %v970_v0   ;;  %vm920_vm2 = vmor %vm918_vm14, %vm919_vm15  ;;  %vm928_vm3 = vweird.f32 %v869_v5 }
 0x20b   : > { %v911_v55 = vsel %vm910_vm13, %v5299_v61, %v907_v23  ;;  %v914_v17 = vmul.f32 %v5301_v63, %v913_v24  ;;  %v831_v8 = vpop.xlane.xlu1 %830 }
 0x20c   : > { %v955_v37 = vmul.f32 %v911_v55, %v558_v47  ;;  %v854_v31 = vsub.f32 %v838_v9, %v846_v13  ;;  %v839_v0 = vmul.f32 0.00048828125, %v831_v8 }
 0x20d   : > { %v915_v54 = vmul.f32 0.5, %v914_v17 }
 0x20e   : > { %v963_v45 = vmul.f32 %v955_v37, %v6009_v51  ;;  %v862_v20 = vmax.f32 %v854_v31, 0.0  ;;  %993 = vperm.xlu0 %5290, %v955_v37   ;;  %v559_v51 = vld [vmem:[%s8980_s2 + $0x20] sm:$0xff] }
 0x20f   : > { %v799_v42 = vpop.xlane.xlu0 %798  ;;  %v916_v3 = vsub.f32 1.5, %v915_v54 }
 0x210   : > { %v5303_v49 = vpop.eup %5302  ;;  %v870_v34 = vadd.f32 1e-05, %v862_v20  ;;  %v6052_v61 = vmul.f32 0.00048828125, %v799_v42  ;;  %v971_v9 = vsub.f32 %v566_v46, %v963_v45  ;;  %v560_v20 = vld [vmem:[%s8980_s2 + $0x28] sm:$0xff] }
 0x211   : > { %v923_v47 = vmul.f32 %v5303_v49, %v869_v5  ;;  %v917_v23 = vmul.f32 %v5301_v63, %v916_v3  ;;  %vm929_vm4 = vweird.f32 %v5303_v49  ;;  %v567_v5 = vld [vmem:[%s8981_s3 + $0x20] sm:$0xff] }
 0x212   : > { %5304 = vrsqrt.f32 %v870_v34  ;;  %v847_v52 = vmul.f32 %v6052_v61, %v6052_v61  ;;  %1049 = vperm.xlu1 %5289, %v971_v9   ;;  %vm930_vm5 = vmor %vm928_vm3, %vm929_vm4  ;;  %vm938_vm6 = vweird.f32 %v870_v34 }
 0x213   : > { %v924_v24 = vmul.f32 %v5303_v49, %v923_v47  ;;  %v921_v13 = vsel %vm920_vm2, %v5301_v63, %v917_v23 }
 0x214   : > { %v855_v55 = vsub.f32 %v839_v0, %v847_v52  ;;  %v956_v31 = vmul.f32 %v921_v13, %v559_v51  ;;  %v561_v13 = vld [vmem:[%s8980_s2 + $0x30] sm:$0xff] }
 0x215   : > { %v925_v17 = vmul.f32 0.5, %v924_v24  ;;  %v568_v24 = vld [vmem:[%s8981_s3 + $0x28] sm:$0xff] }
 0x216   : > { %v863_v37 = vmax.f32 %v855_v55, 0.0  ;;  %v964_v63 = vmul.f32 %v956_v31, %v6019_v62 }
 0x217   : > { %v926_v54 = vsub.f32 1.5, %v925_v17 }
 0x218   : > { %v5305_v8 = vpop.eup %5304  ;;  %v871_v46 = vadd.f32 1e-05, %v863_v37  ;;  %v972_v23 = vsub.f32 %v567_v5, %v964_v63  ;;  %v562_v63 = vld [vmem:[%s8980_s2 + $0x38] sm:$0xff] }
 0x219   : > { %v933_v45 = vmul.f32 %v5305_v8, %v870_v34  ;;  %v927_v42 = vmul.f32 %v5303_v49, %v926_v54  ;;  %vm939_vm7 = vweird.f32 %v5305_v8 }
 0x21a   : > { %5306 = vrsqrt.f32 %v871_v46  ;;  %998 = vperm.xlu1 %5289, %v956_v31   ;;  %vm940_vm8 = vmor %vm938_vm6, %vm939_vm7  ;;  %vm948_vm9 = vweird.f32 %v871_v46 }
 0x21b   : > { %v934_v3 = vmul.f32 %v5305_v8, %v933_v45  ;;  %v931_v0 = vsel %vm930_vm5, %v5303_v49, %v927_v42 }
 0x21c   : > { %v957_v9 = vmul.f32 %v931_v0, %v560_v20 }
 0x21d   : > { %v935_v47 = vmul.f32 0.5, %v934_v3 }
 0x21e   : > { %1003 = vperm.xlu2 %5291, %v957_v9   ;;  %v965_v52 = vmul.f32 %v957_v9, %v6030_v59  ;;  %v569_v59 = vld [vmem:[%s8981_s3 + $0x30] sm:$0xff] }
 0x21f   : > { %v936_v51 = vsub.f32 1.5, %v935_v47 }
 0x220   : > { %v5307_v62 = vpop.eup %5306  ;;  %v973_v34 = vsub.f32 %v568_v24, %v965_v52 }
 0x221   : > { %v943_v49 = vmul.f32 %v5307_v62, %v871_v46  ;;  %v937_v55 = vmul.f32 %v5305_v8, %v936_v51  ;;  %vm949_vm10 = vweird.f32 %v5307_v62  ;;  %v570_v46 = vld [vmem:[%s8981_s3 + $0x38] sm:$0xff] }
 0x222   : > { %1054 = vperm.xlu1 %5289, %v972_v23   ;;  %vm950_vm11 = vmor %vm948_vm9, %vm949_vm10 }
 0x223   : > { %v944_v17 = vmul.f32 %v5307_v62, %v943_v49  ;;  %v941_v37 = vsel %vm940_vm8, %v5305_v8, %v937_v55 }
 0x224   : > { %v958_v31 = vmul.f32 %v941_v37, %v561_v13 }
 0x225   : > { %v945_v54 = vmul.f32 0.5, %v944_v17 }
 0x226   : > { %1059 = vperm.xlu2 %5291, %v973_v34   ;;  %v966_v45 = vmul.f32 %v958_v31, %v6041_v44 }
 0x227   : > { %v946_v20 = vsub.f32 1.5, %v945_v54 }
 0x228   : > { %v974_v42 = vsub.f32 %v569_v59, %v966_v45 }
 0x229   : > { %v947_v3 = vmul.f32 %v5307_v62, %v946_v20 }
 0x22a   : > { %1008 = vperm.xlu1 %5289, %v958_v31   ;;  %1064 = vperm.xlu0 %5290, %v974_v42  }
 0x22b   : > { %v951_v8 = vsel %vm950_vm11, %v5307_v62, %v947_v3 }
 0x22c   : > { %v959_v0 = vmul.f32 %v951_v8, %v562_v63 }
 0x22e   : > { %1013 = vperm.xlu2 %5291, %v959_v0   ;;  %v967_v5 = vmul.f32 %v959_v0, %v6052_v61 }
 0x230   : > { %v975_v44 = vsub.f32 %v570_v46, %v967_v5 }
 0x236   : > { %1069 = vperm.xlu2 %5291, %v975_v44  }
 0x258   : > { %v984_v49 = vpop.permute.xlu2 %983 }
 0x259   : > { %v1019_v17 = vmul.f32 %v984_v49, %v5692_v7 }
 0x268   : > { %v979_v9 = vpop.permute.xlu0 %978 }
 0x269   : > { %v1016_v47 = vmul.f32 %v979_v9, %v5677_v1  ;;  %v1017_v23 = vmul.f32 %v979_v9, %v5679_v2  ;;  %v1018_v2 = vmul.f32 %v984_v49, %v5690_v6 }
 0x26c   : > { %v1035_v52 = vpop.permute.xlu1 %1034 }
 0x26d   : > { %v6086_v24 = vadd.f32 %v1035_v52, %v1016_v47  ;;  %v6088_v51 = vadd.f32 %v1035_v52, %v1017_v23 }
 0x26f   : > { %v6091_v62 = vmul.f32 0.70710677, %v6086_v24  ;;  %v6094_v61 = vmul.f32 0.70710677, %v6088_v51 }
 0x271   : > { %v1120_v13 = vmul.f32 %v6091_v62, %v6091_v62  ;;  %v1160_v1 = vmul.f32 %v6094_v61, %v6094_v61 }
 0x273   : > { %v1121_v55 = vmin.f32 %v1120_v13, 16.0  ;;  %v6101_v34 = vmin.f32 %v1160_v1, 16.0 }
 0x274   : > { %v1040_v37 = vpop.permute.xlu0 %1039 }
 0x275   : > { %v1122_v31 = vmul.f32 2.1237322e-06, %v1121_v55  ;;  %v1133_v54 = vmul.f32 3.8918573e-05, %v1121_v55  ;;  %v1162_v59 = vmul.f32 2.1237322e-06, %v6101_v34  ;;  %v6105_v45 = vadd.f32 %v1040_v37, %v1018_v2 }
 0x276   : > { %v1173_v20 = vmul.f32 3.8918573e-05, %v6101_v34  ;;  %v6108_v42 = vadd.f32 %v1040_v37, %v1019_v17 }
 0x277   : > { %v1123_v63 = vadd.f32 0.00028619796, %v1122_v31  ;;  %v1134_v3 = vadd.f32 0.001143296, %v1133_v54  ;;  %v1163_v8 = vadd.f32 0.00028619796, %v1162_v59 }
 0x278   : > { %v1174_v6 = vadd.f32 0.001143296, %v1173_v20  ;;  %v6111_v0 = vmul.f32 0.70710677, %v6105_v45  ;;  %v6115_v44 = vmul.f32 0.70710677, %v6108_v42 }
 0x279   : > { %v1124_v5 = vmul.f32 %v1123_v63, %v1121_v55  ;;  %v1135_v7 = vmul.f32 %v1134_v3, %v1121_v55  ;;  %v1164_v46 = vmul.f32 %v1163_v8, %v6101_v34 }
 0x27a   : > { %v1175_v9 = vmul.f32 %v1174_v6, %v6101_v34  ;;  %v1200_v47 = vmul.f32 %v6111_v0, %v6111_v0  ;;  %v1240_v13 = vmul.f32 %v6115_v44, %v6115_v44 }
 0x27b   : > { %v1125_v23 = vadd.f32 0.0036580483, %v1124_v5  ;;  %v1136_v52 = vadd.f32 0.014752088, %v1135_v7  ;;  %v1165_v49 = vadd.f32 0.0036580483, %v1164_v46 }
 0x27c   : > { %v1176_v1 = vadd.f32 0.014752088, %v1175_v9  ;;  %v6122_v2 = vmin.f32 %v1200_v47, 16.0  ;;  %v6127_v20 = vmin.f32 %v1240_v13, 16.0 }
 0x27d   : > { %v1126_v17 = vmul.f32 %v1125_v23, %v1121_v55  ;;  %v1137_v37 = vmul.f32 %v1136_v52, %v1121_v55  ;;  %v1166_v31 = vmul.f32 %v1165_v49, %v6101_v34 }
 0x27e   : > { %v1177_v54 = vmul.f32 %v1176_v1, %v6101_v34  ;;  %v1213_v59 = vmul.f32 3.8918573e-05, %v6122_v2  ;;  %v1253_v23 = vmul.f32 3.8918573e-05, %v6127_v20  ;;  %v1202_v49 = vmul.f32 2.1237322e-06, %v6122_v2 }
 0x27f   : > { %v1127_v63 = vadd.f32 0.05243302, %v1126_v17  ;;  %v1138_v3 = vadd.f32 0.112945676, %v1137_v37  ;;  %v1167_v8 = vadd.f32 0.05243302, %v1166_v31 }
 0x280   : > { %v1178_v6 = vadd.f32 0.112945676, %v1177_v54  ;;  %v1214_v5 = vadd.f32 0.001143296, %v1213_v59  ;;  %v1254_v59 = vadd.f32 0.001143296, %v1253_v23 }
 0x281   : > { %v1128_v7 = vmul.f32 %v1127_v63, %v1121_v55  ;;  %v1139_v46 = vmul.f32 %v1138_v3, %v1121_v55  ;;  %v1168_v1 = vmul.f32 %v1167_v8, %v6101_v34  ;;  %v989_v63 = vpop.permute.xlu1 %988 }
 0x282   : > { %v1179_v9 = vmul.f32 %v1178_v6, %v6101_v34  ;;  %v1215_v47 = vmul.f32 %v1214_v5, %v6122_v2  ;;  %v1203_v6 = vadd.f32 0.00028619796, %v1202_v49  ;;  %v1242_v5 = vmul.f32 2.1237322e-06, %v6127_v20 }
 0x283   : > { %v1140_v52 = vadd.f32 0.4994258, %v1139_v46  ;;  %v1129_v17 = vadd.f32 0.18741608, %v1128_v7  ;;  %v1169_v10 = vadd.f32 0.18741608, %v1168_v1  ;;  %v1255_v27 = vmul.f32 %v1254_v59, %v6127_v20 }
 0x284   : > { %v1180_v13 = vadd.f32 0.4994258, %v1179_v9  ;;  %v1216_v41 = vadd.f32 0.014752088, %v1215_v47  ;;  %v1020_v7 = vmul.f32 %v989_v63, %v5703_v11  ;;  %v1204_v9 = vmul.f32 %v1203_v6, %v6122_v2  ;;  %v1045_v47 = vpop.permute.xlu2 %1044 }
 0x285   : > { %v1141_v37 = vmul.f32 %v1140_v52, %v1121_v55  ;;  %v1130_v8 = vmul.f32 %v1129_v17, %v1121_v55  ;;  %v1170_v23 = vmul.f32 %v1169_v10, %v6101_v34  ;;  %v1243_v49 = vadd.f32 0.00028619796, %v1242_v5 }
 0x286   : > { %v1181_v31 = vmul.f32 %v1180_v13, %v6101_v34  ;;  %v1217_v54 = vmul.f32 %v1216_v41, %v6122_v2  ;;  %v1021_v41 = vmul.f32 %v989_v63, %v5705_v12  ;;  %v1256_v1 = vadd.f32 0.014752088, %v1255_v27 }
 0x287   : > { %v1142_v3 = vadd.f32 1.0, %v1141_v37  ;;  %v1131_v13 = vadd.f32 1.1283791, %v1130_v8  ;;  %v6143_v37 = vadd.f32 %v1045_v47, %v1020_v7  ;;  %v1205_v11 = vadd.f32 0.0036580483, %v1204_v9 }
 0x288   : > { %v1182_v46 = vadd.f32 1.0, %v1181_v31  ;;  %v1218_v38 = vadd.f32 0.112945676, %v1217_v54  ;;  %v1257_v55 = vmul.f32 %v1256_v1, %v6127_v20  ;;  %v6146_v54 = vadd.f32 %v1045_v47, %v1021_v41 }
 0x289   : > { %5308 = vrcp.f32 %v1142_v3  ;;  %v1171_v12 = vadd.f32 1.1283791, %v1170_v23  ;;  %v1244_v10 = vmul.f32 %v1243_v49, %v6127_v20  ;;  %v6152_v5 = vmul.f32 0.70710677, %v6143_v37 }
 0x28a   : > { %5310 = vrcp.f32 %v1182_v46  ;;  %v1219_v52 = vmul.f32 %v1218_v38, %v6122_v2  ;;  %v1132_v38 = vmul.f32 %v1131_v13, %v6091_v62  ;;  %v1258_v34 = vadd.f32 0.112945676, %v1257_v55 }
 0x28b   : > { %vm1148_vm12 = vweird.f32 %v1142_v3  ;;  %v1152_v7 = vand.u32 2147483647, %v1142_v3  ;;  %v1154_v41 = vand.u32 2147483648, %v1142_v3  ;;  %v1194_v49 = vand.u32 2147483648, %v1182_v46 }
 0x28c   : > { %v1220_v31 = vadd.f32 0.4994258, %v1219_v52  ;;  %v1192_v52 = vand.u32 2147483647, %v1182_v46  ;;  %v1259_v23 = vmul.f32 %v1258_v34, %v6127_v20  ;;  %v6158_v62 = vmul.f32 0.70710677, %v6146_v54 }
 0x28d   : > { %v1280_v55 = vmul.f32 %v6152_v5, %v6152_v5  ;;  %vm1188_vm15 = vweird.f32 %v1182_v46  ;;  %vm1153_vm3 = vcmp.eq.f32.partialorder %v1152_v7, 8.507059e+37 }
 0x28e   : > { %v1221_v63 = vmul.f32 %v1220_v31, %v6122_v2  ;;  %v1260_v31 = vadd.f32 0.4994258, %v1259_v23  ;;  %vm1193_vm5 = vcmp.eq.f32.partialorder %v1192_v52, 8.507059e+37  ;;  %v1320_v23 = vmul.f32 %v6158_v62, %v6158_v62 }
 0x28f   : > { %v5309_v17 = vpop.eup %5308 }
 0x290   : > { %v5311_v59 = vpop.eup %5310  ;;  %v1144_v6 = vmul.f32 %v5309_v17, %v1142_v3  ;;  %v6154_v9 = vadd.f32 1.0, %v1221_v63  ;;  %vm1149_vm13 = vweird.f32 %v5309_v17  ;;  %v1172_v63 = vmul.f32 %v1171_v12, %v6094_v61 }
 0x291   : > { %v1184_v27 = vmul.f32 %v5311_v59, %v1182_v46  ;;  %vm1189_vm14 = vweird.f32 %v5311_v59  ;;  %vm1150_vm2 = vmor %vm1148_vm12, %vm1149_vm13  ;;  %v6170_v46 = vmin.f32 %v1280_v55, 16.0 }
 0x292   : > { %v1145_v8 = vsub.f32 1.0, %v1144_v6  ;;  %5312 = vrcp.f32 %v6154_v9  ;;  %vm1190_vm4 = vmor %vm1188_vm15, %vm1189_vm14  ;;  %vm1228_vm7 = vweird.f32 %v6154_v9 }
 0x293   : > { %v1185_v47 = vsub.f32 1.0, %v1184_v27  ;;  %v1155_v27 = vor.u32 1.1754944e-38, %v1154_v41  ;;  %v1206_v41 = vmul.f32 %v1205_v11, %v6122_v2 }
 0x294   : > { %v1146_v1 = vmul.f32 %v5309_v17, %v1145_v8  ;;  %v1261_v8 = vmul.f32 %v1260_v31, %v6127_v20  ;;  %v6175_v31 = vmin.f32 %v1320_v23, 16.0 }
 0x295   : > { %v1186_v13 = vmul.f32 %v5311_v59, %v1185_v47  ;;  %v1195_v47 = vor.u32 1.1754944e-38, %v1194_v49  ;;  %v1245_v49 = vadd.f32 0.0036580483, %v1244_v10 }
 0x296   : > { %v1147_v6 = vadd.f32 %v5309_v17, %v1146_v1  ;;  %v6168_v61 = vadd.f32 1.0, %v1261_v8 }
 0x297   : > { %v1187_v34 = vadd.f32 %v5311_v59, %v1186_v13  ;;  %v1246_v10 = vmul.f32 %v1245_v49, %v6127_v20 }
 0x298   : > { %v1151_v53 = vsel %vm1150_vm2, %v5309_v17, %v1147_v6  ;;  %v6173_v13 = vpop.eup %5312  ;;  %5314 = vrcp.f32 %v6168_v61  ;;  %v1207_v6 = vadd.f32 0.05243302, %v1206_v41  ;;  %vm1268_vm11 = vweird.f32 %v6168_v61 }
 0x299   : > { %v1156_v1 = vsel %vm1153_vm3, %v1155_v27, %v1151_v53  ;;  %v1191_v39 = vsel %vm1190_vm4, %v5311_v59, %v1187_v34  ;;  %v1293_v53 = vmul.f32 3.8918573e-05, %v6170_v46  ;;  %v1088_v59 = vmul.f32 0.5, %v6086_v24 }
 0x29a   : > { %v1157_v3 = vmul.f32 %v1156_v1, %v1132_v38  ;;  %v1196_v12 = vsel %vm1193_vm5, %v1195_v47, %v1191_v39  ;;  %v1089_v38 = vmul.f32 0.5, %v6088_v51  ;;  %v1224_v11 = vmul.f32 %v6173_v13, %v6154_v9 }
 0x29b   : > { %v1197_v7 = vmul.f32 %v1196_v12, %v1172_v63  ;;  %v1333_v27 = vmul.f32 3.8918573e-05, %v6175_v31  ;;  %v1294_v8 = vadd.f32 0.001143296, %v1293_v53  ;;  %v1208_v51 = vmul.f32 %v1207_v6, %v6122_v2 }
 0x29c   : > { %v5093_v17 = vclamps-f32 %v1157_v3, 1.0  ;;  %v1225_v23 = vsub.f32 1.0, %v1224_v11  ;;  %v1247_v3 = vadd.f32 0.05243302, %v1246_v10  ;;  %vm1229_vm6 = vweird.f32 %v6173_v13 }
 0x29d   : > { %v5094_v52 = vclamps-f32 %v1197_v7, 1.0  ;;  %v1334_v47 = vadd.f32 0.001143296, %v1333_v27  ;;  %v1295_v12 = vmul.f32 %v1294_v8, %v6170_v46  ;;  %v1234_v11 = vand.u32 2147483648, %v6154_v9  ;;  %vm1230_vm8 = vmor %vm1228_vm7, %vm1229_vm6 }
 0x29e   : > { %v1760_v55 = vadd.f32 1.0, %v5093_v17  ;;  %v6191_v24 = vpop.eup %5314  ;;  %v1209_v17 = vadd.f32 0.18741608, %v1208_v51  ;;  %v1248_v53 = vmul.f32 %v1247_v3, %v6127_v20  ;;  %v1232_v27 = vand.u32 2147483647, %v6154_v9 }
 0x29f   : > { %v1761_v39 = vadd.f32 1.0, %v5094_v52  ;;  %v1335_v1 = vmul.f32 %v1334_v47, %v6175_v31  ;;  %v1264_v7 = vmul.f32 %v6191_v24, %v6168_v61  ;;  %v1226_v52 = vmul.f32 %v6173_v13, %v1225_v23 }
 0x2a0   : > { %v6183_v63 = vmul.f32 %v1760_v55, %v1088_v59  ;;  %v1296_v59 = vadd.f32 0.014752088, %v1295_v12  ;;  %v1249_v10 = vadd.f32 0.18741608, %v1248_v53  ;;  %vm1233_vm9 = vcmp.eq.f32.partialorder %v1232_v27, 8.507059e+37  ;;  %v1050_v53 = vpop.permute.xlu1 %1049 }
 0x2a1   : > { %v6186_v34 = vmul.f32 %v1761_v39, %v1089_v38  ;;  %v1336_v41 = vadd.f32 0.014752088, %v1335_v1  ;;  %v1265_v55 = vsub.f32 1.0, %v1264_v7  ;;  %v1210_v39 = vmul.f32 %v1209_v17, %v6122_v2  ;;  %v994_v7 = vpop.permute.xlu0 %993 }
 0x2a2   : > { %1908 = vrot.lane.b32.xlu2 %v6183_v63, %s5401_s30  ;;  %v1227_v6 = vadd.f32 %v6173_v13, %v1226_v52  ;;  %v1297_v2 = vmul.f32 %v1296_v59, %v6170_v46  ;;  %v1235_v1 = vor.u32 1.1754944e-38, %v1234_v11  ;;  %v1250_v3 = vmul.f32 %v1249_v10, %v6127_v20 }
 0x2a3   : > { %2107 = vrot.lane.b32.xlu1 %v6186_v34, %s5402_s14  ;;  %1924 = vrot.lane.b32.xlu0 %v6186_v34, %s5401_s30  ;;  %v1337_v49 = vmul.f32 %v1336_v41, %v6175_v31  ;;  %v1266_v8 = vmul.f32 %v6191_v24, %v1265_v55  ;;  %v1211_v51 = vadd.f32 1.1283791, %v1210_v39  ;;  %vm1269_vm10 = vweird.f32 %v6191_v24 }
 0x2a4   : > { %v1231_v23 = vsel %vm1230_vm8, %v6173_v13, %v1227_v6  ;;  %v1298_v12 = vadd.f32 0.112945676, %v1297_v2  ;;  %v1274_v13 = vand.u32 2147483648, %v6168_v61  ;;  %v1272_v20 = vand.u32 2147483647, %v6168_v61  ;;  %vm1270_vm12 = vmor %vm1268_vm11, %vm1269_vm10 }
 0x2a5   : > { %v1338_v38 = vadd.f32 0.112945676, %v1337_v49  ;;  %v1236_v41 = vsel %vm1233_vm9, %v1235_v1, %v1231_v23  ;;  %v1267_v9 = vadd.f32 %v6191_v24, %v1266_v8  ;;  %v1212_v52 = vmul.f32 %v1211_v51, %v6111_v0 }
 0x2a6   : > { %v1322_v49 = vmul.f32 2.1237322e-06, %v6175_v31  ;;  %v1022_v59 = vmul.f32 %v994_v7, %v5713_v15  ;;  %v1299_v0 = vmul.f32 %v1298_v12, %v6170_v46  ;;  %v1275_v27 = vor.u32 1.1754944e-38, %v1274_v13 }
 0x2a7   : > { %v1339_v47 = vmul.f32 %v1338_v38, %v6175_v31  ;;  %v1237_v55 = vmul.f32 %v1236_v41, %v1212_v52  ;;  %v1251_v38 = vadd.f32 1.1283791, %v1250_v3  ;;  %v1271_v39 = vsel %vm1270_vm12, %v6191_v24, %v1267_v9 }
 0x2a8   : > { %v6239_v11 = vadd.f32 %v1050_v53, %v1022_v59  ;;  %v1323_v10 = vadd.f32 0.00028619796, %v1322_v49  ;;  %vm1273_vm13 = vcmp.eq.f32.partialorder %v1272_v20, 8.507059e+37  ;;  %v1282_v61 = vmul.f32 2.1237322e-06, %v6170_v46 }
 0x2a9   : > { %v1340_v17 = vadd.f32 0.4994258, %v1339_v47  ;;  %v5095_v2 = vclamps-f32 %v1237_v55, 1.0  ;;  %v1276_v8 = vsel %vm1273_vm13, %v1275_v27, %v1271_v39  ;;  %v1300_v47 = vadd.f32 0.4994258, %v1299_v0 }
 0x2aa   : > { %2473 = vrot.lane.b32.xlu2 %v6186_v34, %s5403_s15  ;;  %v1252_v15 = vmul.f32 %v1251_v38, %v6115_v44  ;;  %v1023_v23 = vmul.f32 %v994_v7, %v5715_v16  ;;  %v6247_v24 = vmul.f32 0.70710677, %v6239_v11  ;;  %v1324_v1 = vmul.f32 %v1323_v10, %v6175_v31 }
 0x2ab   : > { %2289 = vrot.lane.b32.xlu1 %v6186_v34, %s5404_s17  ;;  %2091 = vrot.lane.b32.xlu0 %v6183_v63, %s5402_s14  ;;  %v1341_v6 = vmul.f32 %v1340_v17, %v6175_v31  ;;  %v1762_v12 = vadd.f32 1.0, %v5095_v2  ;;  %v1283_v16 = vadd.f32 0.00028619796, %v1282_v61  ;;  %v1301_v7 = vmul.f32 %v1300_v47, %v6170_v46 }
 0x2ac   : > { %v1277_v44 = vmul.f32 %v1276_v8, %v1252_v15  ;;  %v6256_v3 = vadd.f32 %v1050_v53, %v1023_v23  ;;  %v1360_v41 = vmul.f32 %v6247_v24, %v6247_v24  ;;  %v1090_v9 = vmul.f32 0.5, %v6105_v45 }
 0x2ad   : > { %v6243_v51 = vadd.f32 1.0, %v1341_v6  ;;  %v1325_v17 = vadd.f32 0.0036580483, %v1324_v1  ;;  %v1284_v20 = vmul.f32 %v1283_v16, %v6170_v46  ;;  %v6271_v59 = vadd.f32 1.0, %v1301_v7 }
 0x2ae   : > { %v6263_v52 = vmin.f32 %v1360_v41, 16.0  ;;  %v5096_v13 = vclamps-f32 %v1277_v44, 1.0  ;;  %v6266_v49 = vmul.f32 0.70710677, %v6256_v3  ;;  %v6268_v53 = vmul.f32 %v1762_v12, %v1090_v9 }
 0x2af   : > { %5316 = vrcp.f32 %v6243_v51  ;;  %v1326_v45 = vmul.f32 %v1325_v17, %v6175_v31  ;;  %v1285_v27 = vadd.f32 0.0036580483, %v1284_v20  ;;  %v1091_v10 = vmul.f32 0.5, %v6108_v42 }
 0x2b0   : > { %v1373_v55 = vmul.f32 3.8918573e-05, %v6263_v52  ;;  %v1763_v38 = vadd.f32 1.0, %v5096_v13  ;;  %v1400_v6 = vmul.f32 %v6266_v49, %v6266_v49  ;;  %5318 = vrcp.f32 %v6271_v59 }
 0x2b1   : > { %v1327_v8 = vadd.f32 0.05243302, %v1326_v45  ;;  %v1286_v23 = vmul.f32 %v1285_v27, %v6170_v46  ;;  %vm1348_vm15 = vweird.f32 %v6243_v51  ;;  %vm1308_vm5 = vweird.f32 %v6271_v59 }
 0x2b2   : > { %2655 = vrot.lane.b32.xlu2 %v6186_v34, %s5405_s18  ;;  %v1374_v39 = vadd.f32 0.001143296, %v1373_v55  ;;  %v6287_v47 = vmin.f32 %v1400_v6, 16.0  ;;  %v6289_v15 = vmul.f32 %v1763_v38, %v1091_v10 }
 0x2b3   : > { %2457 = vrot.lane.b32.xlu1 %v6183_v63, %s5403_s15  ;;  %2273 = vrot.lane.b32.xlu0 %v6183_v63, %s5404_s17  ;;  %v1328_v12 = vmul.f32 %v1327_v8, %v6175_v31  ;;  %v1287_v7 = vadd.f32 0.05243302, %v1286_v23 }
 0x2b4   : > { %v1375_v2 = vmul.f32 %v1374_v39, %v6263_v52  ;;  %v1413_v42 = vmul.f32 3.8918573e-05, %v6287_v47 }
 0x2b5   : > { %v5317_v0 = vpop.eup %5316  ;;  %v1329_v13 = vadd.f32 0.18741608, %v1328_v12  ;;  %v1288_v45 = vmul.f32 %v1287_v7, %v6170_v46 }
 0x2b6   : > { %v1344_v61 = vmul.f32 %v5317_v0, %v6243_v51  ;;  %v1376_v1 = vadd.f32 0.014752088, %v1375_v2  ;;  %v5319_v44 = vpop.eup %5318  ;;  %v1414_v41 = vadd.f32 0.001143296, %v1413_v42  ;;  %vm1349_vm14 = vweird.f32 %v5317_v0  ;;  %v999_v42 = vpop.permute.xlu1 %998 }
 0x2b7   : > { %v1304_v9 = vmul.f32 %v5319_v44, %v6271_v59  ;;  %v1330_v27 = vmul.f32 %v1329_v13, %v6175_v31  ;;  %v1354_v2 = vand.u32 2147483648, %v6243_v51  ;;  %v1289_v8 = vadd.f32 0.18741608, %v1288_v45  ;;  %vm1350_vm2 = vmor %vm1348_vm15, %vm1349_vm14 }
 0x2b8   : > { %v1345_v16 = vsub.f32 1.0, %v1344_v61  ;;  %v1377_v17 = vmul.f32 %v1376_v1, %v6263_v52  ;;  %v1415_v55 = vmul.f32 %v1414_v41, %v6287_v47  ;;  %v1352_v61 = vand.u32 2147483647, %v6243_v51 }
 0x2b9   : > { %v1305_v39 = vsub.f32 1.0, %v1304_v9  ;;  %v1331_v12 = vadd.f32 1.1283791, %v1330_v27  ;;  %v1355_v7 = vor.u32 1.1754944e-38, %v1354_v2  ;;  %v1290_v41 = vmul.f32 %v1289_v8, %v6170_v46 }
 0x2ba   : > { %2821 = vrot.lane.b32.xlu2 %v6183_v63, %s5406_s19  ;;  %v1346_v20 = vmul.f32 %v5317_v0, %v1345_v16  ;;  %v1416_v38 = vadd.f32 0.014752088, %v1415_v55  ;;  %v1378_v6 = vadd.f32 0.112945676, %v1377_v17  ;;  %vm1353_vm3 = vcmp.eq.f32.partialorder %v1352_v61, 8.507059e+37 }
 0x2bb   : > { %2639 = vrot.lane.b32.xlu1 %v6183_v63, %s5405_s18  ;;  %2837 = vrot.lane.b32.xlu0 %v6186_v34, %s5406_s19  ;;  %v1306_v1 = vmul.f32 %v5319_v44, %v1305_v39  ;;  %vm1309_vm4 = vweird.f32 %v5319_v44  ;;  %v1314_v51 = vand.u32 2147483648, %v6271_v59  ;;  %v1332_v55 = vmul.f32 %v1331_v12, %v6158_v62 }
 0x2bc   : > { %v1347_v10 = vadd.f32 %v5317_v0, %v1346_v20  ;;  %v1417_v23 = vmul.f32 %v1416_v38, %v6287_v47  ;;  %v1379_v31 = vmul.f32 %v1378_v6, %v6263_v52  ;;  %v1362_v45 = vmul.f32 2.1237322e-06, %v6263_v52  ;;  %vm1310_vm6 = vmor %vm1308_vm5, %vm1309_vm4 }
 0x2bd   : > { %v1307_v17 = vadd.f32 %v5319_v44, %v1306_v1  ;;  %v1312_v46 = vand.u32 2147483647, %v6271_v59  ;;  %v1291_v39 = vadd.f32 1.1283791, %v1290_v41  ;;  %v1315_v27 = vor.u32 1.1754944e-38, %v1314_v51 }
 0x2be   : > { %v1351_v16 = vsel %vm1350_vm2, %v5317_v0, %v1347_v10  ;;  %v1418_v9 = vadd.f32 0.112945676, %v1417_v23  ;;  %v1380_v20 = vadd.f32 0.4994258, %v1379_v31  ;;  %v1004_v10 = vpop.permute.xlu2 %1003  ;;  %v1363_v2 = vadd.f32 0.00028619796, %v1362_v45  ;;  %v1055_v1 = vpop.permute.xlu1 %1054 }
 0x2bf   : > { %v1356_v13 = vsel %vm1353_vm3, %v1355_v7, %v1351_v16  ;;  %v1311_v6 = vsel %vm1310_vm6, %v5319_v44, %v1307_v17  ;;  %vm1313_vm7 = vcmp.eq.f32.partialorder %v1312_v46, 8.507059e+37  ;;  %v1292_v31 = vmul.f32 %v1291_v39, %v6152_v5 }
 0x2c0   : > { %v1357_v0 = vmul.f32 %v1356_v13, %v1332_v55  ;;  %v1419_v38 = vmul.f32 %v1418_v9, %v6287_v47  ;;  %v1381_v62 = vmul.f32 %v1380_v20, %v6263_v52  ;;  %v1316_v8 = vsel %vm1313_vm7, %v1315_v27, %v1311_v6 }
 0x2c1   : > { %v1402_v59 = vmul.f32 2.1237322e-06, %v6287_v47  ;;  %v1024_v16 = vmul.f32 %v999_v42, %v5720_v18  ;;  %v1364_v44 = vmul.f32 %v1363_v2, %v6263_v52  ;;  %v1317_v7 = vmul.f32 %v1316_v8, %v1292_v31 }
 0x2c2   : > { %3005 = vrot.lane.b32.xlu2 %v6183_v63, %s5407_s20  ;;  %v5098_v61 = vclamps-f32 %v1357_v0, 1.0  ;;  %v1420_v23 = vadd.f32 0.4994258, %v1419_v38  ;;  %v6331_v12 = vadd.f32 1.0, %v1381_v62  ;;  %v1025_v5 = vmul.f32 %v999_v42, %v5722_v19 }
 0x2c3   : > { %3021 = vrot.lane.b32.xlu0 %v6186_v34, %s5407_s20  ;;  %1910 = vrot.lane.b32.xlu1 %v6268_v53, %s5401_s30  ;;  %v6343_v41 = vadd.f32 %v1055_v1, %v1024_v16  ;;  %v1403_v18 = vadd.f32 0.00028619796, %v1402_v59  ;;  %v1093_v20 = vmul.f32 0.5, %v6146_v54  ;;  %v1365_v51 = vadd.f32 0.0036580483, %v1364_v44 }
 0x2c4   : > { %v1765_v9 = vadd.f32 1.0, %v5098_v61  ;;  %v1421_v17 = vmul.f32 %v1420_v23, %v6287_v47  ;;  %5320 = vrcp.f32 %v6331_v12  ;;  %v6347_v13 = vadd.f32 %v1055_v1, %v1025_v5 }
 0x2c5   : > { %v5097_v55 = vclamps-f32 %v1317_v7, 1.0  ;;  %v6351_v45 = vmul.f32 0.70710677, %v6343_v41  ;;  %v1026_v0 = vmul.f32 %v1004_v10, %v5727_v21  ;;  %v1404_v38 = vmul.f32 %v1403_v18, %v6287_v47 }
 0x2c6   : > { %v6353_v46 = vmul.f32 %v1765_v9, %v1093_v20  ;;  %v1060_v19 = vpop.permute.xlu2 %1059  ;;  %v6355_v42 = vadd.f32 1.0, %v1421_v17  ;;  %v6360_v39 = vmul.f32 0.70710677, %v6347_v13  ;;  %v1366_v54 = vmul.f32 %v1365_v51, %v6263_v52 }
 0x2c7   : > { %v1764_v62 = vadd.f32 1.0, %v5097_v55  ;;  %v6371_v21 = vadd.f32 %v1060_v19, %v1026_v0  ;;  %v1440_v27 = vmul.f32 %v6351_v45, %v6351_v45  ;;  %v1092_v2 = vmul.f32 0.5, %v6143_v37 }
 0x2c8   : > { %9141 = vst [vmem:[#allocation65_spill] sm:$0xff] %v6353_v46  ;;  %5322 = vrcp.f32 %v6355_v42  ;;  %v1405_v8 = vadd.f32 0.0036580483, %v1404_v38  ;;  %v1480_v61 = vmul.f32 %v6360_v39, %v6360_v39  ;;  %v1027_v23 = vmul.f32 %v1004_v10, %v5729_v22 }
 0x2c9   : > { %9142 = vst [vmem:[#allocation66_spill] sm:$0xff] %v6371_v21  ;;  %v1367_v1 = vadd.f32 0.05243302, %v1366_v54  ;;  %v6382_v59 = vmul.f32 %v1764_v62, %v1092_v2  ;;  %v6385_v16 = vmul.f32 0.70710677, %v6371_v21  ;;  %v6387_v44 = vmin.f32 %v1440_v27, 16.0 }
 0x2ca   : > { %1926 = vrot.lane.b32.xlu2 %v6289_v15, %s5401_s30  ;;  %v6369_v6 = vpop.eup %5320  ;;  %v6389_v7 = vadd.f32 %v1060_v19, %v1027_v23  ;;  %v1406_v37 = vmul.f32 %v1405_v8, %v6287_v47  ;;  %v6392_v5 = vmin.f32 %v1480_v61, 16.0  ;;  %vm1388_vm9 = vweird.f32 %v6331_v12 }
 0x2cb   : > { %2109 = vrot.lane.b32.xlu0 %v6289_v15, %s5402_s14  ;;  %2475 = vrot.lane.b32.xlu1 %v6289_v15, %s5403_s15  ;;  %v1384_v31 = vmul.f32 %v6369_v6, %v6331_v12  ;;  %9143 = vst [vmem:[#allocation67_spill] sm:$0xff] %v6382_v59  ;;  %v1368_v10 = vmul.f32 %v1367_v1, %v6263_v52  ;;  %v1453_v18 = vmul.f32 3.8918573e-05, %v6387_v44  ;;  %vm1389_vm8 = vweird.f32 %v6369_v6 }
 0x2cc   : > { %9144 = vst [vmem:[#allocation68_spill] sm:$0xff] %v6389_v7  ;;  %v1520_v17 = vmul.f32 %v6385_v16, %v6385_v16  ;;  %v6407_v20 = vmul.f32 0.70710677, %v6389_v7  ;;  %v1407_v51 = vadd.f32 0.05243302, %v1406_v37  ;;  %v1394_v37 = vand.u32 2147483648, %v6331_v12  ;;  %vm1390_vm10 = vmor %vm1388_vm9, %vm1389_vm8 }
 0x2cd   : > { %v1385_v9 = vsub.f32 1.0, %v1384_v31  ;;  %v1493_v19 = vmul.f32 3.8918573e-05, %v6392_v5  ;;  %v1369_v0 = vadd.f32 0.18741608, %v1368_v10  ;;  %vm1428_vm13 = vweird.f32 %v6355_v42 }
 0x2ce   : > { %v6396_v22 = vpop.eup %5322  ;;  %9145 = vst [vmem:[#allocation69_spill] sm:$0xff] %v6407_v20  ;;  %v6413_v54 = vmin.f32 %v1520_v17, 16.0  ;;  %v1454_v62 = vadd.f32 0.001143296, %v1453_v18  ;;  %v1560_v27 = vmul.f32 %v6407_v20, %v6407_v20  ;;  %v1408_v2 = vmul.f32 %v1407_v51, %v6287_v47  ;;  %v5267_v20 = vld [vmem:[%s8983_s5] sm:$0xff] }
 0x2cf   : > { %v1424_v55 = vmul.f32 %v6396_v22, %v6355_v42  ;;  %v1386_v38 = vmul.f32 %v6369_v6, %v1385_v9  ;;  %v1494_v61 = vadd.f32 0.001143296, %v1493_v19  ;;  %v1370_v23 = vmul.f32 %v1369_v0, %v6263_v52 }
 0x2d0   : > { %v1533_v31 = vmul.f32 3.8918573e-05, %v6413_v54  ;;  %v1455_v10 = vmul.f32 %v1454_v62, %v6387_v44  ;;  %v6431_v17 = vmin.f32 %v1560_v27, 16.0  ;;  %v1392_v52 = vand.u32 2147483647, %v6331_v12 }
 0x2d1   : > { %v1425_v8 = vsub.f32 1.0, %v1424_v55  ;;  %v1387_v1 = vadd.f32 %v6369_v6, %v1386_v38  ;;  %v1495_v9 = vmul.f32 %v1494_v61, %v6392_v5  ;;  %v1482_v18 = vmul.f32 2.1237322e-06, %v6392_v5 }
 0x2d2   : > { %2093 = vrot.lane.b32.xlu2 %v6268_v53, %s5402_s14  ;;  %v1409_v51 = vadd.f32 0.18741608, %v1408_v2  ;;  %v1371_v0 = vadd.f32 1.1283791, %v1370_v23  ;;  %v1534_v33 = vadd.f32 0.001143296, %v1533_v31  ;;  %vm1429_vm12 = vweird.f32 %v6396_v22 }
 0x2d3   : > { %2291 = vrot.lane.b32.xlu0 %v6289_v15, %s5404_s17  ;;  %2657 = vrot.lane.b32.xlu1 %v6289_v15, %s5405_s18  ;;  %v1426_v55 = vmul.f32 %v6396_v22, %v1425_v8  ;;  %v1496_v19 = vadd.f32 0.014752088, %v1495_v9  ;;  %v1391_v38 = vsel %vm1390_vm10, %v6369_v6, %v1387_v1  ;;  %v1395_v62 = vor.u32 1.1754944e-38, %v1394_v37  ;;  %vm6454_vm14 = vmor %vm1428_vm13, %vm1429_vm12 }
 0x2d4   : > { %v1456_v14 = vadd.f32 0.014752088, %v1455_v10  ;;  %v1573_v61 = vmul.f32 3.8918573e-05, %v6431_v17  ;;  %vm1393_vm11 = vcmp.eq.f32.partialorder %v1392_v52, 8.507059e+37  ;;  %v1410_v7 = vmul.f32 %v1409_v51, %v6287_v47 }
 0x2d5   : > { %v1497_v27 = vmul.f32 %v1496_v19, %v6392_v5  ;;  %v1483_v4 = vadd.f32 0.00028619796, %v1482_v18  ;;  %v1396_v12 = vsel %vm1393_vm11, %v1395_v62, %v1391_v38  ;;  %v1427_v2 = vadd.f32 %v6396_v22, %v1426_v55 }
 0x2d6   : > { %v1372_v6 = vmul.f32 %v1371_v0, %v6247_v24  ;;  %v1434_v8 = vand.u32 2147483648, %v6355_v42  ;;  %v1432_v47 = vand.u32 2147483647, %v6355_v42  ;;  %v1457_v1 = vmul.f32 %v1456_v14, %v6387_v44  ;;  %v6458_v24 = vpop.permute.xlu2 %1013 }
 0x2d7   : > { %v1498_v23 = vadd.f32 0.112945676, %v1497_v27  ;;  %v1484_v10 = vmul.f32 %v1483_v4, %v6392_v5  ;;  %v1535_v52 = vmul.f32 %v1534_v33, %v6413_v54  ;;  %v1574_v18 = vadd.f32 0.001143296, %v1573_v61 }
 0x2d8   : > { %v1397_v31 = vmul.f32 %v1396_v12, %v1372_v6  ;;  %v1411_v51 = vadd.f32 1.1283791, %v1410_v7  ;;  %v1431_v42 = vsel %vm6454_vm14, %v6396_v22, %v1427_v2  ;;  %v1435_v14 = vor.u32 1.1754944e-38, %v1434_v8 }
 0x2d9   : > { %v1499_v9 = vmul.f32 %v1498_v23, %v6392_v5  ;;  %v1442_v55 = vmul.f32 2.1237322e-06, %v6387_v44  ;;  %v1522_v0 = vmul.f32 2.1237322e-06, %v6413_v54  ;;  %vm1433_vm15 = vcmp.eq.f32.partialorder %v1432_v47, 8.507059e+37 }
 0x2da   : > { %2275 = vrot.lane.b32.xlu2 %v6268_v53, %s5404_s17  ;;  %v1458_v38 = vadd.f32 0.112945676, %v1457_v1  ;;  %v5099_v62 = vclamps-f32 %v1397_v31, 1.0  ;;  %v1436_v4 = vsel %vm1433_vm15, %v1435_v14, %v1431_v42  ;;  %v1485_v27 = vadd.f32 0.0036580483, %v1484_v10  ;;  %v6490_v14 = vpop.permute.xlu0 %1064 }
 0x2db   : > { %2459 = vrot.lane.b32.xlu0 %v6268_v53, %s5403_s15  ;;  %2823 = vrot.lane.b32.xlu1 %v6268_v53, %s5406_s19  ;;  %v1500_v19 = vadd.f32 0.4994258, %v1499_v9  ;;  %v1536_v33 = vadd.f32 0.014752088, %v1535_v52  ;;  %v1412_v7 = vmul.f32 %v1411_v51, %v6266_v49  ;;  %v1575_v22 = vmul.f32 %v1574_v18, %v6431_v17  ;;  %v6487_v52 = vpop.permute.xlu1 %1008 }
 0x2dc   : > { %v1443_v61 = vadd.f32 0.00028619796, %v1442_v55  ;;  %v1523_v6 = vadd.f32 0.00028619796, %v1522_v0  ;;  %v1459_v23 = vmul.f32 %v1458_v38, %v6387_v44  ;;  %v1766_v47 = vadd.f32 1.0, %v5099_v62 }
 0x2dd   : > { %v1501_v12 = vmul.f32 %v1500_v19, %v6392_v5  ;;  %v1437_v8 = vmul.f32 %v1436_v4, %v1412_v7  ;;  %v1486_v49 = vmul.f32 %v1485_v27, %v6392_v5  ;;  %v1537_v1 = vmul.f32 %v1536_v33, %v6413_v54 }
 0x2de   : > { %v1576_v31 = vadd.f32 0.014752088, %v1575_v22  ;;  %v1094_v37 = vmul.f32 0.5, %v6239_v11  ;;  %v6484_v10 = vpop.permute.xlu2 %1069  ;;  %v1444_v9 = vmul.f32 %v1443_v61, %v6387_v44  ;;  %v1524_v18 = vmul.f32 %v1523_v6, %v6413_v54 }
 0x2df   : > { %v6473_v2 = vadd.f32 1.0, %v1501_v12  ;;  %v5100_v51 = vclamps-f32 %v1437_v8, 1.0  ;;  %v1460_v42 = vadd.f32 0.4994258, %v1459_v23  ;;  %v1487_v19 = vadd.f32 0.05243302, %v1486_v49 }
 0x2e0   : > { %v6492_v55 = vmul.f32 %v1766_v47, %v1094_v37  ;;  %v1538_v0 = vadd.f32 0.112945676, %v1537_v1  ;;  %v1577_v38 = vmul.f32 %v1576_v31, %v6431_v17  ;;  %v1445_v62 = vadd.f32 0.0036580483, %v1444_v9 }
 0x2e1   : > { %5324 = vrcp.f32 %v6473_v2  ;;  %v1525_v4 = vadd.f32 0.0036580483, %v1524_v18  ;;  %v1767_v27 = vadd.f32 1.0, %v5100_v51  ;;  %v1461_v12 = vmul.f32 %v1460_v42, %v6387_v44 }
 0x2e2   : > { %2839 = vrot.lane.b32.xlu2 %v6289_v15, %s5406_s19  ;;  %v1029_v33 = vmul.f32 %v6487_v52, %v5738_v26  ;;  %v1488_v7 = vmul.f32 %v1487_v19, %v6392_v5  ;;  %v1539_v22 = vmul.f32 %v1538_v0, %v6413_v54  ;;  %v1095_v61 = vmul.f32 0.5, %v6256_v3 }
 0x2e3   : > { %2641 = vrot.lane.b32.xlu0 %v6268_v53, %s5405_s18  ;;  %3007 = vrot.lane.b32.xlu1 %v6268_v53, %s5407_s20  ;;  %v1562_v8 = vmul.f32 2.1237322e-06, %v6431_v17  ;;  %v1578_v23 = vadd.f32 0.112945676, %v1577_v38  ;;  %v1446_v47 = vmul.f32 %v1445_v62, %v6387_v44  ;;  %v1792_v31 = vlaneseq }
 0x2e4   : > { %v1526_v26 = vmul.f32 %v1525_v4, %v6413_v54  ;;  %v6516_v37 = vmul.f32 %v1767_v27, %v1095_v61  ;;  %v6518_v9 = vadd.f32 1.0, %v1461_v12  ;;  %v6521_v3 = vadd.f32 %v6490_v14, %v1029_v33 }
 0x2e5   : > { %v1489_v51 = vadd.f32 0.18741608, %v1488_v7  ;;  %v6523_v42 = vand.u32 127, %v1792_v31  ;;  %v1540_v19 = vadd.f32 0.4994258, %v1539_v22  ;;  %v1579_v62 = vmul.f32 %v1578_v23, %v6431_v17 }
 0x2e6   : > { %9148 = vst [vmem:[#allocation70_spill] sm:$0xff] %v6521_v3  ;;  %v1563_v38 = vadd.f32 0.00028619796, %v1562_v8  ;;  %v1447_v4 = vadd.f32 0.05243302, %v1446_v47  ;;  %5326 = vrcp.f32 %v6518_v9  ;;  %v1514_v36 = vand.u32 2147483648, %v6473_v2 }
 0x2e7   : > { %v6496_v11 = vpop.eup %5324  ;;  %v1527_v27 = vadd.f32 0.05243302, %v1526_v26  ;;  %v6534_v12 = vmul.f32 0.70710677, %v6521_v3  ;;  %v6537_v33 = vadd.s32 128, %v6523_v42  ;;  %v1490_v7 = vmul.f32 %v1489_v51, %v6392_v5  ;;  %v9343_v26 = vld [vmem:[#allocation59_spill] sm:$0xff] }
 0x2e8   : > { %v1504_v6 = vmul.f32 %v6496_v11, %v6473_v2  ;;  %v1799_v22 = vand.u32 15, %v6523_v42  ;;  %v1541_v61 = vmul.f32 %v1540_v19, %v6413_v54  ;;  %vm1819_vm2 = vcmp.ge.s32.totalorder %v6523_v42, 16 }
 0x2e9   : > { %9149 = vst [vmem:[#allocation71_spill] sm:$0xff] %v6534_v12  ;;  %v1806_v8 = vand.u32 15, %v6537_v33  ;;  %v1580_v23 = vadd.f32 0.4994258, %v1579_v62  ;;  %v1448_v47 = vmul.f32 %v1447_v4, %v6387_v44  ;;  %vm9065_vm4 = vcmp.lt.s32.totalorder %v6523_v42, 17 }
 0x2ea   : > { %3023 = vrot.lane.b32.xlu2 %v6289_v15, %s5407_s20  ;;  %v1505_v0 = vsub.f32 1.0, %v1504_v6  ;;  %9150 = vst [vmem:[#allocation72_spill] sm:$0xff] %v6537_v33  ;;  %vm6546_vm3 = vcmp.gt.s32.totalorder %v1799_v22, 0  ;;  %v6552_v51 = vmul.f32 %v1527_v27, %v6413_v54  ;;  %v6555_v19 = vmul.f32 %v1563_v38, %v6431_v17 }
 0x2eb   : > { %1928 = vrot.lane.b32.xlu0 %v6353_v46, %s5401_s30  ;;  %2111 = vrot.lane.b32.xlu1 %v6353_v46, %s5402_s14  ;;  %v1491_v33 = vadd.f32 1.1283791, %v1490_v7  ;;  %vm6559_vm5 = vcmp.gt.s32.totalorder %v1806_v8, 0  ;;  %vm6567_vm6 = vmand %vm1819_vm2, %vm6546_vm3  ;;  %v6577_v7 = vadd.f32 1.0, %v1541_v61  ;;  %vm1509_vm7 = vweird.f32 %v6496_v11 }
 0x2ec   : > { %v1506_v6 = vmul.f32 %v6496_v11, %v1505_v0  ;;  %v1640_v0 = vmul.f32 %v6534_v12, %v6534_v12  ;;  %v6575_v12 = vpop.eup %5326  ;;  %vm2123_vm8 = vcmp.lt.s32.totalorder %v6523_v42, 16  ;;  %v6585_v21 = vadd.f32 0.18741608, %v1448_v47 }
 0x2ed   : > { %vm1508_vm9 = vweird.f32 %v6473_v2  ;;  %v1492_v47 = vmul.f32 %v1491_v33, %v6360_v39  ;;  %vm6621_vm11 = vcmp.lt.s32.totalorder %v1799_v22, 15  ;;  %v1515_v32 = vor.u32 1.1754944e-38, %v1514_v36 }
 0x2ee   : > { %v6596_v61 = vmin.f32 %v1640_v0, 16.0  ;;  %vm6605_vm10 = vmor %vm1508_vm9, %vm1509_vm7  ;;  %vm9071_vm12 = vcmp.lt.s32.totalorder %v6523_v42, 1  ;;  %vm9072_vm13 = vcmp.lt.s32.totalorder %v6523_v42, 15  ;;  %vm6631_vm15 = vcmp.lt.s32.totalorder %v1806_v8, 15 }
 0x2ef   : > { %vm6642_vm7 = vmand %vm1819_vm2, %vm6621_vm11  ;;  %vm9066_vm9 = vcmp.lt.s32.totalorder %v6523_v42, 127  ;;  %5328 = vrcp.f32 %v6577_v7 }
 0x2f0   : > { %v1653_v8 = vmul.f32 3.8918573e-05, %v6596_v61 }
 0x2f2   : > { %1912 = vrot.lane.b32.xlu2 %v6382_v59, %s5401_s30 }
 0x2f3   : > { %2095 = vrot.lane.b32.xlu0 %v6382_v59, %s5402_s14  ;;  %2477 = vrot.lane.b32.xlu1 %v6353_v46, %s5403_s15 }
 0x2fa   : > { %2277 = vrot.lane.b32.xlu2 %v6382_v59, %s5404_s17 }
 0x2fb   : > { %2293 = vrot.lane.b32.xlu0 %v6353_v46, %s5404_s17  ;;  %2659 = vrot.lane.b32.xlu1 %v6353_v46, %s5405_s18 }
 0x2fc   : > { %v1909_v49 = vpop.permute.xlu2 %1908 }
 0x302   : > { %2841 = vrot.lane.b32.xlu2 %v6353_v46, %s5406_s19 }
 0x303   : > { %2461 = vrot.lane.b32.xlu0 %v6382_v59, %s5403_s15  ;;  %2825 = vrot.lane.b32.xlu1 %v6382_v59, %s5406_s19 }
 0x304   : > { %v2474_v31 = vpop.permute.xlu2 %2473 }
 0x30a   : > { %3025 = vrot.lane.b32.xlu2 %v6353_v46, %s5407_s20 }
 0x30b   : > { %2643 = vrot.lane.b32.xlu0 %v6382_v59, %s5405_s18  ;;  %3009 = vrot.lane.b32.xlu1 %v6382_v59, %s5407_s20 }
 0x30c   : > { %v2656_v50 = vpop.permute.xlu2 %2655 }
 0x312   : > { %3191 = vrot.lane.b32.xlu2 %v6382_v59, %s5408_s21  ;;  %v1581_v59 = vmul.f32 %v1580_v23, %v6431_v17  ;;  %v1464_v23 = vmul.f32 %v6575_v12, %v6518_v9 }
 0x313   : > { %3207 = vrot.lane.b32.xlu0 %v6353_v46, %s5408_s21  ;;  %1914 = vrot.lane.b32.xlu1 %v6492_v55, %s5401_s30  ;;  %v1507_v46 = vadd.f32 %v6496_v11, %v1506_v6 }
 0x314   : > { %v1465_v36 = vsub.f32 1.0, %v1464_v23 }
 0x315   : > { %v6513_v1 = vpop.permute.xlu1 %2107  ;;  %v1925_v18 = vpop.permute.xlu0 %1924 }
 0x316   : > { %v1941_v38 = vsel %vm9065_vm4, %v1909_v49, %v1925_v18  ;;  %v1949_v27 = vsel %vm9065_vm4, %v1925_v18, %v1909_v49  ;;  %v1512_v18 = vand.u32 2147483647, %v6473_v2 }
 0x317   : > { %v1964_v49 = vsel %vm6559_vm5, %v1941_v38, 0.0  ;;  %v1963_v6 = vsel %vm6567_vm6, %v1949_v27, 0.0  ;;  %v1511_v27 = vsel %vm6605_vm10, %v6496_v11, %v1507_v46  ;;  %v1877_v46 = vmul.f32 %v5923_v43, %v6186_v34 }
 0x318   : > { %v2044_v39 = vmul.f32 %v5909_v35, %v1964_v49  ;;  %v2043_v28 = vmul.f32 %v5909_v35, %v1963_v6  ;;  %vm1513_vm14 = vcmp.eq.f32.partialorder %v1512_v18, 8.507059e+37  ;;  %v1876_v35 = vmul.f32 %v5923_v43, %v6183_v63 }
 0x319   : > { %v1516_v49 = vsel %vm1513_vm14, %v1515_v32, %v1511_v27  ;;  %vm1469_vm10 = vweird.f32 %v6575_v12  ;;  %vm1468_vm14 = vweird.f32 %v6518_v9 }
 0x31a   : > { %1930 = vrot.lane.b32.xlu2 %v6516_v37, %s5401_s30  ;;  %v2060_v38 = vadd.f32 %v2044_v39, %v1877_v46  ;;  %v2059_v43 = vadd.f32 %v2043_v28, %v1876_v35  ;;  %v1517_v27 = vmul.f32 %v1516_v49, %v1492_v47  ;;  %v1565_v46 = vadd.f32 0.0036580483, %v6555_v19  ;;  %v6677_v35 = vpop.permute.xlu2 %2821  ;;  %vm6717_vm0 = vmor %vm1468_vm14, %vm1469_vm10 }
 0x31b   : > { %2113 = vrot.lane.b32.xlu0 %v6516_v37, %s5402_s14  ;;  %2279 = vrot.lane.b32.xlu1 %v6492_v55, %s5404_s17  ;;  %v1466_v47 = vmul.f32 %v6575_v12, %v1465_v36  ;;  %v1654_v49 = vadd.f32 0.001143296, %v1653_v8  ;;  %9165 = vst [vmem:[#allocation73_spill] sm:$0xff] %v6677_v35 }
 0x31d   : > { %v2290_v5 = vpop.permute.xlu1 %2289  ;;  %v2092_v62 = vpop.permute.xlu0 %2091 }
 0x31e   : > { %v2124_v2 = vsel %vm2123_vm8, %v2092_v62, %v6513_v1  ;;  %v2132_v0 = vsel %vm2123_vm8, %v6513_v1, %v2092_v62 }
 0x31f   : > { %v2144_v33 = vsel %vm1819_vm2, %v2132_v0, 0.0  ;;  %v2226_v11 = vmul.f32 %v5933_v60, %v2124_v2 }
 0x320   : > { %v2225_v6 = vmul.f32 %v5933_v60, %v2144_v33 }
 0x321   : > { %v2242_v39 = vadd.f32 %v2226_v11, %v2060_v38 }
 0x322   : > { %2097 = vrot.lane.b32.xlu2 %v6492_v55, %s5402_s14 }
 0x323   : > { %2479 = vrot.lane.b32.xlu0 %v6516_v37, %s5403_s15  ;;  %2843 = vrot.lane.b32.xlu1 %v6516_v37, %s5406_s19 }
 0x325   : > { %v2458_v1 = vpop.permute.xlu1 %2457  ;;  %v2274_v62 = vpop.permute.xlu0 %2273 }
 0x326   : > { %v2498_v23 = vsel %vm9071_vm12, %v2474_v31, %v2458_v1  ;;  %v2306_v32 = vsel %vm9072_vm13, %v2274_v62, %v2290_v5  ;;  %v2490_v60 = vsel %vm9071_vm12, %v2458_v1, %v2474_v31  ;;  %v2314_v2 = vsel %vm9072_vm13, %v2290_v5, %v2274_v62 }
 0x327   : > { %v2329_v0 = vsel %vm6631_vm15, %v2306_v32, 0.0  ;;  %v2328_v28 = vsel %vm6642_vm7, %v2314_v2, 0.0  ;;  %v2241_v31 = vadd.f32 %v2225_v6, %v2059_v43  ;;  %v2510_v5 = vsel %vm6546_vm3, %v2498_v23, 0.0 }
 0x328   : > { %v2410_v33 = vmul.f32 %v5943_v57, %v2329_v0  ;;  %v2409_v1 = vmul.f32 %v5943_v57, %v2328_v28  ;;  %v2511_v11 = vsel %vm6559_vm5, %v2490_v60, 0.0  ;;  %v6675_v62 = vadd.f32 1.0, %v1581_v59  ;;  %v6705_v28 = vpop.eup %5328 }
 0x329   : > { %v1450_v57 = vmul.f32 %v6585_v21, %v6387_v44  ;;  %v2591_v19 = vmul.f32 %v5961_v56, %v2510_v5  ;;  %v5102_v59 = vclamps-f32 %v1517_v27, 1.0  ;;  %v2592_v8 = vmul.f32 %v5961_v56, %v2511_v11 }
 0x32a   : > { %2295 = vrot.lane.b32.xlu2 %v6516_v37, %s5404_s17  ;;  %v2425_v6 = vadd.f32 %v2409_v1, %v2241_v31  ;;  %v2426_v38 = vadd.f32 %v2410_v33, %v2242_v39  ;;  %v1467_v21 = vadd.f32 %v6575_v12, %v1466_v47  ;;  %v1474_v27 = vand.u32 2147483648, %v6518_v9 }
 0x32b   : > { %2661 = vrot.lane.b32.xlu0 %v6516_v37, %s5405_s18  ;;  %3027 = vrot.lane.b32.xlu1 %v6516_v37, %s5407_s20  ;;  %v1655_v56 = vmul.f32 %v1654_v49, %v6596_v61  ;;  %v1030_v33 = vmul.f32 %v6458_v24, %v5745_v29  ;;  %v1472_v31 = vand.u32 2147483647, %v6518_v9  ;;  %v1566_v1 = vmul.f32 %v1565_v46, %v6431_v17 }
 0x32c   : > { %v2607_v44 = vadd.f32 %v2591_v19, %v2425_v6  ;;  %v2608_v39 = vadd.f32 %v2592_v8, %v2426_v38  ;;  %5330 = vrcp.f32 %v6675_v62  ;;  %v1769_v47 = vadd.f32 1.0, %v5102_v59 }
 0x32d   : > { %v2640_v23 = vpop.permute.xlu1 %2639  ;;  %v6685_v32 = vpop.permute.xlu0 %2837  ;;  %v1529_v29 = vadd.f32 0.18741608, %v6552_v51  ;;  %v6725_v49 = vadd.f32 %v6484_v10, %v1030_v33  ;;  %v1451_v9 = vadd.f32 1.1283791, %v1450_v57  ;;  %v1471_v46 = vsel %vm6717_vm0, %v6575_v12, %v1467_v21 }
 0x32e   : > { %v2672_v36 = vsel %vm9066_vm9, %v2640_v23, %v2656_v50  ;;  %v2680_v43 = vsel %vm9066_vm9, %v2656_v50, %v2640_v23  ;;  %v1097_v6 = vmul.f32 0.5, %v6347_v13  ;;  %v1475_v38 = vor.u32 1.1754944e-38, %v1474_v27 }
 0x32f   : > { %v2692_v60 = vsel %vm6621_vm11, %v2672_v36, 0.0  ;;  %v2693_v2 = vsel %vm6631_vm15, %v2680_v43, 0.0  ;;  %v1028_v23 = vmul.f32 %v6487_v52, %v5736_v25  ;;  %v1656_v19 = vadd.f32 0.014752088, %v1655_v56  ;;  %v6733_v36 = vpop.permute.xlu2 %3005 }
 0x330   : > { %v2773_v0 = vmul.f32 %v5977_v58, %v2692_v60  ;;  %v2774_v50 = vmul.f32 %v5977_v58, %v2693_v2  ;;  %9170 = vst [vmem:[#allocation76_spill] sm:$0xff] %v6733_v36  ;;  %vm1473_vm10 = vcmp.eq.f32.partialorder %v1472_v31, 8.507059e+37  ;;  %v1567_v8 = vadd.f32 0.05243302, %v1566_v1 }
 0x331   : > { %v1476_v43 = vsel %vm1473_vm10, %v1475_v38, %v1471_v46  ;;  %v6737_v57 = vmul.f32 %v1769_v47, %v1097_v6  ;;  %v1544_v12 = vmul.f32 %v6705_v28, %v6577_v7  ;;  %v6742_v13 = vmul.f32 0.70710677, %v6725_v49 }
 0x332   : > { %2463 = vrot.lane.b32.xlu2 %v6492_v55, %s5403_s15  ;;  %v6711_v5 = vadd.f32 %v2773_v0, %v2607_v44  ;;  %v6721_v11 = vadd.f32 %v2774_v50, %v2608_v39  ;;  %v1452_v60 = vmul.f32 %v1451_v9, %v6351_v45  ;;  %v6747_v25 = vpop.eup %5330  ;;  %v1530_v52 = vmul.f32 %v1529_v29, %v6413_v54 }
 0x333   : > { %2827 = vrot.lane.b32.xlu0 %v6492_v55, %s5406_s19  ;;  %3193 = vrot.lane.b32.xlu1 %v6492_v55, %s5408_s21  ;;  %v6751_v21 = vadd.f32 %v6490_v14, %v1028_v23  ;;  %v1657_v44 = vmul.f32 %v1656_v19, %v6596_v61  ;;  %v1568_v45 = vmul.f32 %v1567_v8, %v6431_v17  ;;  %v1545_v0 = vsub.f32 1.0, %v1544_v12 }
 0x334   : > { %9166 = vst [vmem:[#allocation74_spill] sm:$0xff] %v6711_v5  ;;  %v1477_v2 = vmul.f32 %v1476_v43, %v1452_v60  ;;  %v1584_v27 = vmul.f32 %v6747_v25, %v6675_v62  ;;  %v1680_v54 = vmul.f32 %v6742_v13, %v6742_v13  ;;  %v1531_v14 = vadd.f32 1.1283791, %v1530_v52 }
 0x335   : > { %9169 = vst [vmem:[#allocation75_spill] sm:$0xff] %v6721_v11  ;;  %v1911_v59 = vpop.permute.xlu1 %1910  ;;  %v6735_v51 = vpop.permute.xlu0 %3021  ;;  %v6764_v56 = vmul.f32 0.70710677, %v6751_v21  ;;  %v1658_v39 = vadd.f32 0.112945676, %v1657_v44  ;;  %v1546_v29 = vmul.f32 %v6705_v28, %v1545_v0  ;;  %v1554_v19 = vand.u32 2147483648, %v6577_v7 }
 0x336   : > { %9171 = vst [vmem:[#allocation77_spill] sm:$0xff] %v6735_v51  ;;  %v5101_v31 = vclamps-f32 %v1477_v2, 1.0  ;;  %v1552_v58 = vand.u32 2147483647, %v6577_v7  ;;  %v1569_v47 = vadd.f32 0.18741608, %v1568_v45  ;;  %v6775_v6 = vmul.f32 %v1531_v14, %v6385_v16 }
 0x337   : > { %v1927_v50 = vpop.permute.xlu2 %1926  ;;  %v1585_v9 = vsub.f32 1.0, %v1584_v27  ;;  %v6770_v46 = vmin.f32 %v1680_v54, 16.0  ;;  %v1600_v38 = vmul.f32 %v6764_v56, %v6764_v56  ;;  %v1659_v23 = vmul.f32 %v1658_v39, %v6596_v61 }
 0x338   : > { %v1768_v8 = vadd.f32 1.0, %v5101_v31  ;;  %v1942_v43 = vsel %vm9065_vm4, %v1911_v59, %v1927_v50  ;;  %v1950_v16 = vsel %vm9065_vm4, %v1927_v50, %v1911_v59  ;;  %vm1548_vm0 = vweird.f32 %v6577_v7 }
 0x339   : > { %vm1549_vm14 = vweird.f32 %v6705_v28  ;;  %vm6791_vm10 = vcmp.eq.f32.partialorder %v1552_v58, 8.507059e+37  ;;  %v1570_v60 = vmul.f32 %v1569_v47, %v6431_v17  ;;  %v1547_v52 = vadd.f32 %v6705_v28, %v1546_v29 }
 0x33a   : > { %2645 = vrot.lane.b32.xlu2 %v6492_v55, %s5405_s18  ;;  %v1586_v44 = vmul.f32 %v6747_v25, %v1585_v9  ;;  %v1693_v2 = vmul.f32 3.8918573e-05, %v6770_v46  ;;  %v1096_v45 = vmul.f32 0.5, %v6343_v41  ;;  %v6800_v0 = vmin.f32 %v1600_v38, 16.0  ;;  %vm6817_vm4 = vmor %vm1548_vm0, %vm1549_vm14 }
 0x33b   : > { %3011 = vrot.lane.b32.xlu0 %v6492_v55, %s5407_s20  ;;  %2115 = vrot.lane.b32.xlu1 %v6737_v57, %s5402_s14  ;;  %v1660_v59 = vadd.f32 0.4994258, %v1659_v23  ;;  %v1965_v54 = vsel %vm6567_vm6, %v1950_v16, 0.0  ;;  %v1966_v14 = vsel %vm6559_vm5, %v1942_v43, 0.0  ;;  %v1555_v17 = vor.u32 1.1754944e-38, %v1554_v19  ;;  %v9176_v43 = vld [vmem:[#allocation43_spill] sm:$0xff] }
 0x33c   : > { %vm1588_vm1 = vweird.f32 %v6675_v62  ;;  %v6809_v50 = vmul.f32 %v1768_v8, %v1096_v45  ;;  %vm1589_vm9 = vweird.f32 %v6747_v25  ;;  %v1031_v47 = vmul.f32 %v6458_v24, %v5747_v30 }
 0x33d   : > { %v6766_v33 = vpop.permute.xlu1 %2475  ;;  %v2110_v1 = vpop.permute.xlu0 %2109  ;;  %v1551_v38 = vsel %vm6817_vm4, %v6705_v28, %v1547_v52  ;;  %v1587_v7 = vadd.f32 %v6747_v25, %v1586_v44  ;;  %v2045_v23 = vmul.f32 %v5929_v48, %v1965_v54  ;;  %v2046_v19 = vmul.f32 %v5929_v48, %v1966_v14  ;;  %vm6855_vm4 = vmor %vm1588_vm1, %vm1589_vm9 }
 0x33e   : > { %v1694_v30 = vadd.f32 0.001143296, %v1693_v2  ;;  %v1613_v24 = vmul.f32 3.8918573e-05, %v6800_v0  ;;  %v1661_v8 = vmul.f32 %v1660_v59, %v6596_v61  ;;  %v1879_v28 = vmul.f32 %v5937_v40, %v6289_v15 }
 0x33f   : > { %v2094_v27 = vpop.permute.xlu2 %2093  ;;  %v1878_v48 = vmul.f32 %v5937_v40, %v6268_v53  ;;  %v1556_v44 = vsel %vm6791_vm10, %v1555_v17, %v1551_v38  ;;  %v1571_v2 = vadd.f32 1.1283791, %v1570_v60  ;;  %v1592_v59 = vand.u32 2147483647, %v6675_v62 }
 0x340   : > { %v2133_v41 = vsel %vm2123_vm8, %v2110_v1, %v2094_v27  ;;  %v2125_v29 = vsel %vm2123_vm8, %v2094_v27, %v2110_v1  ;;  %v1642_v1 = vmul.f32 2.1237322e-06, %v6596_v61  ;;  %v1594_v40 = vand.u32 2147483648, %v6675_v62 }
 0x341   : > { %v2146_v9 = vsel %vm1819_vm2, %v2133_v41, 0.0  ;;  %v2228_v52 = vmul.f32 %v9176_v43, %v2125_v29  ;;  %v1591_v27 = vsel %vm6855_vm4, %v6747_v25, %v1587_v7  ;;  %v6865_v12 = vadd.f32 %v6484_v10, %v1031_v47 }
 0x342   : > { %3209 = vrot.lane.b32.xlu2 %v6516_v37, %s5408_s21  ;;  %v2227_v16 = vmul.f32 %v9176_v43, %v2146_v9  ;;  %v2061_v60 = vadd.f32 %v2045_v23, %v1878_v48  ;;  %v2062_v54 = vadd.f32 %v2046_v19, %v1879_v28  ;;  %v1695_v14 = vmul.f32 %v1694_v30, %v6770_v46  ;;  %v9179_v30 = vld [vmem:[#allocation45_spill] sm:$0xff] }
 0x343   : > { %1932 = vrot.lane.b32.xlu0 %v6737_v57, %s5401_s30  ;;  %2481 = vrot.lane.b32.xlu1 %v6737_v57, %s5403_s15  ;;  %v1614_v17 = vadd.f32 0.001143296, %v1613_v24  ;;  %v1643_v41 = vadd.f32 0.00028619796, %v1642_v1  ;;  %v6868_v58 = vadd.f32 1.0, %v1661_v8  ;;  %v1595_v28 = vor.u32 1.1754944e-38, %v1594_v40 }
 0x344   : > { %v2243_v38 = vadd.f32 %v2227_v16, %v2061_v60  ;;  %v2244_v62 = vadd.f32 %v2228_v52, %v2062_v54  ;;  %v9180_v16 = vld [vmem:[#allocation53_spill] sm:$0xff]  ;;  %vm1593_vm1 = vcmp.eq.f32.partialorder %v1592_v59, 8.507059e+37  ;;  %vm9182_vm9 = vcmp.lt.s32.totalorder %v6523_v42, 127 }
 0x345   : > { %v6806_v39 = vpop.permute.xlu1 %2657  ;;  %v2292_v31 = vpop.permute.xlu0 %2291  ;;  %v1644_v48 = vmul.f32 %v1643_v41, %v6596_v61  ;;  %v1615_v45 = vmul.f32 %v1614_v17, %v6800_v0  ;;  %v1596_v40 = vsel %vm1593_vm1, %v1595_v28, %v1591_v27  ;;  %v6904_v41 = vmul.f32 0.70710677, %v6865_v12  ;;  %vm9183_vm0 = vmmov %vm9182_vm9 }
 0x346   : > { %5332 = vrcp.f32 %v6868_v58  ;;  %vm9190_vm14 = vcmp.lt.s32.totalorder %v6523_v42, 17  ;;  %vm1668_vm1 = vweird.f32 %v6868_v58 }
 0x347   : > { %v2276_v29 = vpop.permute.xlu2 %2275  ;;  %v1616_v17 = vadd.f32 0.014752088, %v1615_v45  ;;  %vm9191_vm10 = vmmov %vm9190_vm14 }
 0x348   : > { %v2307_v43 = vsel %vm9072_vm13, %v2276_v29, %v2292_v31  ;;  %v2315_v10 = vsel %vm9072_vm13, %v2292_v31, %v2276_v29  ;;  %v1557_v29 = vmul.f32 %v1556_v44, %v6775_v6 }
 0x349   : > { %v2330_v47 = vsel %vm6642_vm7, %v2315_v10, 0.0  ;;  %v2331_v7 = vsel %vm6631_vm15, %v2307_v43, 0.0  ;;  %v1696_v43 = vadd.f32 0.014752088, %v1695_v14 }
 0x34a   : > { %1916 = vrot.lane.b32.xlu2 %v6809_v50, %s5401_s30  ;;  %v2411_v24 = vmul.f32 %v9179_v30, %v2330_v47  ;;  %v2412_v1 = vmul.f32 %v9179_v30, %v2331_v7  ;;  %v9181_v47 = vld [vmem:[#allocation69_spill] sm:$0xff] }
 0x34b   : > { %2099 = vrot.lane.b32.xlu0 %v6809_v50, %s5402_s14  ;;  %2845 = vrot.lane.b32.xlu1 %v6737_v57, %s5406_s19  ;;  %v1572_v7 = vmul.f32 %v1571_v2, %v9181_v47  ;;  %v1697_v14 = vmul.f32 %v1696_v43, %v6770_v46  ;;  %v1720_v2 = vmul.f32 %v6904_v41, %v6904_v41 }
 0x34c   : > { %v2427_v60 = vadd.f32 %v2411_v24, %v2243_v38  ;;  %v2428_v54 = vadd.f32 %v2412_v1, %v2244_v62  ;;  %v5103_v62 = vclamps-f32 %v1557_v29, 1.0  ;;  %v6934_v28 = vpop.eup %5332  ;;  %v9185_v29 = vld [vmem:[#allocation66_spill] sm:$0xff] }
 0x34d   : > { %v6870_v9 = vpop.permute.xlu1 %2823  ;;  %v2460_v25 = vpop.permute.xlu0 %2459  ;;  %v1597_v6 = vmul.f32 %v1596_v40, %v1572_v7  ;;  %v1098_v40 = vmul.f32 0.5, %v9185_v29  ;;  %v1664_v47 = vmul.f32 %v6934_v28, %v6868_v58  ;;  %v9187_v29 = vld [vmem:[#allocation67_spill] sm:$0xff]  ;;  %vm1669_vm4 = vweird.f32 %v6934_v28 }
 0x34e   : > { %v2491_v23 = vsel %vm9071_vm12, %v2460_v25, %v6766_v33  ;;  %v2499_v19 = vsel %vm9071_vm12, %v6766_v33, %v2460_v25 }
 0x34f   : > { %v2512_v31 = vsel %vm6546_vm3, %v2499_v19, 0.0  ;;  %v2513_v8 = vsel %vm6559_vm5, %v2491_v23, 0.0  ;;  %v1645_v23 = vadd.f32 0.0036580483, %v1644_v48  ;;  %v6908_v19 = vpop.permute.xlu2 %2839  ;;  %v1617_v48 = vmul.f32 %v1616_v17, %v6800_v0 }
 0x350   : > { %v2593_v52 = vmul.f32 %v9180_v16, %v2512_v31  ;;  %v2594_v33 = vmul.f32 %v9180_v16, %v2513_v8  ;;  %v9184_v31 = vld [vmem:[#allocation54_spill] sm:$0xff]  ;;  %v1770_v16 = vadd.f32 1.0, %v5103_v62  ;;  %v5104_v45 = vclamps-f32 %v1597_v6, 1.0 }
 0x351   : > { %v1646_v1 = vmul.f32 %v1645_v23, %v6596_v61 }
 0x352   : > { %2281 = vrot.lane.b32.xlu2 %v6809_v50, %s5404_s17  ;;  %v2609_v10 = vadd.f32 %v2593_v52, %v2427_v60  ;;  %v2610_v25 = vadd.f32 %v2594_v33, %v2428_v54  ;;  %v1698_v60 = vadd.f32 0.112945676, %v1697_v14  ;;  %v6941_v54 = vmin.f32 %v1720_v2, 16.0  ;;  %v9186_v2 = vld [vmem:[#allocation68_spill] sm:$0xff] }
 0x353   : > { %2297 = vrot.lane.b32.xlu0 %v6737_v57, %s5404_s17  ;;  %3029 = vrot.lane.b32.xlu1 %v6737_v57, %s5407_s20  ;;  %v1647_v43 = vadd.f32 0.05243302, %v1646_v1  ;;  %v6948_v62 = vmul.f32 %v1770_v16, %v1098_v40  ;;  %v1665_v14 = vsub.f32 1.0, %v1664_v47  ;;  %v9188_v40 = vld [vmem:[#allocation13_spill] sm:$0xff] }
 0x354   : > { %v1733_v6 = vmul.f32 3.8918573e-05, %v6941_v54 }
 0x355   : > { %v6910_v59 = vpop.permute.xlu1 %3007  ;;  %v2642_v38 = vpop.permute.xlu0 %2641 }
 0x356   : > { %v2673_v44 = vsel %vm9182_vm9, %v2642_v38, %v6806_v39  ;;  %v2681_v27 = vsel %vm9183_vm0, %v6806_v39, %v2642_v38  ;;  %v1618_v38 = vadd.f32 0.112945676, %v1617_v48  ;;  %vm7004_vm9 = vmor %vm1668_vm1, %vm1669_vm4  ;;  %vm9200_vm4 = vcmp.lt.s32.totalorder %v6523_v42, 127 }
 0x357   : > { %v2694_v30 = vsel %vm6621_vm11, %v2673_v44, 0.0  ;;  %v2695_v24 = vsel %vm6631_vm15, %v2681_v27, 0.0  ;;  %v6946_v7 = vpop.permute.xlu2 %3023  ;;  %v1602_v44 = vmul.f32 2.1237322e-06, %v6800_v0  ;;  %v1648_v27 = vmul.f32 %v1647_v43, %v6596_v61  ;;  %vm9201_vm1 = vmmov %vm9200_vm4 }
 0x358   : > { %v2775_v8 = vmul.f32 %v9184_v31, %v2694_v30  ;;  %v2776_v39 = vmul.f32 %v9184_v31, %v2695_v24  ;;  %v1099_v30 = vmul.f32 0.5, %v9186_v2  ;;  %v1619_v24 = vmul.f32 %v1618_v38, %v6800_v0  ;;  %v9189_v2 = vld [vmem:[#allocation65_spill] sm:$0xff] }
 0x359   : > { %v1682_v31 = vmul.f32 2.1237322e-06, %v6770_v46  ;;  %v1603_v48 = vadd.f32 0.00028619796, %v1602_v44  ;;  %v1649_v16 = vadd.f32 0.18741608, %v1648_v27  ;;  %v1880_v43 = vmul.f32 %v9188_v40, %v9187_v29 }
 0x35a   : > { %2647 = vrot.lane.b32.xlu2 %v6809_v50, %s5405_s18  ;;  %v6937_v52 = vadd.f32 %v2775_v8, %v2609_v10  ;;  %v6939_v33 = vadd.f32 %v2776_v39, %v2610_v25  ;;  %v1771_v10 = vadd.f32 1.0, %v5104_v45  ;;  %v1699_v25 = vmul.f32 %v1698_v60, %v6770_v46 }
 0x35b   : > { %2465 = vrot.lane.b32.xlu0 %v6809_v50, %s5403_s15  ;;  %3195 = vrot.lane.b32.xlu1 %v6809_v50, %s5408_s21  ;;  %v1734_v39 = vadd.f32 0.001143296, %v1733_v6  ;;  %v1666_v45 = vmul.f32 %v6934_v28, %v1665_v14  ;;  %v1620_v11 = vadd.f32 0.4994258, %v1619_v24  ;;  %v1881_v38 = vmul.f32 %v9188_v40, %v9189_v2  ;;  %v9192_v24 = vld [vmem:[#allocation18_spill] sm:$0xff] }
 0x35c   : > { %v6962_v1 = vmul.f32 %v1771_v10, %v1099_v30  ;;  %v1700_v8 = vadd.f32 0.4994258, %v1699_v25 }
 0x35d   : > { %v2112_v23 = vpop.permute.xlu1 %2111  ;;  %v1929_v17 = vpop.permute.xlu0 %1928 }
 0x35f   : > { %v1913_v60 = vpop.permute.xlu2 %1912 }
 0x360   : > { %v1943_v10 = vsel %vm9190_vm14, %v1913_v60, %v1929_v17  ;;  %v1951_v25 = vsel %vm9191_vm10, %v1929_v17, %v1913_v60  ;;  %v9193_v60 = vld [vmem:[#allocation25_spill] sm:$0xff]  ;;  %vm9074_vm14 = vcmp.lt.s32.totalorder %v6523_v42, 113  ;;  %vm9073_vm10 = vcmp.lt.s32.totalorder %v6523_v42, 112 }
 0x361   : > { %v1967_v44 = vsel %vm6567_vm6, %v1951_v25, 0.0  ;;  %v1968_v27 = vsel %vm6559_vm5, %v1943_v10, 0.0  ;;  %v1650_v10 = vmul.f32 %v1649_v16, %v6596_v61  ;;  %v1667_v25 = vadd.f32 %v6934_v28, %v1666_v45 }
 0x362   : > { %3211 = vrot.lane.b32.xlu2 %v6737_v57, %s5408_s21  ;;  %v2047_v29 = vmul.f32 %v9192_v24, %v1967_v44  ;;  %v2048_v40 = vmul.f32 %v9192_v24, %v1968_v27  ;;  %v1674_v44 = vand.u32 2147483648, %v6868_v58  ;;  %v1701_v61 = vmul.f32 %v1700_v8, %v6770_v46 }
 0x363   : > { %2663 = vrot.lane.b32.xlu0 %v6737_v57, %s5405_s18  ;;  %1918 = vrot.lane.b32.xlu1 %v6948_v62, %s5401_s30  ;;  %v1672_v16 = vand.u32 2147483647, %v6868_v58  ;;  %v1683_v45 = vadd.f32 0.00028619796, %v1682_v31  ;;  %v1735_v8 = vmul.f32 %v1734_v39, %v6941_v54 }
 0x364   : > { %v2063_v27 = vadd.f32 %v2047_v29, %v1880_v43  ;;  %v1604_v29 = vmul.f32 %v1603_v48, %v6800_v0  ;;  %v1675_v31 = vor.u32 1.1754944e-38, %v1674_v44  ;;  %v7017_v5 = vadd.f32 1.0, %v1701_v61  ;;  %v9197_v44 = vld [vmem:[#allocation29_spill] sm:$0xff] }
 0x365   : > { %v6968_v47 = vpop.permute.xlu1 %2477  ;;  %v2096_v6 = vpop.permute.xlu0 %2095  ;;  %vm1673_vm0 = vcmp.eq.f32.partialorder %v1672_v16, 8.507059e+37  ;;  %v1736_v61 = vadd.f32 0.014752088, %v1735_v8 }
 0x366   : > { %v2126_v14 = vsel %vm2123_vm8, %v2096_v6, %v2112_v23  ;;  %v2134_v30 = vsel %vm2123_vm8, %v2112_v23, %v2096_v6  ;;  %v1621_v6 = vmul.f32 %v1620_v11, %v6800_v0  ;;  %v1671_v11 = vsel %vm7004_vm9, %v6934_v28, %v1667_v25 }
 0x367   : > { %v2148_v17 = vsel %vm1819_vm2, %v2134_v30, 0.0  ;;  %v2230_v2 = vmul.f32 %v9193_v60, %v2126_v14  ;;  %v2064_v14 = vadd.f32 %v2048_v40, %v1881_v38  ;;  %v2278_v43 = vpop.permute.xlu2 %2277  ;;  %v1676_v25 = vsel %vm1673_vm0, %v1675_v31, %v1671_v11 }
 0x368   : > { %v2229_v23 = vmul.f32 %v9193_v60, %v2148_v17  ;;  %v1651_v60 = vadd.f32 1.1283791, %v1650_v10  ;;  %v7015_v58 = vadd.f32 1.0, %v1621_v6  ;;  %v1684_v10 = vmul.f32 %v1683_v45, %v6770_v46 }
 0x369   : > { %v2246_v17 = vadd.f32 %v2230_v2, %v2064_v14  ;;  %v1605_v16 = vadd.f32 0.0036580483, %v1604_v29  ;;  %vm9070_vm9 = vcmp.lt.s32.totalorder %v6523_v42, 111 }
 0x36a   : > { %1934 = vrot.lane.b32.xlu2 %v6962_v1, %s5401_s30  ;;  %v2245_v24 = vadd.f32 %v2229_v23, %v2063_v27  ;;  %v9196_v23 = vld [vmem:[#allocation71_spill] sm:$0xff]  ;;  %5334 = vrcp.f32 %v7015_v58 }
 0x36b   : > { %2829 = vrot.lane.b32.xlu0 %v6809_v50, %s5406_s19  ;;  %2283 = vrot.lane.b32.xlu1 %v6948_v62, %s5404_s17  ;;  %v1652_v6 = vmul.f32 %v1651_v60, %v9196_v23  ;;  %5336 = vrcp.f32 %v7017_v5  ;;  %v1685_v60 = vadd.f32 0.0036580483, %v1684_v10 }
 0x36d   : > { %v7011_v38 = vpop.permute.xlu1 %2659  ;;  %v2294_v40 = vpop.permute.xlu0 %2293  ;;  %v1677_v45 = vmul.f32 %v1676_v25, %v1652_v6 }
 0x36e   : > { %v2308_v2 = vsel %vm9072_vm13, %v2278_v43, %v2294_v40  ;;  %v2316_v28 = vsel %vm9072_vm13, %v2294_v40, %v2278_v43  ;;  %v1737_v40 = vmul.f32 %v1736_v61, %v6941_v54 }
 0x36f   : > { %v2332_v39 = vsel %vm6642_vm7, %v2316_v28, 0.0  ;;  %v2333_v48 = vsel %vm6631_vm15, %v2308_v2, 0.0  ;;  %v2842_v43 = vpop.permute.xlu2 %2841  ;;  %v1606_v2 = vmul.f32 %v1605_v16, %v6800_v0 }
 0x370   : > { %v2413_v27 = vmul.f32 %v9197_v44, %v2332_v39  ;;  %v2414_v14 = vmul.f32 %v9197_v44, %v2333_v48  ;;  %v7056_v25 = vpop.eup %5334  ;;  %v1686_v39 = vmul.f32 %v1685_v60, %v6770_v46  ;;  %v9198_v44 = vld [vmem:[#allocation37_spill] sm:$0xff] }
 0x371   : > { %v7065_v6 = vpop.eup %5336  ;;  %v1607_v61 = vadd.f32 0.05243302, %v1606_v2  ;;  %v1624_v16 = vmul.f32 %v7056_v25, %v7015_v58  ;;  %vm1629_vm0 = vweird.f32 %v7056_v25 }
 0x372   : > { %2101 = vrot.lane.b32.xlu2 %v6948_v62, %s5402_s14  ;;  %v2429_v30 = vadd.f32 %v2413_v27, %v2245_v24  ;;  %v2430_v11 = vadd.f32 %v2414_v14, %v2246_v17  ;;  %v5106_v24 = vclamps-f32 %v1677_v45, 1.0 }
 0x373   : > { %3013 = vrot.lane.b32.xlu0 %v6809_v50, %s5407_s20  ;;  %2649 = vrot.lane.b32.xlu1 %v6948_v62, %s5405_s18 }
 0x374   : > { %v1773_v45 = vadd.f32 1.0, %v5106_v24  ;;  %v1625_v24 = vsub.f32 1.0, %v1624_v16  ;;  %v9202_v16 = vld [vmem:[#allocation41_spill] sm:$0xff] }
 0x375   : > { %v2826_v31 = vpop.permute.xlu1 %2825  ;;  %v2462_v28 = vpop.permute.xlu0 %2461 }
 0x376   : > { %v7044_v8 = vsel %vm9074_vm14, %v2826_v31, %v2842_v43  ;;  %v7048_v29 = vsel %vm9074_vm14, %v2842_v43, %v2826_v31  ;;  %v2492_v17 = vsel %vm9071_vm12, %v2462_v28, %v6968_v47  ;;  %v2500_v10 = vsel %vm9071_vm12, %v6968_v47, %v2462_v28 }
 0x377   : > { %v2514_v48 = vsel %vm6546_vm3, %v2500_v10, 0.0  ;;  %v2515_v23 = vsel %vm6559_vm5, %v2492_v17, 0.0  ;;  %v1738_v47 = vadd.f32 0.112945676, %v1737_v40  ;;  %v1687_v31 = vadd.f32 0.05243302, %v1686_v39 }
 0x378   : > { %v2595_v27 = vmul.f32 %v9198_v44, %v2514_v48  ;;  %v2596_v14 = vmul.f32 %v9198_v44, %v2515_v23  ;;  %v1704_v28 = vmul.f32 %v7065_v6, %v7017_v5  ;;  %v9199_v17 = vld [vmem:[#allocation70_spill] sm:$0xff]  ;;  %v3026_v48 = vpop.permute.xlu2 %3025  ;;  %v1608_v40 = vmul.f32 %v1607_v61, %v6800_v0 }
 0x379   : > { %v1101_v10 = vmul.f32 0.5, %v9199_v17  ;;  %v1739_v44 = vmul.f32 %v1738_v47, %v6941_v54  ;;  %v1688_v47 = vmul.f32 %v1687_v31, %v6770_v46 }
 0x37a   : > { %2299 = vrot.lane.b32.xlu2 %v6962_v1, %s5404_s17  ;;  %v2611_v60 = vadd.f32 %v2595_v27, %v2429_v30  ;;  %v2612_v43 = vadd.f32 %v2596_v14, %v2430_v11  ;;  %v1705_v61 = vsub.f32 1.0, %v1704_v28  ;;  %v1609_v28 = vadd.f32 0.18741608, %v1608_v40 }
 0x37b   : > { %2117 = vrot.lane.b32.xlu0 %v6962_v1, %s5402_s14  ;;  %3213 = vrot.lane.b32.xlu1 %v6962_v1, %s5408_s21  ;;  %v7089_v39 = vmul.f32 %v1773_v45, %v1101_v10  ;;  %v1740_v31 = vadd.f32 0.4994258, %v1739_v44 }
 0x37c   : > { %v1610_v35 = vmul.f32 %v1609_v28, %v6800_v0  ;;  %v1634_v0 = vand.u32 2147483648, %v7015_v58 }
 0x37d   : > { %v3010_v23 = vpop.permute.xlu1 %3009  ;;  %v2644_v11 = vpop.permute.xlu0 %2643  ;;  %v1741_v36 = vmul.f32 %v1740_v31, %v6941_v54 }
 0x37e   : > { %v7083_v2 = vsel %vm9073_vm10, %v3010_v23, %v3026_v48  ;;  %v7087_v30 = vsel %vm9073_vm10, %v3026_v48, %v3010_v23  ;;  %v2674_v27 = vsel %vm9200_vm4, %v2644_v11, %v7011_v38  ;;  %v2682_v14 = vsel %vm9201_vm1, %v7011_v38, %v2644_v11 }
 0x37f   : > { %v2696_v17 = vsel %vm6621_vm11, %v2674_v27, 0.0  ;;  %v2697_v48 = vsel %vm6631_vm15, %v2682_v14, 0.0  ;;  %v1722_v38 = vmul.f32 2.1237322e-06, %v6941_v54  ;;  %v1626_v23 = vmul.f32 %v7056_v25, %v1625_v24 }
 0x380   : > { %v2777_v45 = vmul.f32 %v9202_v16, %v2696_v17  ;;  %v2778_v10 = vmul.f32 %v9202_v16, %v2697_v48  ;;  %v1689_v14 = vadd.f32 0.18741608, %v1688_v47  ;;  %v1706_v17 = vmul.f32 %v7065_v6, %v1705_v61  ;;  %v3192_v48 = vpop.permute.xlu2 %3191 }
 0x381   : > { %v1723_v51 = vadd.f32 0.00028619796, %v1722_v38  ;;  %v1627_v40 = vadd.f32 %v7056_v25, %v1626_v23  ;;  %vm1709_vm4 = vweird.f32 %v7065_v6  ;;  %v1712_v61 = vand.u32 2147483647, %v7017_v5 }
 0x382   : > { %2467 = vrot.lane.b32.xlu2 %v6948_v62, %s5403_s15  ;;  %v7112_v11 = vadd.f32 %v2777_v45, %v2611_v60  ;;  %v7114_v27 = vadd.f32 %v2778_v10, %v2612_v43  ;;  %v1690_v24 = vmul.f32 %v1689_v14, %v6770_v46  ;;  %v1707_v47 = vadd.f32 %v7065_v6, %v1706_v17 }
 0x383   : > { %2483 = vrot.lane.b32.xlu0 %v6962_v1, %s5403_s15  ;;  %2119 = vrot.lane.b32.xlu1 %v7089_v39, %s5402_s14  ;;  %v1714_v45 = vand.u32 2147483648, %v7017_v5  ;;  %vm1628_vm1 = vweird.f32 %v7015_v58  ;;  %v1632_v10 = vand.u32 2147483647, %v7015_v58  ;;  %v7145_v46 = vadd.f32 1.0, %v1741_v36 }
 0x384   : > { %vm1630_vm12 = vmor %vm1628_vm1, %vm1629_vm0  ;;  %v1611_v31 = vadd.f32 1.1283791, %v1610_v35  ;;  %v1724_v23 = vmul.f32 %v1723_v51, %v6941_v54  ;;  %v1635_v14 = vor.u32 1.1754944e-38, %v1634_v0  ;;  %vm1713_vm10 = vcmp.eq.f32.partialorder %v1712_v61, 8.507059e+37  ;;  %v9207_v0 = vld [vmem:[#allocation28_spill] sm:$0xff] }
 0x385   : > { %v1915_v16 = vpop.permute.xlu1 %1914  ;;  %v3208_v44 = vpop.permute.xlu0 %3207  ;;  %v1631_v58 = vsel %vm1630_vm12, %v7056_v25, %v1627_v40  ;;  %v1715_v36 = vor.u32 1.1754944e-38, %v1714_v45  ;;  %vm1633_vm14 = vcmp.eq.f32.partialorder %v1632_v10, 8.507059e+37  ;;  %5338 = vrcp.f32 %v7145_v46  ;;  %v9208_v10 = vld [vmem:[#allocation16_spill] sm:$0xff] }
 0x386   : > { %v7124_v60 = vsel %vm9070_vm9, %v3192_v48, %v3208_v44  ;;  %v7128_v43 = vsel %vm9070_vm9, %v3208_v44, %v3192_v48  ;;  %vm1708_vm9 = vweird.f32 %v7017_v5  ;;  %v1691_v5 = vadd.f32 1.1283791, %v1690_v24 }
 0x387   : > { %vm7149_vm13 = vmor %vm1708_vm9, %vm1709_vm4  ;;  %v1636_v44 = vsel %vm1633_vm14, %v1635_v14, %v1631_v58  ;;  %vm9205_vm9 = vcmp.lt.s32.totalorder %v6523_v42, 17  ;;  %v1612_v51 = vmul.f32 %v1611_v31, %v6764_v56  ;;  %v1883_v61 = vmul.f32 %v9207_v0, %v6516_v37 }
 0x388   : > { %v1711_v28 = vsel %vm7149_vm13, %v7065_v6, %v1707_v47  ;;  %v1931_v17 = vpop.permute.xlu2 %1930  ;;  %vm9206_vm12 = vmmov %vm9205_vm9  ;;  %v1882_v45 = vmul.f32 %v9207_v0, %v6492_v55  ;;  %v1692_v56 = vmul.f32 %v1691_v5, %v6742_v13  ;;  %v1725_v31 = vadd.f32 0.0036580483, %v1724_v23 }
 0x389   : > { %v1944_v35 = vsel %vm9205_vm9, %v1915_v16, %v1931_v17  ;;  %v1952_v25 = vsel %vm9206_vm12, %v1931_v17, %v1915_v16  ;;  %v1716_v6 = vsel %vm1713_vm10, %v1715_v36, %v1711_v28  ;;  %v1637_v58 = vmul.f32 %v1636_v44, %v1612_v51 }
 0x38a   : > { %2665 = vrot.lane.b32.xlu2 %v6962_v1, %s5405_s18  ;;  %v1969_v24 = vsel %vm6567_vm6, %v1952_v25, 0.0  ;;  %v1970_v47 = vsel %vm6559_vm5, %v1944_v35, 0.0  ;;  %v1717_v55 = vmul.f32 %v1716_v6, %v1692_v56  ;;  %v1726_v36 = vmul.f32 %v1725_v31, %v6941_v54  ;;  %v9209_v6 = vld [vmem:[#allocation31_spill] sm:$0xff] }
 0x38b   : > { %2847 = vrot.lane.b32.xlu0 %v6962_v1, %s5406_s19  ;;  %2485 = vrot.lane.b32.xlu1 %v7089_v39, %s5403_s15  ;;  %v2049_v38 = vmul.f32 %v9208_v10, %v1969_v24  ;;  %v2050_v16 = vmul.f32 %v9208_v10, %v1970_v47  ;;  %v7181_v14 = vpop.eup %5338  ;;  %v5105_v17 = vclamps-f32 %v1637_v58, 1.0  ;;  %v1100_v56 = vmul.f32 0.5, %v6751_v21 }
 0x38c   : > { %v5107_v44 = vclamps-f32 %v1717_v55, 1.0  ;;  %v1727_v0 = vadd.f32 0.05243302, %v1726_v36  ;;  %vm9211_vm14 = vcmp.lt.s32.totalorder %v6523_v42, 113  ;;  %vm9215_vm4 = vcmp.lt.s32.totalorder %v6523_v42, 112 }
 0x38d   : > { %v2280_v48 = vpop.permute.xlu1 %2279  ;;  %v2114_v40 = vpop.permute.xlu0 %2113  ;;  %v2065_v37 = vadd.f32 %v2049_v38, %v1882_v45  ;;  %v2066_v28 = vadd.f32 %v2050_v16, %v1883_v61  ;;  %v1744_v61 = vmul.f32 %v7181_v14, %v7145_v46  ;;  %v1772_v45 = vadd.f32 1.0, %v5105_v17  ;;  %vm9212_vm10 = vmmov %vm9211_vm14 }
 0x38e   : > { %v1774_v16 = vadd.f32 1.0, %v5107_v44  ;;  %v2855_v31 = vsel %vm9211_vm14, %v6870_v9, %v6908_v19  ;;  %v2863_v58 = vsel %vm9212_vm10, %v6908_v19, %v6870_v9  ;;  %v1728_v55 = vmul.f32 %v1727_v0, %v6941_v54  ;;  %vm9218_vm12 = vmmov %vm9215_vm4 }
 0x38f   : > { %v1745_v36 = vsub.f32 1.0, %v1744_v61  ;;  %v7214_v17 = vmul.f32 %v1772_v45, %v1100_v56  ;;  %v3047_v9 = vsel %vm9215_vm4, %v6946_v7, %v6910_v59  ;;  %vm9216_vm1 = vcmp.lt.s32.totalorder %v6523_v42, 15  ;;  %v9219_v61 = vld [vmem:[#allocation36_spill] sm:$0xff] }
 0x390   : > { %v2098_v35 = vpop.permute.xlu2 %2097  ;;  %vm9217_vm9 = vmmov %vm9216_vm1  ;;  %v9220_v56 = vld [vmem:[#allocation60_spill] sm:$0xff]  ;;  %vm1749_vm14 = vweird.f32 %v7181_v14  ;;  %vm9222_vm10 = vcmp.lt.s32.totalorder %v6523_v42, 1 }
 0x391   : > { %v2127_v13 = vsel %vm2123_vm8, %v2098_v35, %v2114_v40  ;;  %v2135_v23 = vsel %vm2123_vm8, %v2114_v40, %v2098_v35  ;;  %v9210_v40 = vld [vmem:[#allocation72_spill] sm:$0xff]  ;;  %vm9223_vm4 = vmmov %vm9222_vm10 }
 0x392   : > { %2831 = vrot.lane.b32.xlu2 %v6948_v62, %s5406_s19  ;;  %v2150_v51 = vsel %vm1819_vm2, %v2135_v23, 0.0  ;;  %v2232_v24 = vmul.f32 %v9209_v6, %v2127_v13  ;;  %vm1822_vm13 = vcmp.lt.s32.totalorder %v9210_v40, 240  ;;  %v9344_v40 = vld [vmem:[#allocation61_spill] sm:$0xff] }
 0x393   : > { %3031 = vrot.lane.b32.xlu0 %v6962_v1, %s5407_s20  ;;  %2849 = vrot.lane.b32.xlu1 %v7089_v39, %s5406_s19  ;;  %v2231_v47 = vmul.f32 %v9209_v6, %v2150_v51  ;;  %vm7220_vm0 = vmand %vm1822_vm13, %vm6559_vm5  ;;  %v3061_v0 = vsel %vm1822_vm13, %v3047_v9, 0.0  ;;  %v9221_v9 = vld [vmem:[#allocation64_spill] sm:$0xff] }
 0x394   : > { %v2248_v10 = vadd.f32 %v2232_v24, %v2066_v28  ;;  %v1102_v28 = vmul.f32 0.5, %v6725_v49  ;;  %v2879_v35 = vsel %vm7220_vm0, %v2863_v58, 0.0 }
 0x395   : > { %v7184_v25 = vpop.permute.xlu1 %2843  ;;  %v2480_v5 = vpop.permute.xlu0 %2479  ;;  %v2247_v38 = vadd.f32 %v2231_v47, %v2065_v37  ;;  %v2878_v37 = vsel %vm6546_vm3, %v2855_v31, 0.0  ;;  %v3039_v47 = vsel %vm9218_vm12, %v6910_v59, %v6946_v7  ;;  %v2960_v58 = vmul.f32 %v9220_v56, %v2879_v35 }
 0x396   : > { %v7238_v51 = vmul.f32 %v1774_v16, %v1102_v28  ;;  %v1729_v16 = vadd.f32 0.18741608, %v1728_v55  ;;  %v2959_v31 = vmul.f32 %v9220_v56, %v2878_v37  ;;  %v1746_v59 = vmul.f32 %v7181_v14, %v1745_v36 }
 0x397   : > { %v2976_v37 = vadd.f32 %v2960_v58, %v6939_v33  ;;  %vm1748_vm12 = vweird.f32 %v7145_v46  ;;  %v1752_v56 = vand.u32 2147483647, %v7145_v46 }
 0x398   : > { %v2296_v19 = vpop.permute.xlu2 %2295  ;;  %v2975_v55 = vadd.f32 %v2959_v31, %v6937_v52  ;;  %v1730_v35 = vmul.f32 %v1729_v16, %v6941_v54  ;;  %v1747_v36 = vadd.f32 %v7181_v14, %v1746_v59 }
 0x399   : > { %v2309_v13 = vsel %vm9216_vm1, %v2280_v48, %v2296_v19  ;;  %v2317_v23 = vsel %vm9217_vm9, %v2296_v19, %v2280_v48  ;;  %v3141_v19 = vmul.f32 %v9221_v9, %v3039_v47  ;;  %vm9224_vm1 = vcmp.lt.s32.totalorder %v6523_v42, 113 }
 0x39a   : > { %3015 = vrot.lane.b32.xlu2 %v6948_v62, %s5407_s20  ;;  %v2334_v6 = vsel %vm6642_vm7, %v2317_v23, 0.0  ;;  %v2335_v24 = vsel %vm6631_vm15, %v2309_v13, 0.0  ;;  %v3142_v13 = vmul.f32 %v9221_v9, %v3061_v0  ;;  %vm9225_vm9 = vmmov %vm9224_vm1 }
 0x39b   : > { %3197 = vrot.lane.b32.xlu0 %v6948_v62, %s5408_s21  ;;  %3215 = vrot.lane.b32.xlu1 %v7089_v39, %s5408_s21  ;;  %v2415_v45 = vmul.f32 %v9219_v61, %v2334_v6  ;;  %v2416_v48 = vmul.f32 %v9219_v61, %v2335_v24  ;;  %v7266_v24 = vadd.f32 %v3141_v19, %v2975_v55 }
 0x39c   : > { %v7268_v61 = vadd.f32 %v3142_v13, %v2976_v37 }
 0x39d   : > { %v7228_v49 = vpop.permute.xlu1 %3027  ;;  %v2662_v44 = vpop.permute.xlu0 %2661  ;;  %v2432_v7 = vadd.f32 %v2416_v48, %v2248_v10  ;;  %v2431_v28 = vadd.f32 %v2415_v45, %v2247_v38  ;;  %v1754_v45 = vand.u32 2147483648, %v7145_v46  ;;  %v9226_v48 = vld [vmem:[#allocation46_spill] sm:$0xff] }
 0x39f   : > { %v1755_v9 = vor.u32 1.1754944e-38, %v1754_v45 }
 0x3a0   : > { %v2464_v23 = vpop.permute.xlu2 %2463 }
 0x3a1   : > { %v2493_v10 = vsel %vm9222_vm10, %v2464_v23, %v2480_v5  ;;  %v2501_v52 = vsel %vm9223_vm4, %v2480_v5, %v2464_v23  ;;  %vm1750_vm10 = vmor %vm1748_vm12, %vm1749_vm14  ;;  %vm1753_vm4 = vcmp.eq.f32.partialorder %v1752_v56, 8.507059e+37 }
 0x3a2   : > { %1920 = vrot.lane.b32.xlu2 %v7214_v17, %s5401_s30  ;;  %v2516_v33 = vsel %vm6546_vm3, %v2501_v52, 0.0  ;;  %v2517_v54 = vsel %vm6559_vm5, %v2493_v10, 0.0  ;;  %v1751_v59 = vsel %vm1750_vm10, %v7181_v14, %v1747_v36  ;;  %v9231_v52 = vld [vmem:[#allocation47_spill] sm:$0xff]  ;;  %vm9234_vm10 = vcmp.lt.s32.totalorder %v6523_v42, 111 }
 0x3a3   : > { %1922 = vrot.lane.b32.xlu1 %v7238_v51, %s5401_s30  ;;  %1936 = vrot.lane.b32.xlu0 %v7089_v39, %s5401_s30  ;;  %v2597_v16 = vmul.f32 %v9226_v48, %v2516_v33  ;;  %v2598_v5 = vmul.f32 %v9226_v48, %v2517_v54  ;;  %v9232_v33 = vld [vmem:[#allocation55_spill] sm:$0xff]  ;;  %v9233_v48 = vld [vmem:[#allocation57_spill] sm:$0xff] }
 0x3a5   : > { %v3194_v6 = vpop.permute.xlu1 %3193  ;;  %v2828_v38 = vpop.permute.xlu0 %2827  ;;  %v2613_v31 = vadd.f32 %v2597_v16, %v2431_v28  ;;  %v2614_v58 = vadd.f32 %v2598_v5, %v2432_v7 }
 0x3a6   : > { %v2857_v47 = vsel %vm9224_vm1, %v2828_v38, %v7184_v25  ;;  %v2865_v0 = vsel %vm9225_vm9, %v7184_v25, %v2828_v38  ;;  %v1731_v25 = vadd.f32 1.1283791, %v1730_v35  ;;  %v1756_v35 = vsel %vm1753_vm4, %v1755_v9, %v1751_v59  ;;  %vm9235_vm4 = vmmov %vm9234_vm10 }
 0x3a7   : > { %v2882_v46 = vsel %vm6546_vm3, %v2857_v47, 0.0  ;;  %v2883_v13 = vsel %vm7220_vm0, %v2865_v0, 0.0  ;;  %vm9227_vm1 = vcmp.lt.s32.totalorder %v6523_v42, 127  ;;  %vm9229_vm9 = vcmp.lt.s32.totalorder %v6523_v42, 112 }
 0x3a8   : > { %v2646_v19 = vpop.permute.xlu2 %2645  ;;  %v1732_v37 = vmul.f32 %v1731_v25, %v6904_v41  ;;  %vm9228_vm14 = vmmov %vm9227_vm1  ;;  %v2963_v54 = vmul.f32 %v9232_v33, %v2882_v46  ;;  %v2964_v47 = vmul.f32 %v9232_v33, %v2883_v13 }
 0x3a9   : > { %v2675_v23 = vsel %vm9227_vm1, %v2646_v19, %v2662_v44  ;;  %v2683_v7 = vsel %vm9228_vm14, %v2662_v44, %v2646_v19  ;;  %vm9230_vm12 = vmmov %vm9229_vm9  ;;  %vm9237_vm1 = vcmp.lt.s32.totalorder %v6523_v42, 17 }
 0x3aa   : > { %2285 = vrot.lane.b32.xlu2 %v7214_v17, %s5404_s17  ;;  %v2698_v28 = vsel %vm6621_vm11, %v2675_v23, 0.0  ;;  %v2699_v36 = vsel %vm6631_vm15, %v2683_v7, 0.0  ;;  %v1757_v0 = vmul.f32 %v1756_v35, %v1732_v37  ;;  %v1103_v37 = vmul.f32 0.5, %v6865_v12  ;;  %v9236_v7 = vld [vmem:[#allocation6_spill] sm:$0xff]  ;;  %vm9238_vm14 = vmmov %vm9237_vm1 }
 0x3ab   : > { %2287 = vrot.lane.b32.xlu1 %v7238_v51, %s5404_s17  ;;  %2103 = vrot.lane.b32.xlu0 %v7214_v17, %s5402_s14  ;;  %v2779_v38 = vmul.f32 %v9231_v52, %v2698_v28  ;;  %v2780_v44 = vmul.f32 %v9231_v52, %v2699_v36  ;;  %v1885_v28 = vmul.f32 %v9236_v7, %v6737_v57  ;;  %v9239_v57 = vld [vmem:[#allocation12_spill] sm:$0xff] }
 0x3ac   : > { %v5108_v25 = vclamps-f32 %v1757_v0, 1.0  ;;  %v9240_v0 = vld [vmem:[#allocation9_spill] sm:$0xff] }
 0x3ad   : > { %v2116_v55 = vpop.permute.xlu1 %2115  ;;  %v3012_v14 = vpop.permute.xlu0 %3011  ;;  %v2796_v45 = vadd.f32 %v2780_v44, %v2614_v58 }
 0x3ae   : > { %v3041_v10 = vsel %vm9229_vm9, %v3012_v14, %v7228_v49  ;;  %v7319_v41 = vsel %vm9230_vm12, %v7228_v49, %v3012_v14  ;;  %v2795_v49 = vadd.f32 %v2779_v38, %v2613_v31  ;;  %v1775_v58 = vadd.f32 1.0, %v5108_v25  ;;  %vm7401_vm9 = vmand %vm1822_vm13, %vm6631_vm15 }
 0x3af   : > { %v3145_v16 = vmul.f32 %v9233_v48, %v3041_v10  ;;  %v7332_v56 = vadd.f32 %v2964_v47, %v2796_v45  ;;  %v1884_v14 = vmul.f32 %v9236_v7, %v6809_v50  ;;  %vm9243_vm12 = vcmp.lt.s32.totalorder %v6523_v42, 15 }
 0x3b0   : > { %v2979_v5 = vadd.f32 %v2963_v54, %v2795_v49  ;;  %v3210_v59 = vpop.permute.xlu2 %3209  ;;  %v7353_v35 = vmul.f32 %v1775_v58, %v1103_v37  ;;  %v2881_v58 = vsel %vm7220_vm0, %v7048_v29, 0.0 }
 0x3b1   : > { %v7338_v19 = vsel %vm9234_vm10, %v3194_v6, %v3210_v59  ;;  %v7342_v46 = vsel %vm9235_vm4, %v3210_v59, %v3194_v6  ;;  %v2880_v59 = vsel %vm6546_vm3, %v7044_v8, 0.0  ;;  %vm9244_vm10 = vmmov %vm9243_vm12  ;;  %vm9249_vm4 = vcmp.lt.s32.totalorder %v6523_v42, 1  ;;  %v5268_v8 = vld [vmem:[%s8983_s5 + $0x8] sm:$0xff] }
 0x3b2   : > { %2651 = vrot.lane.b32.xlu2 %v7214_v17, %s5405_s18  ;;  %v7344_v13 = vadd.f32 %v3145_v16, %v2979_v5 }
 0x3b3   : > { %2653 = vrot.lane.b32.xlu1 %v7238_v51, %s5405_s18  ;;  %2301 = vrot.lane.b32.xlu0 %v7089_v39, %s5404_s17 }
 0x3b5   : > { %v7334_v9 = vpop.permute.xlu1 %2481  ;;  %v1933_v31 = vpop.permute.xlu0 %1932 }
 0x3b8   : > { %v1917_v23 = vpop.permute.xlu2 %1916 }
 0x3b9   : > { %v1945_v36 = vsel %vm9237_vm1, %v1917_v23, %v1933_v31  ;;  %v1953_v10 = vsel %vm9238_vm14, %v1933_v31, %v1917_v23  ;;  %v3063_v23 = vsel %vm1822_vm13, %v7087_v30, 0.0  ;;  %vm9250_vm1 = vmmov %vm9249_vm4  ;;  %vm9252_vm14 = vcmp.lt.s32.totalorder %v6523_v42, 111 }
 0x3ba   : > { %3017 = vrot.lane.b32.xlu2 %v7214_v17, %s5407_s20  ;;  %v1971_v12 = vsel %vm6567_vm6, %v1953_v10, 0.0  ;;  %v1972_v38 = vsel %vm6559_vm5, %v1945_v36, 0.0 }
 0x3bb   : > { %3019 = vrot.lane.b32.xlu1 %v7238_v51, %s5407_s20  ;;  %2469 = vrot.lane.b32.xlu0 %v7214_v17, %s5403_s15  ;;  %v2051_v33 = vmul.f32 %v9239_v57, %v1971_v12  ;;  %v2052_v54 = vmul.f32 %v9239_v57, %v1972_v38  ;;  %v9246_v12 = vld [vmem:[#allocation21_spill] sm:$0xff] }
 0x3bd   : > { %v7355_v6 = vpop.permute.xlu1 %2845  ;;  %v2100_v52 = vpop.permute.xlu0 %2099  ;;  %v2068_v16 = vadd.f32 %v2052_v54, %v1885_v28  ;;  %v9245_v28 = vld [vmem:[#allocation49_spill] sm:$0xff]  ;;  %v3246_v54 = vsel %vm6621_vm11, %v7124_v60, 0.0 }
 0x3be   : > { %v2128_v44 = vsel %vm2123_vm8, %v2100_v52, %v2116_v55  ;;  %v2136_v50 = vsel %vm2123_vm8, %v2116_v55, %v2100_v52  ;;  %v2067_v55 = vadd.f32 %v2051_v33, %v1884_v14  ;;  %v2961_v36 = vmul.f32 %v9245_v28, %v2880_v59 }
 0x3bf   : > { %v2152_v47 = vsel %vm1819_vm2, %v2136_v50, 0.0  ;;  %v2234_v49 = vmul.f32 %v9240_v0, %v2128_v44  ;;  %v2962_v52 = vmul.f32 %v9245_v28, %v2881_v58  ;;  %v9247_v50 = vld [vmem:[#allocation56_spill] sm:$0xff] }
 0x3c0   : > { %v2233_v45 = vmul.f32 %v9240_v0, %v2152_v47  ;;  %v2282_v31 = vpop.permute.xlu2 %2281  ;;  %v3143_v57 = vmul.f32 %v9247_v50, %v7083_v2  ;;  %v3144_v33 = vmul.f32 %v9247_v50, %v3063_v23  ;;  %v3247_v47 = vsel %vm7401_vm9, %v7128_v43, 0.0 }
 0x3c1   : > { %v2250_v25 = vadd.f32 %v2234_v49, %v2068_v16  ;;  %v9248_v16 = vld [vmem:[#allocation62_spill] sm:$0xff] }
 0x3c2   : > { %1938 = vrot.lane.b32.xlu2 %v7353_v35, %s5401_s30  ;;  %v2249_v5 = vadd.f32 %v2233_v45, %v2067_v55  ;;  %v2977_v45 = vadd.f32 %v2961_v36, %v7112_v11  ;;  %v2978_v55 = vadd.f32 %v2962_v52, %v7114_v27  ;;  %v3327_v59 = vmul.f32 %v9248_v16, %v3246_v54  ;;  %s440_s30 = scalar_lea.vmem %s8991_s13, %s5261_s16 }
 0x3c3   : > { %3203 = vrot.lane.b32.xlu1 %v6186_v34, %s5408_s21  ;;  %2667 = vrot.lane.b32.xlu0 %v7089_v39, %s5405_s18  ;;  %v5166_v34 = vld [vmem:[%s8982_s4 + $0x208] sm:$0xff]  ;;  %v3328_v2 = vmul.f32 %v9248_v16, %v3247_v47 }
 0x3c4   : > { %v3159_v58 = vadd.f32 %v3143_v57, %v2977_v45 }
 0x3c5   : > { %v2298_v37 = vpop.permute.xlu0 %2297  ;;  %v7405_v7 = vpop.permute.xlu1 %3029 }
 0x3c6   : > { %v2310_v29 = vsel %vm9243_vm12, %v2282_v31, %v2298_v37  ;;  %v2318_v14 = vsel %vm9244_vm10, %v2298_v37, %v2282_v31  ;;  %v3160_v37 = vadd.f32 %v3144_v33, %v2978_v55  ;;  %vm9253_vm12 = vmmov %vm9252_vm14  ;;  %vm9254_vm10 = vcmp.lt.s32.totalorder %v6523_v42, 127  ;;  %v9256_v33 = vld [vmem:[#allocation32_spill] sm:$0xff] }
 0x3c7   : > { %v2336_v30 = vsel %vm6642_vm7, %v2318_v14, 0.0  ;;  %v2337_v10 = vsel %vm6631_vm15, %v2310_v29, 0.0  ;;  %v7452_v14 = vadd.f32 %v3327_v59, %v3159_v58 }
 0x3c8   : > { %v2417_v38 = vmul.f32 %v9246_v12, %v2336_v30  ;;  %v2418_v44 = vmul.f32 %v9246_v12, %v2337_v10  ;;  %v2648_v31 = vpop.permute.xlu2 %2647 }
 0x3ca   : > { %2105 = vrot.lane.b32.xlu2 %v7238_v51, %s5402_s14  ;;  %v2433_v0 = vadd.f32 %v2417_v38, %v2249_v5  ;;  %v2434_v49 = vadd.f32 %v2418_v44, %v2250_v25  ;;  %v9251_v25 = vld [vmem:[#allocation27_spill] sm:$0xff] }
 0x3cb   : > { %3290 = vperm.xlu1 %5289, %v5166_v34   ;;  %2833 = vrot.lane.b32.xlu0 %v7214_v17, %s5406_s19 }
 0x3cd   : > { %v2466_v34 = vpop.permute.xlu0 %2465  ;;  %v3196_v5 = vpop.permute.xlu1 %3195 }
 0x3ce   : > { %v2494_v60 = vsel %vm9249_vm4, %v2466_v34, %v7334_v9  ;;  %v2502_v43 = vsel %vm9250_vm1, %v7334_v9, %v2466_v34  ;;  %v7454_v9 = vadd.f32 %v3328_v2, %v3160_v37  ;;  %vm9255_vm4 = vmmov %vm9254_vm10  ;;  %vm9257_vm1 = vcmp.lt.s32.totalorder %v6523_v42, 17 }
 0x3cf   : > { %v2518_v11 = vsel %vm6546_vm3, %v2502_v43, 0.0  ;;  %v2519_v27 = vsel %vm6559_vm5, %v2494_v60, 0.0  ;;  %v9261_v60 = vld [vmem:[#allocation39_spill] sm:$0xff] }
 0x3d0   : > { %v2599_v23 = vmul.f32 %v9251_v25, %v2518_v11  ;;  %v2600_v29 = vmul.f32 %v9251_v25, %v2519_v27  ;;  %v3212_v30 = vpop.permute.xlu2 %3211 }
 0x3d1   : > { %v7458_v10 = vsel %vm9252_vm14, %v3196_v5, %v3212_v30  ;;  %v7462_v52 = vsel %vm9253_vm12, %v3212_v30, %v3196_v5  ;;  %vm9258_vm14 = vmmov %vm9257_vm1  ;;  %vm9259_vm12 = vcmp.lt.s32.totalorder %v6523_v42, 113 }
 0x3d2   : > { %2303 = vrot.lane.b32.xlu2 %v7353_v35, %s5404_s17  ;;  %v2615_v28 = vadd.f32 %v2599_v23, %v2433_v0  ;;  %v2616_v36 = vadd.f32 %v2600_v29, %v2434_v49 }
 0x3d3   : > { %3033 = vrot.lane.b32.xlu0 %v7089_v39, %s5407_s20 }
 0x3d5   : > { %v2664_v12 = vpop.permute.xlu0 %2663  ;;  %v1919_v0 = vpop.permute.xlu1 %1918 }
 0x3d6   : > { %v2676_v38 = vsel %vm9254_vm10, %v2648_v31, %v2664_v12  ;;  %v2684_v44 = vsel %vm9255_vm4, %v2664_v12, %v2648_v31  ;;  %vm9260_vm10 = vmmov %vm9259_vm12  ;;  %vm9262_vm4 = vcmp.lt.s32.totalorder %v6523_v42, 112 }
 0x3d7   : > { %v2700_v50 = vsel %vm6621_vm11, %v2676_v38, 0.0  ;;  %v2701_v57 = vsel %vm6631_vm15, %v2684_v44, 0.0 }
 0x3d8   : > { %v2781_v54 = vmul.f32 %v9256_v33, %v2700_v50  ;;  %v2782_v47 = vmul.f32 %v9256_v33, %v2701_v57  ;;  %v1935_v55 = vpop.permute.xlu2 %1934  ;;  %v9265_v50 = vld [vmem:[#allocation7_spill] sm:$0xff] }
 0x3d9   : > { %v1946_v16 = vsel %vm9257_vm1, %v1919_v0, %v1935_v55  ;;  %v1954_v59 = vsel %vm9258_vm14, %v1935_v55, %v1919_v0  ;;  %vm9263_vm1 = vmmov %vm9262_vm4  ;;  %vm9267_vm14 = vcmp.lt.s32.totalorder %v6523_v42, 15 }
 0x3da   : > { %2471 = vrot.lane.b32.xlu2 %v7238_v51, %s5403_s15  ;;  %v2797_v49 = vadd.f32 %v2781_v54, %v2615_v28  ;;  %v2798_v45 = vadd.f32 %v2782_v47, %v2616_v36  ;;  %v9264_v28 = vld [vmem:[#allocation44_spill] sm:$0xff]  ;;  %v1974_v30 = vsel %vm6559_vm5, %v1946_v16, 0.0  ;;  %v1973_v12 = vsel %vm6567_vm6, %v1954_v59, 0.0 }
 0x3db   : > { %3199 = vrot.lane.b32.xlu0 %v7214_v17, %s5408_s21  ;;  %v2053_v33 = vmul.f32 %v9265_v50, %v1973_v12  ;;  %v9266_v54 = vld [vmem:[#allocation20_spill] sm:$0xff] }
 0x3dc   : > { %v1887_v47 = vmul.f32 %v9266_v54, %v6962_v1  ;;  %v1886_v55 = vmul.f32 %v9266_v54, %v6948_v62  ;;  %v9273_v54 = vld [vmem:[#allocation63_spill] sm:$0xff] }
 0x3dd   : > { %v2830_v2 = vpop.permute.xlu0 %2829  ;;  %v2284_v44 = vpop.permute.xlu1 %2283 }
 0x3de   : > { %v2858_v31 = vsel %vm9259_vm12, %v2830_v2, %v7355_v6  ;;  %v2866_v58 = vsel %vm9260_vm10, %v7355_v6, %v2830_v2  ;;  %vm9268_vm12 = vmmov %vm9267_vm14  ;;  %v2069_v62 = vadd.f32 %v2053_v33, %v1886_v55  ;;  %vm9271_vm10 = vcmp.lt.s32.totalorder %v6523_v42, 1 }
 0x3df   : > { %v2884_v37 = vsel %vm6546_vm3, %v2858_v31, 0.0  ;;  %v2885_v34 = vsel %vm7220_vm0, %v2866_v58, 0.0 }
 0x3e0   : > { %v2965_v43 = vmul.f32 %v9261_v60, %v2884_v37  ;;  %v2966_v11 = vmul.f32 %v9261_v60, %v2885_v34  ;;  %v2102_v6 = vpop.permute.xlu2 %2101  ;;  %v9269_v37 = vld [vmem:[#allocation23_spill] sm:$0xff] }
 0x3e2   : > { %2669 = vrot.lane.b32.xlu2 %v7353_v35, %s5405_s18  ;;  %v2981_v27 = vadd.f32 %v2965_v43, %v2797_v49  ;;  %v7498_v5 = vadd.f32 %v2966_v11, %v2798_v45  ;;  %v3065_v43 = vsel %vm1822_vm13, %v7319_v41, 0.0  ;;  %v9270_v11 = vld [vmem:[#allocation19_spill] sm:$0xff] }
 0x3e3   : > { %2121 = vrot.lane.b32.xlu0 %v7353_v35, %s5402_s14  ;;  %v3146_v12 = vmul.f32 %v9233_v48, %v3065_v43 }
 0x3e5   : > { %v3014_v25 = vpop.permute.xlu0 %3013  ;;  %v3162_v55 = vadd.f32 %v3146_v12, %v7332_v56 }
 0x3e6   : > { %v3042_v23 = vsel %vm9262_vm4, %v3014_v25, %v7405_v7  ;;  %v7506_v29 = vsel %vm9263_vm1, %v7405_v7, %v3014_v25  ;;  %v2054_v7 = vmul.f32 %v9265_v50, %v1974_v30  ;;  %v3248_v30 = vsel %vm6621_vm11, %v7338_v19, 0.0  ;;  %vm9272_vm4 = vmmov %vm9271_vm10 }
 0x3e7   : > { %v3147_v36 = vmul.f32 %v9264_v28, %v3042_v23  ;;  %vm9275_vm1 = vcmp.lt.s32.totalorder %v6523_v42, 127 }
 0x3e8   : > { %v2300_v57 = vpop.permute.xlu2 %2299  ;;  %v2070_v1 = vadd.f32 %v2054_v7, %v1887_v47  ;;  %v3249_v7 = vsel %vm7401_vm9, %v7342_v46, 0.0  ;;  %v3329_v47 = vmul.f32 %v9273_v54, %v3248_v30  ;;  %v5165_v30 = vld [vmem:[%s8982_s4 + $0x200] sm:$0xff] }
 0x3e9   : > { %v7517_v38 = vadd.f32 %v3147_v36, %v2981_v27  ;;  %v2311_v0 = vsel %vm9267_vm14, %v2284_v44, %v2300_v57  ;;  %v2319_v49 = vsel %vm9268_vm12, %v2300_v57, %v2284_v44  ;;  %v3330_v46 = vmul.f32 %v9273_v54, %v3249_v7  ;;  %vm9276_vm14 = vmmov %vm9275_vm1  ;;  %v9280_v7 = vld [vmem:[#allocation48_spill] sm:$0xff] }
 0x3ea   : > { %2835 = vrot.lane.b32.xlu2 %v7238_v51, %s5406_s19  ;;  %v2339_v16 = vsel %vm6631_vm15, %v2311_v0, 0.0  ;;  %v2338_v31 = vsel %vm6642_vm7, %v2319_v49, 0.0  ;;  %v9274_v0 = vld [vmem:[#allocation33_spill] sm:$0xff]  ;;  %vm9278_vm12 = vcmp.lt.s32.totalorder %v6523_v42, 113 }
 0x3eb   : > { %2487 = vrot.lane.b32.xlu0 %v7353_v35, %s5403_s15  ;;  %v2420_v27 = vmul.f32 %v9270_v11, %v2339_v16  ;;  %v2419_v25 = vmul.f32 %v9270_v11, %v2338_v31  ;;  %v7575_v16 = vadd.f32 %v3329_v47, %v7344_v13  ;;  %v7577_v31 = vadd.f32 %v3330_v46, %v3162_v55  ;;  %v9277_v11 = vld [vmem:[#allocation38_spill] sm:$0xff] }
 0x3ed   : > { %v2118_v45 = vpop.permute.xlu0 %2117 }
 0x3ee   : > { %v2129_v59 = vsel %vm2123_vm8, %v2102_v6, %v2118_v45  ;;  %v2137_v2 = vsel %vm2123_vm8, %v2118_v45, %v2102_v6 }
 0x3ef   : > { %v2154_v58 = vsel %vm1819_vm2, %v2137_v2, 0.0  ;;  %v2236_v34 = vmul.f32 %v9269_v37, %v2129_v59  ;;  %v2650_v59 = vpop.permute.xlu1 %2649 }
 0x3f0   : > { %v2235_v60 = vmul.f32 %v9269_v37, %v2154_v58  ;;  %v2468_v44 = vpop.permute.xlu2 %2467  ;;  %v3397_v58 = vpack.c.bf16 %v7575_v16, %v7452_v14 }
 0x3f1   : > { %v2252_v6 = vadd.f32 %v2236_v34, %v2070_v1  ;;  %v3398_v34 = vpack.c.bf16 %v7577_v31, %v7454_v9 }
 0x3f2   : > { %3035 = vrot.lane.b32.xlu2 %v7353_v35, %s5407_s20  ;;  %v2251_v23 = vadd.f32 %v2235_v60, %v2069_v62 }
 0x3f3   : > { %2851 = vrot.lane.b32.xlu0 %v7353_v35, %s5406_s19  ;;  %v2436_v36 = vadd.f32 %v2420_v27, %v2252_v6 }
 0x3f4   : > { %v2435_v50 = vadd.f32 %v2419_v25, %v2251_v23 }
 0x3f5   : > { %v2484_v41 = vpop.permute.xlu0 %2483 }
 0x3f6   : > { %v2495_v57 = vsel %vm9271_vm10, %v2468_v44, %v2484_v41  ;;  %v2503_v33 = vsel %vm9272_vm4, %v2484_v41, %v2468_v44  ;;  %vm9279_vm10 = vmmov %vm9278_vm12  ;;  %vm9281_vm4 = vcmp.lt.s32.totalorder %v6523_v42, 112 }
 0x3f7   : > { %v2520_v19 = vsel %vm6546_vm3, %v2503_v33, 0.0  ;;  %v2521_v48 = vsel %vm6559_vm5, %v2495_v57, 0.0 }
 0x3f8   : > { %v2601_v49 = vmul.f32 %v9274_v0, %v2520_v19  ;;  %v2602_v45 = vmul.f32 %v9274_v0, %v2521_v48  ;;  %v2666_v37 = vpop.permute.xlu2 %2665  ;;  %v3214_v19 = vpop.permute.xlu1 %3213 }
 0x3f9   : > { %v2677_v62 = vsel %vm9275_vm1, %v2650_v59, %v2666_v37  ;;  %v2685_v56 = vsel %vm9276_vm14, %v2666_v37, %v2650_v59  ;;  %vm9282_vm1 = vmmov %vm9281_vm4  ;;  %vm9284_vm14 = vcmp.lt.s32.totalorder %v6523_v42, 111 }
 0x3fa   : > { %3201 = vrot.lane.b32.xlu2 %v7238_v51, %s5408_s21  ;;  %v2617_v2 = vadd.f32 %v2601_v49, %v2435_v50  ;;  %v2618_v1 = vadd.f32 %v2602_v45, %v2436_v36  ;;  %v2702_v60 = vsel %vm6621_vm11, %v2677_v62, 0.0  ;;  %v2703_v43 = vsel %vm6631_vm15, %v2685_v56, 0.0  ;;  %v9283_v49 = vld [vmem:[#allocation50_spill] sm:$0xff] }
 0x3fb   : > { %3217 = vrot.lane.b32.xlu0 %v7353_v35, %s5408_s21  ;;  %v2783_v27 = vmul.f32 %v9277_v11, %v2702_v60  ;;  %v2784_v6 = vmul.f32 %v9277_v11, %v2703_v43  ;;  %v9288_v60 = vld [vmem:[#allocation10_spill] sm:$0xff] }
 0x3fd   : > { %v2848_v13 = vpop.permute.xlu0 %2847  ;;  %v2799_v25 = vadd.f32 %v2783_v27, %v2617_v2  ;;  %v2800_v23 = vadd.f32 %v2784_v6, %v2618_v1 }
 0x400   : > { %v2832_v36 = vpop.permute.xlu2 %2831  ;;  %v2120_v6 = vpop.permute.xlu1 %2119 }
 0x401   : > { %v2859_v12 = vsel %vm9278_vm12, %v2832_v36, %v2848_v13  ;;  %v2867_v44 = vsel %vm9279_vm10, %v2848_v13, %v2832_v36  ;;  %vm9285_vm12 = vmmov %vm9284_vm14  ;;  %vm9286_vm10 = vcmp.lt.s32.totalorder %v6523_v42, 17 }
 0x402   : > { %3189 = vrot.lane.b32.xlu2 %v6268_v53, %s5408_s21  ;;  %v2886_v53 = vsel %vm6546_vm3, %v2859_v12, 0.0 }
 0x403   : > { %3187 = vrot.lane.b32.xlu0 %v6183_v63, %s5408_s21  ;;  %v2887_v63 = vsel %vm7220_vm0, %v2867_v44, 0.0  ;;  %v2967_v41 = vmul.f32 %v9280_v7, %v2886_v53 }
 0x404   : > { %v2968_v57 = vmul.f32 %v9280_v7, %v2887_v63  ;;  %v9290_v63 = vld [vmem:[#allocation5_spill] sm:$0xff] }
 0x405   : > { %v3032_v50 = vpop.permute.xlu0 %3031  ;;  %v2983_v33 = vadd.f32 %v2967_v41, %v2799_v25  ;;  %v9289_v25 = vld [vmem:[#allocation3_spill] sm:$0xff] }
 0x406   : > { %v7612_v54 = vadd.f32 %v2968_v57, %v2800_v23  ;;  %v1889_v23 = vmul.f32 %v9289_v25, %v7089_v39 }
 0x408   : > { %v3016_v47 = vpop.permute.xlu2 %3015 }
 0x409   : > { %v3043_v48 = vsel %vm9281_vm4, %v3016_v47, %v3032_v50  ;;  %v7618_v46 = vsel %vm9282_vm1, %v3032_v50, %v3016_v47  ;;  %vm9287_vm4 = vmmov %vm9286_vm10  ;;  %vm9291_vm1 = vcmp.lt.s32.totalorder %v6523_v42, 15 }
 0x40a   : > { %3285 = vperm.xlu2 %5291, %v5165_v30   ;;  %v3149_v45 = vmul.f32 %v9283_v49, %v3043_v48  ;;  %v1888_v30 = vmul.f32 %v9289_v25, %v7214_v17 }
 0x40b   : > { %3205 = vrot.lane.b32.xlu0 %v6289_v15, %s5408_s21 }
 0x40c   : > { %v7629_v59 = vadd.f32 %v3149_v45, %v2983_v33 }
 0x40d   : > { %v3198_v0 = vpop.permute.xlu0 %3197 }
 0x40e   : > { %v7623_v55 = vsel %vm9284_vm14, %v3198_v0, %v3214_v19  ;;  %v7627_v15 = vsel %vm9285_vm12, %v3214_v19, %v3198_v0  ;;  %vm9292_vm14 = vmmov %vm9291_vm1  ;;  %vm9294_vm12 = vcmp.lt.s32.totalorder %v6523_v42, 1 }
 0x410   : > { %v1921_v2 = vpop.permute.xlu2 %1920 }
 0x415   : > { %v1937_v1 = vpop.permute.xlu0 %1936 }
 0x416   : > { %v1947_v37 = vsel %vm9286_vm10, %v1921_v2, %v1937_v1  ;;  %v1955_v62 = vsel %vm9287_vm4, %v1937_v1, %v1921_v2  ;;  %v9293_v2 = vld [vmem:[#allocation15_spill] sm:$0xff]  ;;  %vm9295_vm10 = vmmov %vm9294_vm12  ;;  %vm9298_vm4 = vcmp.lt.s32.totalorder %v6523_v42, 127 }
 0x417   : > { %v1976_v56 = vsel %vm6559_vm5, %v1947_v37, 0.0  ;;  %v1975_v13 = vsel %vm6567_vm6, %v1955_v62, 0.0  ;;  %v3067_v62 = vsel %vm1822_vm13, %v7506_v29, 0.0 }
 0x418   : > { %v2056_v43 = vmul.f32 %v9288_v60, %v1976_v56  ;;  %v2286_v11 = vpop.permute.xlu2 %2285  ;;  %v2055_v27 = vmul.f32 %v9288_v60, %v1975_v13  ;;  %v2486_v60 = vpop.permute.xlu1 %2485 }
 0x41a   : > { %v2072_v50 = vadd.f32 %v2056_v43, %v1889_v23  ;;  %v2071_v41 = vadd.f32 %v2055_v27, %v1888_v30  ;;  %v3250_v43 = vsel %vm6621_vm11, %v7458_v10, 0.0 }
 0x41d   : > { %v2104_v36 = vpop.permute.xlu0 %2103 }
 0x41e   : > { %v2130_v12 = vsel %vm2123_vm8, %v2104_v36, %v2120_v6  ;;  %v2138_v44 = vsel %vm2123_vm8, %v2120_v6, %v2104_v36  ;;  %v3251_v6 = vsel %vm7401_vm9, %v7462_v52, 0.0  ;;  %v9296_v36 = vld [vmem:[#allocation52_spill] sm:$0xff] }
 0x41f   : > { %v2156_v53 = vsel %vm1819_vm2, %v2138_v44, 0.0  ;;  %v2238_v7 = vmul.f32 %v9290_v63, %v2130_v12  ;;  %v3331_v30 = vmul.f32 %v9296_v36, %v3250_v43  ;;  %v3332_v12 = vmul.f32 %v9296_v36, %v3251_v6 }
 0x420   : > { %v2237_v57 = vmul.f32 %v9290_v63, %v2156_v53  ;;  %v2652_v47 = vpop.permute.xlu2 %2651  ;;  %v9297_v63 = vld [vmem:[#allocation11_spill] sm:$0xff]  ;;  %v3252_v36 = vsel %vm6621_vm11, %v7623_v55, 0.0 }
 0x421   : > { %v2254_v39 = vadd.f32 %v2238_v7, %v2072_v50  ;;  %v7687_v52 = vadd.f32 %v3331_v30, %v7517_v38  ;;  %v3253_v30 = vsel %vm7401_vm9, %v7627_v15, 0.0 }
 0x422   : > { %v2253_v33 = vadd.f32 %v2237_v57, %v2071_v41  ;;  %v7693_v57 = vpop.permute.xlu1 %2849 }
 0x425   : > { %v2302_v19 = vpop.permute.xlu0 %2301 }
 0x426   : > { %v2312_v17 = vsel %vm9291_vm1, %v2286_v11, %v2302_v19  ;;  %v2320_v48 = vsel %vm9292_vm14, %v2302_v19, %v2286_v11  ;;  %v3148_v11 = vmul.f32 %v9264_v28, %v3067_v62  ;;  %vm9299_vm1 = vmmov %vm9298_vm4  ;;  %vm9301_vm14 = vcmp.lt.s32.totalorder %v6523_v42, 17 }
 0x427   : > { %v2340_v0 = vsel %vm6642_vm7, %v2320_v48, 0.0  ;;  %v2341_v45 = vsel %vm6631_vm15, %v2312_v17, 0.0 }
 0x428   : > { %v2421_v1 = vmul.f32 %v9293_v2, %v2340_v0  ;;  %v2422_v37 = vmul.f32 %v9293_v2, %v2341_v45  ;;  %v7670_v27 = vpop.permute.xlu2 %3017  ;;  %v3164_v10 = vadd.f32 %v3148_v11, %v7498_v5  ;;  %v9300_v0 = vld [vmem:[#allocation24_spill] sm:$0xff] }
 0x42a   : > { %v2437_v56 = vadd.f32 %v2421_v1, %v2253_v33  ;;  %v2438_v13 = vadd.f32 %v2422_v37, %v2254_v39  ;;  %v7689_v50 = vadd.f32 %v3332_v12, %v3164_v10  ;;  %v7709_v43 = vpop.permute.xlu1 %3215  ;;  %v9302_v10 = vld [vmem:[#allocation58_spill] sm:$0xff] }
 0x42d   : > { %v2470_v25 = vpop.permute.xlu0 %2469 }
 0x42e   : > { %v2496_v23 = vsel %vm9294_vm12, %v2470_v25, %v2486_v60  ;;  %v2504_v29 = vsel %vm9295_vm10, %v2486_v60, %v2470_v25  ;;  %vm9303_vm12 = vmmov %vm9301_vm14 }
 0x42f   : > { %v2522_v28 = vsel %vm6546_vm3, %v2504_v29, 0.0  ;;  %v2523_v44 = vsel %vm6559_vm5, %v2496_v23, 0.0 }
 0x430   : > { %v1939_v53 = vpop.permute.xlu2 %1938  ;;  %v2603_v7 = vmul.f32 %v9297_v63, %v2522_v28  ;;  %v2604_v41 = vmul.f32 %v9297_v63, %v2523_v44  ;;  %v3333_v28 = vmul.f32 %v9302_v10, %v3252_v36 }
 0x432   : > { %v2619_v17 = vadd.f32 %v2603_v7, %v2437_v56  ;;  %v2620_v48 = vadd.f32 %v2604_v41, %v2438_v13  ;;  %v3069_v56 = vsel %vm1822_vm13, %v7618_v46, 0.0  ;;  %v1923_v13 = vpop.permute.xlu1 %1922  ;;  %v7739_v41 = vadd.f32 %v3333_v28, %v7629_v59  ;;  %v9305_v59 = vld [vmem:[#allocation14_spill] sm:$0xff] }
 0x433   : > { %v3150_v6 = vmul.f32 %v9283_v49, %v3069_v56  ;;  %v1956_v46 = vsel %vm9301_vm14, %v1939_v53, %v1923_v13  ;;  %v3334_v49 = vmul.f32 %v9302_v10, %v3253_v30  ;;  %v1948_v44 = vsel %vm9303_vm12, %v1923_v13, %v1939_v53  ;;  %v9308_v56 = vld [vmem:[#allocation17_spill] sm:$0xff] }
 0x434   : > { %v1977_v55 = vsel %vm6567_vm6, %v1956_v46, 0.0  ;;  %v1978_v15 = vsel %vm6559_vm5, %v1948_v44, 0.0  ;;  %vm9306_vm6 = vcmp.lt.s32.totalorder %v6523_v42, 15  ;;  %vm9315_vm14 = vcmp.lt.s32.totalorder %v6523_v42, 112 }
 0x435   : > { %v2668_v39 = vpop.permute.xlu0 %2667  ;;  %v3166_v29 = vadd.f32 %v3150_v6, %v7612_v54  ;;  %vm9318_vm12 = vmmov %vm9315_vm14 }
 0x436   : > { %v2678_v5 = vsel %vm9298_vm4, %v2652_v47, %v2668_v39  ;;  %v2686_v33 = vsel %vm9299_vm1, %v2668_v39, %v2652_v47  ;;  %vm9311_vm4 = vcmp.lt.s32.totalorder %v6523_v42, 113 }
 0x437   : > { %v2704_v38 = vsel %vm6621_vm11, %v2678_v5, 0.0  ;;  %v2705_v19 = vsel %vm6631_vm15, %v2686_v33, 0.0  ;;  %v7741_v39 = vadd.f32 %v3334_v49, %v3166_v29  ;;  %v9304_v5 = vld [vmem:[#allocation4_spill] sm:$0xff] }
 0x438   : > { %v2785_v45 = vmul.f32 %v9300_v0, %v2704_v38  ;;  %v2786_v2 = vmul.f32 %v9300_v0, %v2705_v19  ;;  %v2106_v62 = vpop.permute.xlu2 %2105  ;;  %v2057_v33 = vmul.f32 %v9304_v5, %v1977_v55  ;;  %v2058_v38 = vmul.f32 %v9304_v5, %v1978_v15 }
 0x439   : > { %v3399_v19 = vpack.c.bf16 %v7739_v41, %v7687_v52  ;;  %v9345_v52 = vld [vmem:[#allocation74_spill] sm:$0xff] }
 0x43a   : > { %v7705_v1 = vadd.f32 %v2785_v45, %v2619_v17  ;;  %v7707_v37 = vadd.f32 %v2786_v2, %v2620_v48  ;;  %v2288_v12 = vpop.permute.xlu1 %2287  ;;  %v3400_v17 = vpack.c.bf16 %v7741_v39, %v7689_v50  ;;  %v1890_v48 = vmul.f32 %v9305_v59, %v7238_v51 }
 0x43b   : > { %v1891_v45 = vmul.f32 %v9305_v59, %v7353_v35 }
 0x43c   : > { %v2073_v29 = vadd.f32 %v2057_v33, %v1890_v48  ;;  %v9317_v33 = vld [vmem:[#allocation26_spill] sm:$0xff] }
 0x43d   : > { %v2834_v60 = vpop.permute.xlu0 %2833  ;;  %v2074_v46 = vadd.f32 %v2058_v38, %v1891_v45 }
 0x43e   : > { %v2860_v18 = vsel %vm9311_vm4, %v2834_v60, %v7693_v57 }
 0x43f   : > { %v2888_v38 = vsel %vm6546_vm3, %v2860_v18, 0.0  ;;  %v9326_v18 = vld [vmem:[#allocation30_spill] sm:$0xff] }
 0x440   : > { %v2304_v47 = vpop.permute.xlu2 %2303 }
 0x441   : > { %v2321_v0 = vsel %vm9306_vm6, %v2304_v47, %v2288_v12 }
 0x442   : > { %v2654_v36 = vpop.permute.xlu1 %2653  ;;  %v2342_v51 = vsel %vm6642_vm7, %v2321_v0, 0.0  ;;  %vm9313_vm7 = vmmov %vm9299_vm1 }
 0x443   : > { %vm9314_vm1 = vmmov %vm9311_vm4 }
 0x445   : > { %v7711_v11 = vpop.permute.xlu0 %3033 }
 0x446   : > { %v3052_v4 = vsel %vm9315_vm14, %v7711_v11, %v7670_v27 }
 0x448   : > { %v2472_v25 = vpop.permute.xlu2 %2471 }
 0x44d   : > { %v7717_v23 = vpop.permute.xlu0 %3199 }
 0x450   : > { %v2670_v54 = vpop.permute.xlu2 %2669 }
 0x455   : > { %v2122_v63 = vpop.permute.xlu0 %2121 }
 0x456   : > { %v2139_v7 = vsel %vm2123_vm8, %v2122_v63, %v2106_v62  ;;  %v2131_v53 = vsel %vm2123_vm8, %v2106_v62, %v2122_v63  ;;  %vm9307_vm8 = vmmov %vm9306_vm6  ;;  %v9312_v63 = vld [vmem:[#allocation8_spill] sm:$0xff]  ;;  %vm9319_vm6 = vcmp.lt.s32.totalorder %v6523_v42, 111 }
 0x457   : > { %v2158_v3 = vsel %vm1819_vm2, %v2139_v7, 0.0  ;;  %v2313_v2 = vsel %vm9307_vm8, %v2288_v12, %v2304_v47  ;;  %v2240_v6 = vmul.f32 %v9308_v56, %v2131_v53  ;;  %vm9309_vm2 = vmmov %vm9295_vm10  ;;  %v2423_v55 = vmul.f32 %v9312_v63, %v2342_v51 }
 0x458   : > { %v2836_v62 = vpop.permute.xlu2 %2835  ;;  %v2239_v13 = vmul.f32 %v9308_v56, %v2158_v3  ;;  %vm9310_vm10 = vmmov %vm9309_vm2  ;;  %v2343_v47 = vsel %vm6631_vm15, %v2313_v2, 0.0  ;;  %v2868_v7 = vsel %vm9314_vm1, %v7693_v57, %v2834_v60  ;;  %v3071_v2 = vsel %vm1822_vm13, %v3052_v4, 0.0 }
 0x459   : > { %v2256_v44 = vadd.f32 %v2240_v6, %v2074_v46  ;;  %v2424_v15 = vmul.f32 %v9312_v63, %v2343_v47  ;;  %v2889_v60 = vsel %vm7220_vm0, %v2868_v7, 0.0  ;;  %v3226_v56 = vsel %vm9319_vm6, %v7717_v23, %v7709_v43  ;;  %vm9320_vm8 = vmmov %vm9314_vm1  ;;  %v9322_v46 = vld [vmem:[#allocation22_spill] sm:$0xff] }
 0x45a   : > { %v2255_v49 = vadd.f32 %v2239_v13, %v2073_v29  ;;  %vm9335_vm14 = vmmov %vm9320_vm8 }
 0x45b   : > { %v2440_v48 = vadd.f32 %v2424_v15, %v2256_v44  ;;  %v2970_v44 = vmul.f32 %v9326_v18, %v2889_v60  ;;  %v9329_v60 = vld [vmem:[#allocation42_spill] sm:$0xff] }
 0x45c   : > { %v2439_v0 = vadd.f32 %v2423_v55, %v2255_v49  ;;  %v2969_v49 = vmul.f32 %v9326_v18, %v2888_v38 }
 0x45d   : > { %v2488_v30 = vpop.permute.xlu0 %2487 }
 0x45e   : > { %v2497_v10 = vsel %vm9309_vm2, %v2472_v25, %v2488_v30  ;;  %v2505_v35 = vsel %vm9310_vm10, %v2488_v30, %v2472_v25  ;;  %v2679_v25 = vsel %vm9313_vm7, %v2654_v36, %v2670_v54  ;;  %v3020_v30 = vpop.permute.xlu1 %3019  ;;  %vm9323_vm2 = vmmov %vm9319_vm6  ;;  %v2985_v38 = vadd.f32 %v2969_v49, %v7705_v1 }
 0x45f   : > { %v2524_v12 = vsel %vm6546_vm3, %v2505_v35, 0.0  ;;  %v2525_v28 = vsel %vm6559_vm5, %v2497_v10, 0.0  ;;  %vm9316_vm5 = vmmov %vm9313_vm7  ;;  %v2706_v57 = vsel %vm6621_vm11, %v2679_v25, 0.0  ;;  %v9327_v25 = vld [vmem:[#allocation34_spill] sm:$0xff] }
 0x460   : > { %v2687_v5 = vsel %vm9316_vm5, %v2670_v54, %v2654_v36  ;;  %v2605_v53 = vmul.f32 %v9317_v33, %v2524_v12  ;;  %v2606_v3 = vmul.f32 %v9317_v33, %v2525_v28  ;;  %v3036_v59 = vpop.permute.xlu2 %3035  ;;  %v3044_v54 = vsel %vm9318_vm12, %v7670_v27, %v7711_v11  ;;  %vm9324_vm10 = vmmov %vm9318_vm12 }
 0x461   : > { %v2707_v45 = vsel %vm6631_vm15, %v2687_v5, 0.0  ;;  %vm9321_vm15 = vmmov %vm9314_vm1  ;;  %v2787_v27 = vmul.f32 %v9322_v46, %v2706_v57  ;;  %v3234_v11 = vsel %vm9323_vm2, %v7709_v43, %v7717_v23  ;;  %v3053_v47 = vsel %vm9324_vm10, %v3036_v59, %v3020_v30 }
 0x462   : > { %v2621_v6 = vadd.f32 %v2605_v53, %v2439_v0  ;;  %v2622_v29 = vadd.f32 %v2606_v3, %v2440_v48  ;;  %v2788_v35 = vmul.f32 %v9322_v46, %v2707_v45  ;;  %v3254_v43 = vsel %vm6621_vm11, %v3226_v56, 0.0  ;;  %vm9328_vm4 = vmmov %vm9324_vm10 }
 0x463   : > { %v3255_v23 = vsel %vm7401_vm9, %v3234_v11, 0.0  ;;  %v3151_v7 = vmul.f32 %v9327_v25, %v3044_v54  ;;  %v3152_v4 = vmul.f32 %v9327_v25, %v3071_v2  ;;  %v3045_v15 = vsel %vm9328_vm4, %v3020_v30, %v3036_v59  ;;  %v9330_v54 = vld [vmem:[#allocation40_spill] sm:$0xff]  ;;  %vm9331_vm7 = vmmov %vm9323_vm2 }
 0x464   : > { %v2803_v63 = vadd.f32 %v2787_v27, %v2621_v6  ;;  %v2804_v55 = vadd.f32 %v2788_v35, %v2622_v29  ;;  %v3073_v5 = vsel %vm1822_vm13, %v3053_v47, 0.0  ;;  %v2986_v57 = vadd.f32 %v2970_v44, %v7707_v37  ;;  %vm9332_vm1 = vmmov %vm9323_vm2 }
 0x465   : > { %v2852_v13 = vpop.permute.xlu0 %2851  ;;  %v3335_v48 = vmul.f32 %v9329_v60, %v3254_v43  ;;  %v3336_v0 = vmul.f32 %v9329_v60, %v3255_v23  ;;  %v3153_v2 = vmul.f32 %v9330_v54, %v3045_v15  ;;  %v3154_v56 = vmul.f32 %v9330_v54, %v3073_v5  ;;  %vm9336_vm5 = vmmov %vm9320_vm8  ;;  %v9337_v23 = vld [vmem:[#allocation76_spill] sm:$0xff] }
 0x466   : > { %v2861_v22 = vsel %vm9320_vm8, %v2836_v62, %v2852_v13  ;;  %v2869_v36 = vsel %vm9321_vm15, %v2852_v13, %v2836_v62  ;;  %v9325_v62 = vld [vmem:[#allocation35_spill] sm:$0xff]  ;;  %v3167_v6 = vadd.f32 %v3151_v7, %v2985_v38  ;;  %v3168_v29 = vadd.f32 %v3152_v4, %v2986_v57  ;;  %v3204_v44 = vpop.permute.xlu1 %3203  ;;  %vm9339_vm12 = vmmov %vm9328_vm4 }
 0x467   : > { %v2890_v51 = vsel %vm6546_vm3, %v2861_v22, 0.0  ;;  %v2891_v10 = vsel %vm7220_vm0, %v2869_v36, 0.0  ;;  %v9333_v22 = vld [vmem:[#allocation51_spill] sm:$0xff]  ;;  %vm9340_vm6 = vmmov %vm9332_vm1 }
 0x468   : > { %v2971_v12 = vmul.f32 %v9325_v62, %v2890_v51  ;;  %v2972_v28 = vmul.f32 %v9325_v62, %v2891_v10  ;;  %v3202_v33 = vpop.permute.xlu2 %3201  ;;  %v3351_v11 = vadd.f32 %v3335_v48, %v3167_v6  ;;  %v3352_v10 = vadd.f32 %v3336_v0, %v3168_v29  ;;  %vm9341_vm8 = vmmov %vm9332_vm1 }
 0x469   : > { %vm9342_vm15 = vmmov %vm9328_vm4 }
 0x46a   : > { %v2987_v53 = vadd.f32 %v2971_v12, %v2803_v63  ;;  %v2988_v3 = vadd.f32 %v2972_v28, %v2804_v55  ;;  %v9334_v28 = vld [vmem:[#allocation73_spill] sm:$0xff] }
 0x46b   : > { %v2854_v18 = vsel %vm9335_vm14, %v9334_v28, %v6685_v32  ;;  %v2862_v49 = vsel %vm9336_vm5, %v6685_v32, %v9334_v28  ;;  %v9338_v63 = vld [vmem:[#allocation77_spill] sm:$0xff] }
 0x46c   : > { %v3169_v46 = vadd.f32 %v3153_v2, %v2987_v53  ;;  %v3170_v27 = vadd.f32 %v3154_v56, %v2988_v3  ;;  %v3046_v55 = vsel %vm9339_vm12, %v9338_v63, %v9337_v23  ;;  %v2876_v7 = vsel %vm6546_vm3, %v2854_v18, 0.0  ;;  %vm9347_vm3 = vmmov %vm9332_vm1 }
 0x46d   : > { %v3218_v45 = vpop.permute.xlu0 %3217  ;;  %v2877_v4 = vsel %vm7220_vm0, %v2862_v49, 0.0  ;;  %v3038_v15 = vsel %vm9342_vm15, %v9337_v23, %v9338_v63  ;;  %v3059_v5 = vsel %vm1822_vm13, %v3046_v55, 0.0  ;;  %v2957_v21 = vmul.f32 %v9343_v26, %v2876_v7  ;;  %vm9348_vm13 = vmmov %vm9332_vm1 }
 0x46e   : > { %v3227_v59 = vsel %vm9331_vm7, %v3202_v33, %v3218_v45  ;;  %v3235_v13 = vsel %vm9332_vm1, %v3218_v45, %v3202_v33  ;;  %v2958_v53 = vmul.f32 %v9343_v26, %v2877_v4  ;;  %v3139_v38 = vmul.f32 %v9344_v40, %v3038_v15  ;;  %v3291_v54 = vpop.permute.xlu1 %3290  ;;  %v3493_v26 = vld [vmem:[%s8989_s11] sm:$0xff] }
 0x46f   : > { %v3256_v1 = vsel %vm6621_vm11, %v3227_v59, 0.0  ;;  %v3257_v37 = vsel %vm7401_vm9, %v3235_v13, 0.0  ;;  %v3140_v57 = vmul.f32 %v9344_v40, %v3059_v5  ;;  %v2973_v41 = vadd.f32 %v2957_v21, %v9345_v52  ;;  %v3495_v40 = vld [vmem:[%s8989_s11 + $0x10] sm:$0xff] }
 0x470   : > { %v3337_v36 = vmul.f32 %v9333_v22, %v3256_v1  ;;  %v3338_v30 = vmul.f32 %v9333_v22, %v3257_v37  ;;  %v3190_v47 = vpop.permute.xlu2 %3189 }
 0x471   : > { %v3155_v6 = vadd.f32 %v3139_v38, %v2973_v41  ;;  %v3496_v38 = vld [vmem:[%s8989_s11 + $0x18] sm:$0xff] }
 0x472   : > { %v3353_v51 = vadd.f32 %v3337_v36, %v3169_v46  ;;  %v3354_v35 = vadd.f32 %v3338_v30, %v3170_v27 }
 0x474   : > { %v3401_v62 = vpack.c.bf16 %v3353_v51, %v3351_v11  ;;  %v3402_v12 = vpack.c.bf16 %v3354_v35, %v3352_v10 }
 0x475   : > { %v3188_v43 = vpop.permute.xlu0 %3187 }
 0x476   : > { %3439 = vmatpush.bf16.msrb.mxu2 %v3401_v62  ;;  %3468 = vmatpush.bf16.msrb.mxu3 %v3402_v12  ;;  %v3220_v25 = vsel %vm9340_vm6, %v3188_v43, %v3204_v44  ;;  %v3228_v32 = vsel %vm9341_vm8, %v3204_v44, %v3188_v43 }
 0x477   : > { %v3242_v33 = vsel %vm6621_vm11, %v3220_v25, 0.0  ;;  %v3243_v3 = vsel %vm7401_vm9, %v3228_v32, 0.0 }
 0x478   : > { %v3286_v60 = vpop.permute.xlu2 %3285 }
 0x479   : > { %v3323_v48 = vmul.f32 %v3286_v60, %v3242_v33  ;;  %v3324_v50 = vmul.f32 %v3286_v60, %v3243_v3  ;;  %v3494_v3 = vld [vmem:[%s8989_s11 + $0x8] sm:$0xff] }
 0x47a   : > { %3440 = vmatpush.bf16.msrb.mxu2 %v3399_v19  ;;  %3469 = vmatpush.bf16.msrb.mxu3 %v3400_v17  ;;  %v9346_v19 = vld [vmem:[#allocation75_spill] sm:$0xff]  ;;  %v3498_v60 = vld [vmem:[%s8989_s11 + $0x28] sm:$0xff] }
 0x47b   : > { %v2974_v45 = vadd.f32 %v2958_v53, %v9346_v19  ;;  %v3339_v1 = vadd.f32 %v3323_v48, %v3155_v6  ;;  %v3499_v48 = vld [vmem:[%s8989_s11 + $0x30] sm:$0xff] }
 0x47d   : > { %v3206_v0 = vpop.permute.xlu0 %3205  ;;  %v3156_v42 = vadd.f32 %v3140_v57, %v2974_v45  ;;  %v3497_v57 = vld [vmem:[%s8989_s11 + $0x20] sm:$0xff] }
 0x47e   : > { %v3221_v39 = vsel %vm9347_vm3, %v3190_v47, %v3206_v0  ;;  %v3229_v17 = vsel %vm9348_vm13, %v3206_v0, %v3190_v47  ;;  %3441 = vmatpush.bf16.msrb.mxu2 %v3397_v58  ;;  %3470 = vmatpush.bf16.msrb.mxu3 %v3398_v34  ;;  %v3500_v0 = vld [vmem:[%s8989_s11 + $0x38] sm:$0xff] }
 0x47f   : > { %v3244_v2 = vsel %vm6621_vm11, %v3221_v39, 0.0  ;;  %v3245_v56 = vsel %vm7401_vm9, %v3229_v17, 0.0  ;;  %v3340_v14 = vadd.f32 %v3324_v50, %v3156_v42  ;;  %vm9349_vm11 = vcmask 523264  }
 0x480   : > { %v3325_v59 = vmul.f32 %v3291_v54, %v3244_v2  ;;  %v3326_v13 = vmul.f32 %v3291_v54, %v3245_v56  ;;  %vm9350_vm0 = vmmov %vm9349_vm11 }
 0x481   : > { %vm9351_vm9 = vmmov %vm9350_vm0 }
 0x482   : > { %v3341_v37 = vadd.f32 %v3325_v59, %v7266_v24  ;;  %v3342_v16 = vadd.f32 %v3326_v13, %v7268_v61  ;;  %vm9352_vm2 = vmmov %vm9350_vm0  ;;  %v5269_v24 = vld [vmem:[%s8983_s5 + $0x10] sm:$0xff]  ;;  %v5270_v61 = vld [vmem:[%s8983_s5 + $0x18] sm:$0xff] }
 0x483   : > { %vm9353_vm10 = vmmov %vm9350_vm0 }
 0x484   : > { %v3395_v58 = vpack.c.bf16 %v3341_v37, %v3339_v1  ;;  %v3396_v9 = vpack.c.bf16 %v3342_v16, %v3340_v14  ;;  %vm9354_vm4 = vmmov %vm9350_vm0 }
 0x485   : > { %vm9355_vm7 = vmmov %vm9350_vm0 }
 0x486   : > { %3442 = vmatpush.bf16.msrb.mxu2 %v3395_v58  ;;  %3471 = vmatpush.bf16.msrb.mxu3 %v3396_v9  ;;  %vm9356_vm1 = vmmov %vm9350_vm0 }
 0x487   : > { %vm9357_vm14 = vmmov %vm9350_vm0 }
 0x488   : > { %vm9358_vm5 = vmmov %vm9350_vm0 }
 0x489   : > { %5189 = vmatmul.msk.bf16.vlgmr.msrb.gmra.mxu2 %vm9349_vm11, %v5267_v20  ;;  %5193 = vmatmul.msk.bf16.vlgmr.msrb.gmra.mxu3 %vm9350_vm0, %v5267_v20  ;;  %vm9359_vm12 = vmmov %vm9350_vm0 }
 0x48a   : > { %vm9360_vm6 = vmmov %vm9350_vm0 }
 0x48b   : > { %vm9361_vm8 = vmmov %vm9350_vm0 }
 0x48c   : > { %vm9362_vm15 = vmmov %vm9350_vm0 }
 0x48d   : > { %vm9363_vm3 = vmmov %vm9350_vm0 }
 0x48e   : > { %vm9364_vm13 = vmmov %vm9350_vm0 }
 0x48f   : > { %vm9365_vm11 = vmmov %vm9350_vm0 }
 0x499   : > { %5190 = vmatmul.msk.bf16.gmra.mxu2 %vm9351_vm9, %v5268_v8  ;;  %5194 = vmatmul.msk.bf16.gmra.mxu3 %vm9352_vm2, %v5268_v8  ;;  %vm9366_vm9 = vmmov %vm9350_vm0 }
 0x49a   : > { %vm9367_vm2 = vmmov %vm9350_vm0 }
 0x4a9   : > { %5191 = vmatmul.msk.bf16.gmra.mxu2 %vm9353_vm10, %v5269_v24  ;;  %5195 = vmatmul.msk.bf16.gmra.mxu3 %vm9354_vm4, %v5269_v24  ;;  %vm9368_vm10 = vmmov %vm9350_vm0 }
 0x4aa   : > { %vm9369_vm4 = vmmov %vm9350_vm0 }
 0x4b9   : > { %5192 = vmatmul.msk.bf16.gmra.mxu2 %vm9355_vm7, %v5270_v61  ;;  %5196 = vmatmul.msk.bf16.gmra.mxu3 %vm9356_vm1, %v5270_v61  ;;  %vm9370_vm7 = vmmov %vm9350_vm0 }
 0x4ba   : > { %vm9371_vm1 = vmmov %vm9350_vm0 }
 0x50c   : > { %v7935_v31 = vpop.f32.mrf.mxu2  ;;  %v7937_v34 = vpop.f32.mrf.mxu3 }
 0x50d   : > { %v3623_v21 = vmul.f32 %v7935_v31, %v7935_v31  ;;  %v3624_v53 = vmul.f32 %v7937_v34, %v7937_v34 }
 0x514   : > { %v7939_v29 = vpop.f32.mrf.mxu2  ;;  %v7941_v22 = vpop.f32.mrf.mxu3 }
 0x515   : > { %v3625_v5 = vmul.f32 %v7939_v29, %v7939_v29  ;;  %v3626_v33 = vmul.f32 %v7941_v22, %v7941_v22 }
 0x51c   : > { %v7943_v36 = vpop.f32.mrf.mxu2  ;;  %v7945_v30 = vpop.f32.mrf.mxu3 }
 0x51d   : > { %v3627_v32 = vmul.f32 %v7943_v36, %v7943_v36  ;;  %v3628_v15 = vmul.f32 %v7945_v30, %v7945_v30 }
 0x524   : > { %v7947_v46 = vpop.f32.mrf.mxu2  ;;  %v7949_v27 = vpop.f32.mrf.mxu3 }
 0x525   : > { %v3629_v7 = vmul.f32 %v7947_v46, %v7947_v46  ;;  %v3630_v4 = vmul.f32 %v7949_v27, %v7949_v27 }
 0x52c   : > { %v7951_v11 = vpop.f32.mrf.mxu2  ;;  %v7953_v51 = vpop.f32.mrf.mxu3 }
 0x52d   : > { %v3631_v55 = vmul.f32 %v7951_v11, %v7951_v11  ;;  %v3632_v25 = vmul.f32 %v7953_v51, %v7953_v51 }
 0x534   : > { %v7955_v10 = vpop.f32.mrf.mxu2  ;;  %v7957_v35 = vpop.f32.mrf.mxu3 }
 0x535   : > { %v3633_v23 = vmul.f32 %v7955_v10, %v7955_v10  ;;  %v3634_v63 = vmul.f32 %v7957_v35, %v7957_v35 }
 0x53c   : > { %v7959_v47 = vpop.f32.mrf.mxu2  ;;  %v7961_v62 = vpop.f32.mrf.mxu3 }
 0x53d   : > { %v3635_v44 = vmul.f32 %v7959_v47, %v7959_v47  ;;  %v3636_v43 = vmul.f32 %v7961_v62, %v7961_v62 }
 0x544   : > { %v7963_v12 = vpop.f32.mrf.mxu2  ;;  %v7965_v28 = vpop.f32.mrf.mxu3 }
 0x545   : > { %v3637_v18 = vmul.f32 %v7963_v12, %v7963_v12  ;;  %v3638_v49 = vmul.f32 %v7965_v28, %v7965_v28  ;;  %3549 = vmatpush.msra.mxu0 %v7963_v12  ;;  %3590 = vmatpush.msra.mxu1 %v7965_v28 }
 0x547   : > { %3550 = vmatpush.msra.mxu0 %v7959_v47  ;;  %3591 = vmatpush.msra.mxu1 %v7961_v62 }
 0x548   : > { %3647 = vmatpush.msra.mxu2 %v3637_v18  ;;  %3688 = vmatpush.msra.mxu3 %v3638_v49 }
 0x549   : > { %3551 = vmatpush.msra.mxu0 %v7955_v10  ;;  %3592 = vmatpush.msra.mxu1 %v7957_v35 }
 0x54a   : > { %3648 = vmatpush.msra.mxu2 %v3635_v44  ;;  %3689 = vmatpush.msra.mxu3 %v3636_v43 }
 0x54b   : > { %3552 = vmatpush.msra.mxu0 %v7951_v11  ;;  %3593 = vmatpush.msra.mxu1 %v7953_v51 }
 0x54c   : > { %3649 = vmatpush.msra.mxu2 %v3633_v23  ;;  %3690 = vmatpush.msra.mxu3 %v3634_v63 }
 0x54d   : > { %3553 = vmatpush.msra.mxu0 %v7947_v46  ;;  %3594 = vmatpush.msra.mxu1 %v7949_v27 }
 0x54e   : > { %3650 = vmatpush.msra.mxu2 %v3631_v55  ;;  %3691 = vmatpush.msra.mxu3 %v3632_v25 }
 0x54f   : > { %3554 = vmatpush.msra.mxu0 %v7943_v36  ;;  %3595 = vmatpush.msra.mxu1 %v7945_v30 }
 0x550   : > { %3651 = vmatpush.msra.mxu2 %v3629_v7  ;;  %3692 = vmatpush.msra.mxu3 %v3630_v4 }
 0x551   : > { %3555 = vmatpush.msra.mxu0 %v7939_v29  ;;  %3596 = vmatpush.msra.mxu1 %v7941_v22 }
 0x552   : > { %3652 = vmatpush.msra.mxu2 %v3627_v32  ;;  %3693 = vmatpush.msra.mxu3 %v3628_v15 }
 0x553   : > { %3556 = vmatpush.msra.mxu0 %v7935_v31  ;;  %3597 = vmatpush.msra.mxu1 %v7937_v34 }
 0x554   : > { %3653 = vmatpush.msra.mxu2 %v3625_v5  ;;  %3694 = vmatpush.msra.mxu3 %v3626_v33 }
 0x555   : > { %5197 = vmatmul.msk.f32.vlgmr.msra.gmra.mxu0 %vm9357_vm14, %v3493_v26  ;;  %5205 = vmatmul.msk.f32.vlgmr.msra.gmra.mxu1 %vm9358_vm5, %v3493_v26  ;;  %vm9372_vm14 = vmmov %vm9350_vm0 }
 0x556   : > { %3654 = vmatpush.msra.mxu2 %v3623_v21  ;;  %3695 = vmatpush.msra.mxu3 %v3624_v53  ;;  %vm9373_vm5 = vmmov %vm9350_vm0 }
 0x557   : > { %5213 = vmatmul.msk.f32.vlgmr.msra.gmra.mxu2 %vm9359_vm12, %v3493_v26  ;;  %5221 = vmatmul.msk.f32.vlgmr.msra.gmra.mxu3 %vm9360_vm6, %v3493_v26  ;;  %vm9374_vm12 = vmmov %vm9350_vm0 }
 0x558   : > { %vm9375_vm6 = vmmov %vm9350_vm0 }
 0x55d   : > { %5198 = vmatmul.msk.f32.gmra.mxu0 %vm9361_vm8, %v3494_v3  ;;  %5206 = vmatmul.msk.f32.gmra.mxu1 %vm9362_vm15, %v3494_v3  ;;  %vm9376_vm8 = vmmov %vm9350_vm0 }
 0x55e   : > { %vm9377_vm15 = vmmov %vm9350_vm0 }
 0x55f   : > { %5214 = vmatmul.msk.f32.gmra.mxu2 %vm9363_vm3, %v3494_v3  ;;  %5222 = vmatmul.msk.f32.gmra.mxu3 %vm9364_vm13, %v3494_v3  ;;  %vm9378_vm3 = vmmov %vm9350_vm0 }
 0x560   : > { %vm9379_vm13 = vmmov %vm9350_vm0 }
 0x565   : > { %5199 = vmatmul.msk.f32.gmra.mxu0 %vm9365_vm11, %v3495_v40  ;;  %5207 = vmatmul.msk.f32.gmra.mxu1 %vm9350_vm0, %v3495_v40  ;;  %vm9380_vm11 = vmmov %vm9350_vm0 }
 0x567   : > { %5215 = vmatmul.msk.f32.gmra.mxu2 %vm9366_vm9, %v3495_v40  ;;  %5223 = vmatmul.msk.f32.gmra.mxu3 %vm9367_vm2, %v3495_v40  ;;  %vm9381_vm9 = vmmov %vm9350_vm0 }
 0x568   : > { %vm9382_vm2 = vmmov %vm9350_vm0 }
 0x56d   : > { %5200 = vmatmul.msk.f32.gmra.mxu0 %vm9368_vm10, %v3496_v38  ;;  %5208 = vmatmul.msk.f32.gmra.mxu1 %vm9369_vm4, %v3496_v38  ;;  %vm9383_vm10 = vmmov %vm9350_vm0 }
 0x56e   : > { %vm9384_vm4 = vmmov %vm9350_vm0 }
 0x56f   : > { %5216 = vmatmul.msk.f32.gmra.mxu2 %vm9370_vm7, %v3496_v38  ;;  %5224 = vmatmul.msk.f32.gmra.mxu3 %vm9371_vm1, %v3496_v38  ;;  %vm9385_vm7 = vmmov %vm9350_vm0 }
 0x570   : > { %vm9386_vm1 = vmmov %vm9350_vm0 }
 0x575   : > { %5201 = vmatmul.msk.f32.gmra.mxu0 %vm9372_vm14, %v3497_v57  ;;  %5209 = vmatmul.msk.f32.gmra.mxu1 %vm9373_vm5, %v3497_v57 }
 0x577   : > { %5217 = vmatmul.msk.f32.gmra.mxu2 %vm9374_vm12, %v3497_v57  ;;  %5225 = vmatmul.msk.f32.gmra.mxu3 %vm9375_vm6, %v3497_v57 }
 0x57d   : > { %5202 = vmatmul.msk.f32.gmra.mxu0 %vm9376_vm8, %v3498_v60  ;;  %5210 = vmatmul.msk.f32.gmra.mxu1 %vm9377_vm15, %v3498_v60 }
 0x57f   : > { %5218 = vmatmul.msk.f32.gmra.mxu2 %vm9378_vm3, %v3498_v60  ;;  %5226 = vmatmul.msk.f32.gmra.mxu3 %vm9379_vm13, %v3498_v60 }
 0x585   : > { %5203 = vmatmul.msk.f32.gmra.mxu0 %vm9380_vm11, %v3499_v48  ;;  %5211 = vmatmul.msk.f32.gmra.mxu1 %vm9350_vm0, %v3499_v48 }
 0x587   : > { %5219 = vmatmul.msk.f32.gmra.mxu2 %vm9381_vm9, %v3499_v48  ;;  %5227 = vmatmul.msk.f32.gmra.mxu3 %vm9382_vm2, %v3499_v48 }
 0x58d   : > { %5204 = vmatmul.msk.f32.gmra.mxu0 %vm9383_vm10, %v3500_v0  ;;  %5212 = vmatmul.msk.f32.gmra.mxu1 %vm9384_vm4, %v3500_v0 }
 0x58f   : > { %5220 = vmatmul.msk.f32.gmra.mxu2 %vm9385_vm7, %v3500_v0  ;;  %5228 = vmatmul.msk.f32.gmra.mxu3 %vm9386_vm1, %v3500_v0 }
 0x5d2   : > { %v3558_v52 = vpop.f32.mrf.mxu0  ;;  %v3599_v41 = vpop.f32.mrf.mxu1 }
 0x5d3   : > { %v3721_v19 = vadd.f32 %v3599_v41, %v3558_v52 }
 0x5da   : > { %v3561_v45 = vpop.f32.mrf.mxu0  ;;  %v3602_v50 = vpop.f32.mrf.mxu1 }
 0x5db   : > { %v3656_v39 = vpop.f32.mrf.mxu2  ;;  %v3697_v17 = vpop.f32.mrf.mxu3  ;;  %v3724_v38 = vadd.f32 %v3602_v50, %v3561_v45 }
 0x5dc   : > { %v3753_v48 = vadd.f32 %v3697_v17, %v3656_v39 }
 0x5e2   : > { %v3564_v54 = vpop.f32.mrf.mxu0  ;;  %v3605_v2 = vpop.f32.mrf.mxu1 }
 0x5e3   : > { %v3727_v56 = vadd.f32 %v3605_v2, %v3564_v54  ;;  %v3659_v59 = vpop.f32.mrf.mxu2  ;;  %v3700_v13 = vpop.f32.mrf.mxu3 }
 0x5e4   : > { %v3756_v6 = vadd.f32 %v3700_v13, %v3659_v59 }
 0x5e5   : > { %3728 = vadd.xlane.f32.xlu1 %v3727_v56 }
 0x5ea   : > { %v3567_v42 = vpop.f32.mrf.mxu0  ;;  %v3608_v1 = vpop.f32.mrf.mxu1 }
 0x5eb   : > { %v3730_v37 = vadd.f32 %v3608_v1, %v3567_v42  ;;  %v3662_v14 = vpop.f32.mrf.mxu2  ;;  %v3703_v16 = vpop.f32.mrf.mxu3 }
 0x5ec   : > { %v3759_v58 = vadd.f32 %v3703_v16, %v3662_v14 }
 0x5ed   : > { %3731 = vadd.xlane.f32.xlu2 %v3730_v37 }
 0x5ee   : > { %3760 = vadd.xlane.f32.xlu0 %v3759_v58 }
 0x5f2   : > { %v3570_v9 = vpop.f32.mrf.mxu0  ;;  %v3611_v20 = vpop.f32.mrf.mxu1 }
 0x5f3   : > { %v3733_v8 = vadd.f32 %v3611_v20, %v3570_v9  ;;  %v3665_v24 = vpop.f32.mrf.mxu2  ;;  %v3706_v61 = vpop.f32.mrf.mxu3 }
 0x5f4   : > { %v3762_v18 = vadd.f32 %v3706_v61, %v3665_v24 }
 0x5f6   : > { %3763 = vadd.xlane.f32.xlu1 %v3762_v18  ;;  %3734 = vadd.xlane.f32.xlu0 %v3733_v8 }
 0x5fa   : > { %v3573_v49 = vpop.f32.mrf.mxu0  ;;  %v3614_v44 = vpop.f32.mrf.mxu1 }
 0x5fb   : > { %v3736_v43 = vadd.f32 %v3614_v44, %v3573_v49  ;;  %v3668_v23 = vpop.f32.mrf.mxu2  ;;  %v3709_v63 = vpop.f32.mrf.mxu3 }
 0x5fc   : > { %v3765_v55 = vadd.f32 %v3709_v63, %v3668_v23 }
 0x5fe   : > { %3766 = vadd.xlane.f32.xlu2 %v3765_v55  ;;  %3737 = vadd.xlane.f32.xlu1 %v3736_v43 }
 0x602   : > { %v3576_v25 = vpop.f32.mrf.mxu0  ;;  %v3617_v7 = vpop.f32.mrf.mxu1 }
 0x603   : > { %v3739_v4 = vadd.f32 %v3617_v7, %v3576_v25  ;;  %v3671_v32 = vpop.f32.mrf.mxu2  ;;  %v3712_v15 = vpop.f32.mrf.mxu3 }
 0x604   : > { %v3768_v26 = vadd.f32 %v3712_v15, %v3671_v32 }
 0x605   : > { %3740 = vadd.xlane.f32.xlu0 %v3739_v4  ;;  %v3503_v4 = vld [vmem:[%s8984_s6 + $0x10] sm:$0xff] }
 0x60a   : > { %v3579_v5 = vpop.f32.mrf.mxu0  ;;  %v3620_v33 = vpop.f32.mrf.mxu1 }
 0x60b   : > { %v3742_v21 = vadd.f32 %v3620_v33, %v3579_v5  ;;  %v3674_v53 = vpop.f32.mrf.mxu2  ;;  %v3715_v3 = vpop.f32.mrf.mxu3 }
 0x60c   : > { %v3771_v40 = vadd.f32 %v3715_v3, %v3674_v53 }
 0x60d   : > { %3769 = vadd.xlane.f32.xlu0 %v3768_v26  ;;  %3743 = vadd.xlane.f32.xlu2 %v3742_v21 }
 0x60e   : > { %3772 = vadd.xlane.f32.xlu1 %v3771_v40 }
 0x613   : > { %v3677_v57 = vpop.f32.mrf.mxu2  ;;  %v3718_v60 = vpop.f32.mrf.mxu3 }
 0x614   : > { %v3774_v0 = vadd.f32 %v3718_v60, %v3677_v57 }
 0x615   : > { %3725 = vadd.xlane.f32.xlu0 %v3724_v38 }
 0x616   : > { %3754 = vadd.xlane.f32.xlu1 %v3753_v48  ;;  %3775 = vadd.xlane.f32.xlu2 %v3774_v0 }
 0x61e   : > { %3722 = vadd.xlane.f32.xlu2 %v3721_v19 }
 0x626   : > { %3757 = vadd.xlane.f32.xlu2 %v3756_v6 }
 0x658   : > { %v3729_v52 = vpop.xlane.xlu1 %3728 }
 0x659   : > { %v8071_v41 = vmul.f32 0.00048828125, %v3729_v52 }
 0x65b   : > { %v3787_v2 = vmul.f32 %v8071_v41, %v8071_v41 }
 0x660   : > { %v3732_v59 = vpop.xlane.xlu2 %3731 }
 0x661   : > { %v3761_v54 = vpop.xlane.xlu0 %3760  ;;  %v8075_v50 = vmul.f32 0.00048828125, %v3732_v59 }
 0x662   : > { %v3779_v56 = vmul.f32 0.00048828125, %v3761_v54 }
 0x663   : > { %v3788_v19 = vmul.f32 %v8075_v50, %v8075_v50 }
 0x664   : > { %v3795_v13 = vsub.f32 %v3779_v56, %v3787_v2  ;;  %v3504_v56 = vld [vmem:[%s8984_s6 + $0x18] sm:$0xff] }
 0x666   : > { %v3803_v45 = vmax.f32 %v3795_v13, 0.0 }
 0x668   : > { %v3811_v39 = vadd.f32 1e-05, %v3803_v45 }
 0x669   : > { %v3764_v17 = vpop.xlane.xlu1 %3763  ;;  %v3735_v42 = vpop.xlane.xlu0 %3734 }
 0x66a   : > { %5340 = vrsqrt.f32 %v3811_v39  ;;  %v3780_v6 = vmul.f32 0.00048828125, %v3764_v17  ;;  %v8079_v14 = vmul.f32 0.00048828125, %v3735_v42  ;;  %vm3843_vm5 = vweird.f32 %v3811_v39 }
 0x66c   : > { %v3796_v1 = vsub.f32 %v3780_v6, %v3788_v19  ;;  %v3789_v8 = vmul.f32 %v8079_v14, %v8079_v14 }
 0x66e   : > { %v3804_v37 = vmax.f32 %v3796_v1, 0.0 }
 0x670   : > { %v5341_v16 = vpop.eup %5340  ;;  %v3812_v58 = vadd.f32 1e-05, %v3804_v37 }
 0x671   : > { %v3838_v9 = vmul.f32 %v5341_v16, %v3811_v39  ;;  %v3767_v20 = vpop.xlane.xlu2 %3766  ;;  %vm3844_vm14 = vweird.f32 %v5341_v16  ;;  %v3738_v7 = vpop.xlane.xlu1 %3737 }
 0x672   : > { %5342 = vrsqrt.f32 %v3812_v58  ;;  %v3781_v24 = vmul.f32 0.00048828125, %v3767_v20  ;;  %vm3845_vm12 = vmor %vm3843_vm5, %vm3844_vm14  ;;  %v8088_v21 = vmul.f32 0.00048828125, %v3738_v7  ;;  %vm3853_vm8 = vweird.f32 %v3812_v58 }
 0x673   : > { %v3839_v61 = vmul.f32 %v5341_v16, %v3838_v9 }
 0x674   : > { %v3797_v18 = vsub.f32 %v3781_v24, %v3789_v8  ;;  %v3790_v48 = vmul.f32 %v8088_v21, %v8088_v21  ;;  %v3505_v8 = vld [vmem:[%s8984_s6 + $0x20] sm:$0xff] }
 0x675   : > { %v3840_v49 = vmul.f32 0.5, %v3839_v61 }
 0x676   : > { %v3805_v44 = vmax.f32 %v3797_v18, 0.0 }
 0x677   : > { %v3841_v43 = vsub.f32 1.5, %v3840_v49 }
 0x678   : > { %v5343_v23 = vpop.eup %5342  ;;  %v3813_v63 = vadd.f32 1e-05, %v3805_v44  ;;  %v3741_v55 = vpop.xlane.xlu0 %3740 }
 0x679   : > { %v3848_v25 = vmul.f32 %v5343_v23, %v3812_v58  ;;  %v3842_v32 = vmul.f32 %v5341_v16, %v3841_v43  ;;  %v8090_v53 = vmul.f32 0.00048828125, %v3741_v55  ;;  %vm3854_vm6 = vweird.f32 %v5343_v23 }
 0x67a   : > { %5344 = vrsqrt.f32 %v3813_v63  ;;  %vm3855_vm15 = vmor %vm3853_vm8, %vm3854_vm6  ;;  %vm3863_vm13 = vweird.f32 %v3813_v63 }
 0x67b   : > { %v3849_v15 = vmul.f32 %v5343_v23, %v3848_v25  ;;  %v3846_v5 = vsel %vm3845_vm12, %v5341_v16, %v3842_v32  ;;  %v3791_v54 = vmul.f32 %v8090_v53, %v8090_v53 }
 0x67c   : > { %v8086_v33 = vmul.f32 %v3846_v5, %v3503_v4 }
 0x67d   : > { %v3850_v26 = vmul.f32 0.5, %v3849_v15 }
 0x67e   : > { %3933 = vperm.xlu0 %5290, %v8086_v33  }
 0x67f   : > { %v3851_v3 = vsub.f32 1.5, %v3850_v26 }
 0x680   : > { %v5345_v40 = vpop.eup %5344  ;;  %v3770_v38 = vpop.xlane.xlu0 %3769 }
 0x681   : > { %v3744_v57 = vpop.xlane.xlu2 %3743  ;;  %v3858_v60 = vmul.f32 %v5345_v40, %v3813_v63  ;;  %v3773_v0 = vpop.xlane.xlu1 %3772  ;;  %v3782_v52 = vmul.f32 0.00048828125, %v3770_v38  ;;  %v3852_v59 = vmul.f32 %v5343_v23, %v3851_v3  ;;  %vm3864_vm3 = vweird.f32 %v5345_v40  ;;  %v3513_v3 = vld [vmem:[%s8985_s7 + $0x20] sm:$0xff] }
 0x682   : > { %v3783_v2 = vmul.f32 0.00048828125, %v3773_v0  ;;  %v8102_v37 = vmul.f32 0.00048828125, %v3744_v57  ;;  %vm3865_vm11 = vmor %vm3863_vm13, %vm3864_vm3 }
 0x683   : > { %v3859_v13 = vmul.f32 %v5345_v40, %v3858_v60  ;;  %v3798_v45 = vsub.f32 %v3782_v52, %v3790_v48  ;;  %v3856_v17 = vsel %vm3855_vm15, %v5343_v23, %v3852_v59 }
 0x684   : > { %v3799_v39 = vsub.f32 %v3783_v2, %v3791_v54  ;;  %v8100_v42 = vmul.f32 %v3856_v17, %v3504_v56  ;;  %v3792_v61 = vmul.f32 %v8102_v37, %v8102_v37 }
 0x685   : > { %v3860_v19 = vmul.f32 0.5, %v3859_v13  ;;  %v3806_v6 = vmax.f32 %v3798_v45, 0.0 }
 0x686   : > { %v3807_v1 = vmax.f32 %v3799_v39, 0.0  ;;  %3938 = vperm.xlu2 %5291, %v8100_v42  }
 0x687   : > { %v3861_v16 = vsub.f32 1.5, %v3860_v19  ;;  %v3814_v58 = vadd.f32 1e-05, %v3806_v6 }
 0x688   : > { %v3815_v9 = vadd.f32 1e-05, %v3807_v1  ;;  %v3726_v38 = vpop.xlane.xlu0 %3725 }
 0x689   : > { %5346 = vrsqrt.f32 %v3814_v58  ;;  %v3776_v20 = vpop.xlane.xlu2 %3775  ;;  %v3862_v24 = vmul.f32 %v5345_v40, %v3861_v16  ;;  %v3755_v32 = vpop.xlane.xlu1 %3754  ;;  %v8118_v56 = vmul.f32 0.00048828125, %v3726_v38  ;;  %vm3873_vm2 = vweird.f32 %v3814_v58  ;;  %v3507_v16 = vld [vmem:[%s8984_s6 + $0x30] sm:$0xff] }
 0x68a   : > { %5348 = vrsqrt.f32 %v3815_v9  ;;  %v3784_v18 = vmul.f32 0.00048828125, %v3776_v20  ;;  %v3777_v48 = vmul.f32 0.00048828125, %v3755_v32  ;;  %vm3883_vm10 = vweird.f32 %v3815_v9 }
 0x68b   : > { %v3866_v49 = vsel %vm3865_vm11, %v5345_v40, %v3862_v24  ;;  %v3786_v20 = vmul.f32 %v8118_v56, %v8118_v56 }
 0x68c   : > { %v3800_v44 = vsub.f32 %v3784_v18, %v3792_v61  ;;  %v3901_v43 = vmul.f32 %v3866_v49, %v3505_v8 }
 0x68e   : > { %v3808_v23 = vmax.f32 %v3800_v44, 0.0  ;;  %3943 = vperm.xlu1 %5289, %v3901_v43   ;;  %v3909_v57 = vmul.f32 %v3901_v43, %v8079_v14  ;;  %v3506_v14 = vld [vmem:[%s8984_s6 + $0x28] sm:$0xff] }
 0x68f   : > { %v5347_v55 = vpop.eup %5346 }
 0x690   : > { %v5349_v63 = vpop.eup %5348  ;;  %v3868_v25 = vmul.f32 %v5347_v55, %v3814_v58  ;;  %v3816_v7 = vadd.f32 1e-05, %v3808_v23  ;;  %v3917_v54 = vsub.f32 %v3513_v3, %v3909_v57  ;;  %vm3874_vm0 = vweird.f32 %v5347_v55 }
 0x691   : > { %v3878_v4 = vmul.f32 %v5349_v63, %v3815_v9  ;;  %v3723_v15 = vpop.xlane.xlu2 %3722  ;;  %vm3884_vm9 = vweird.f32 %v5349_v63  ;;  %vm3875_vm4 = vmor %vm3873_vm2, %vm3874_vm0  ;;  %v3514_v9 = vld [vmem:[%s8985_s7 + $0x28] sm:$0xff] }
 0x692   : > { %v3869_v5 = vmul.f32 %v5347_v55, %v3868_v25  ;;  %5350 = vrsqrt.f32 %v3816_v7  ;;  %v8110_v26 = vmul.f32 0.00048828125, %v3723_v15  ;;  %3999 = vperm.xlu2 %5291, %v3917_v54   ;;  %vm3885_vm7 = vmor %vm3883_vm10, %vm3884_vm9  ;;  %vm3893_vm14 = vweird.f32 %v3816_v7 }
 0x693   : > { %v3879_v40 = vmul.f32 %v5349_v63, %v3878_v4  ;;  %v3515_v4 = vld [vmem:[%s8985_s7 + $0x30] sm:$0xff] }
 0x694   : > { %v3870_v60 = vmul.f32 0.5, %v3869_v5  ;;  %v3785_v0 = vmul.f32 %v8110_v26, %v8110_v26 }
 0x695   : > { %v3880_v52 = vmul.f32 0.5, %v3879_v40  ;;  %v3508_v40 = vld [vmem:[%s8984_s6 + $0x38] sm:$0xff] }
 0x696   : > { %v3871_v2 = vsub.f32 1.5, %v3870_v60  ;;  %v3793_v59 = vsub.f32 %v3777_v48, %v3785_v0 }
 0x697   : > { %v3881_v13 = vsub.f32 1.5, %v3880_v52 }
 0x698   : > { %v5351_v45 = vpop.eup %5350  ;;  %v3801_v39 = vmax.f32 %v3793_v59, 0.0  ;;  %v3872_v17 = vmul.f32 %v5347_v55, %v3871_v2 }
 0x699   : > { %v3882_v19 = vmul.f32 %v5349_v63, %v3881_v13  ;;  %v3888_v6 = vmul.f32 %v5351_v45, %v3816_v7  ;;  %v3758_v1 = vpop.xlane.xlu2 %3757  ;;  %vm3894_vm1 = vweird.f32 %v5351_v45  ;;  %v3516_v7 = vld [vmem:[%s8985_s7 + $0x38] sm:$0xff]  ;;  %v3907_v13 = vmul.f32 %v8086_v33, %v8071_v41 }
 0x69a   : > { %v3809_v58 = vadd.f32 1e-05, %v3801_v39  ;;  %v3778_v8 = vmul.f32 0.00048828125, %v3758_v1  ;;  %v3876_v24 = vsel %vm3875_vm4, %v5347_v55, %v3872_v17  ;;  %vm3895_vm5 = vmor %vm3893_vm14, %vm3894_vm1  ;;  %v3511_v17 = vld [vmem:[%s8985_s7 + $0x10] sm:$0xff]  ;;  %v3908_v33 = vmul.f32 %v8100_v42, %v8075_v50  ;;  %v3510_v50 = vld [vmem:[%s8985_s7 + $0x8] sm:$0xff] }
 0x69b   : > { %v3886_v61 = vsel %vm3885_vm7, %v5349_v63, %v3882_v19  ;;  %v3889_v18 = vmul.f32 %v5351_v45, %v3888_v6  ;;  %v3902_v49 = vmul.f32 %v3876_v24, %v3506_v14  ;;  %v3915_v41 = vsub.f32 %v3511_v17, %v3907_v13 }
 0x69c   : > { %5352 = vrsqrt.f32 %v3809_v58  ;;  %v3794_v44 = vsub.f32 %v3778_v8, %v3786_v20  ;;  %v3903_v43 = vmul.f32 %v3886_v61, %v3507_v16  ;;  %vm3823_vm6 = vweird.f32 %v3809_v58  ;;  %v3512_v20 = vld [vmem:[%s8985_s7 + $0x18] sm:$0xff] }
 0x69d   : > { %v3890_v23 = vmul.f32 0.5, %v3889_v18  ;;  %3948 = vperm.xlu0 %5290, %v3902_v49   ;;  %v3910_v25 = vmul.f32 %v3902_v49, %v8088_v21  ;;  %v3916_v24 = vsub.f32 %v3512_v20, %v3908_v33 }
 0x69e   : > { %v3802_v32 = vmax.f32 %v3794_v44, 0.0  ;;  %v3911_v55 = vmul.f32 %v3903_v43, %v8090_v53  ;;  %v3509_v44 = vld [vmem:[%s8985_s7] sm:$0xff] }
 0x69f   : > { %v3891_v63 = vsub.f32 1.5, %v3890_v23  ;;  %v3918_v15 = vsub.f32 %v3514_v9, %v3910_v25 }
 0x6a0   : > { %v3810_v5 = vadd.f32 1e-05, %v3802_v32  ;;  %v3919_v3 = vsub.f32 %v3515_v4, %v3911_v55 }
 0x6a1   : > { %4004 = vperm.xlu1 %5289, %v3918_v15   ;;  %v3892_v38 = vmul.f32 %v5351_v45, %v3891_v63 }
 0x6a2   : > { %v5353_v21 = vpop.eup %5352  ;;  %5354 = vrsqrt.f32 %v3810_v5  ;;  %4009 = vperm.xlu2 %5291, %v3919_v3   ;;  %vm3833_vm3 = vweird.f32 %v3810_v5 }
 0x6a3   : > { %v3818_v57 = vmul.f32 %v5353_v21, %v3809_v58  ;;  %v3896_v60 = vsel %vm3895_vm5, %v5351_v45, %v3892_v38  ;;  %vm3824_vm12 = vweird.f32 %v5353_v21  ;;  %v3501_v45 = vld [vmem:[%s8984_s6] sm:$0xff]  ;;  %v3502_v58 = vld [vmem:[%s8984_s6 + $0x8] sm:$0xff] }
 0x6a4   : > { %v3904_v48 = vmul.f32 %v3896_v60, %v3508_v40  ;;  %vm3825_vm8 = vmor %vm3823_vm6, %vm3824_vm12 }
 0x6a5   : > { %v3819_v53 = vmul.f32 %v5353_v21, %v3818_v57  ;;  %3953 = vperm.xlu0 %5290, %v3903_v43  }
 0x6a6   : > { %v3912_v52 = vmul.f32 %v3904_v48, %v8102_v37 }
 0x6a7   : > { %v3820_v0 = vmul.f32 0.5, %v3819_v53 }
 0x6a8   : > { %v5355_v54 = vpop.eup %5354  ;;  %v3920_v37 = vsub.f32 %v3516_v7, %v3912_v52 }
 0x6a9   : > { %v3821_v2 = vsub.f32 1.5, %v3820_v0  ;;  %v3828_v59 = vmul.f32 %v5355_v54, %v3810_v5  ;;  %3958 = vperm.xlu1 %5289, %v3904_v48   ;;  %vm3834_vm15 = vweird.f32 %v5355_v54 }
 0x6aa   : > { %vm3835_vm13 = vmor %vm3833_vm3, %vm3834_vm15 }
 0x6ab   : > { %v3822_v39 = vmul.f32 %v5353_v21, %v3821_v2  ;;  %v3829_v14 = vmul.f32 %v5355_v54, %v3828_v59 }
 0x6ad   : > { %v3826_v19 = vsel %vm3825_vm8, %v5353_v21, %v3822_v39  ;;  %v3830_v6 = vmul.f32 0.5, %v3829_v14  ;;  %4014 = vperm.xlu0 %5290, %v3920_v37  }
 0x6ae   : > { %v3897_v1 = vmul.f32 %v3826_v19, %v3501_v45 }
 0x6af   : > { %v3831_v16 = vsub.f32 1.5, %v3830_v6 }
 0x6b0   : > { %3923 = vperm.xlu2 %5291, %v3897_v1   ;;  %v3905_v49 = vmul.f32 %v3897_v1, %v8110_v26 }
 0x6b1   : > { %3989 = vperm.xlu1 %5289, %v3915_v41   ;;  %v3832_v8 = vmul.f32 %v5355_v54, %v3831_v16 }
 0x6b2   : > { %v3913_v43 = vsub.f32 %v3509_v44, %v3905_v49 }
 0x6b3   : > { %v3836_v61 = vsel %vm3835_vm13, %v5355_v54, %v3832_v8 }
 0x6b4   : > { %v3898_v18 = vmul.f32 %v3836_v61, %v3502_v58 }
 0x6b5   : > { %3994 = vperm.xlu0 %5290, %v3916_v24  }
 0x6b6   : > { %v3906_v42 = vmul.f32 %v3898_v18, %v8118_v56 }
 0x6b8   : > { %v3914_v9 = vsub.f32 %v3510_v50, %v3906_v42 }
 0x6b9   : > { %3928 = vperm.xlu1 %5289, %v3898_v18  }
 0x6ba   : > { %3984 = vperm.xlu2 %5291, %v3914_v9  }
 0x6bd   : > { %3979 = vperm.xlu0 %5290, %v3913_v43  }
 0x6e0   : > { %v8175_v56 = vpop.permute.xlu2 %3938 }
 0x6ec   : > { %v4000_v3 = vpop.permute.xlu2 %3999 }
 0x6f0   : > { %v8167_v23 = vpop.permute.xlu0 %3933 }
 0x6fc   : > { %v4010_v54 = vpop.permute.xlu2 %4009 }
 0x700   : > { %v3944_v25 = vpop.permute.xlu1 %3943 }
 0x701   : > { %v3969_v40 = vmul.f32 %v3944_v25, %v7951_v11  ;;  %v3970_v38 = vmul.f32 %v3944_v25, %v7953_v51 }
 0x703   : > { %v8185_v57 = vadd.f32 %v4000_v3, %v3969_v40  ;;  %v8189_v48 = vadd.f32 %v4000_v3, %v3970_v38 }
 0x705   : > { %9387 = vst [vmem:[#allocation43_spill] sm:$0xff] %v8189_v48  ;;  %v8193_v7 = vmul.f32 0.70710677, %v8185_v57 }
 0x707   : > { %v4385_v59 = vmul.f32 %v8193_v7, %v8193_v7 }
 0x709   : > { %v8216_v17 = vmin.f32 %v4385_v59, 16.0 }
 0x70b   : > { %v4387_v33 = vmul.f32 2.1237322e-06, %v8216_v17 }
 0x70d   : > { %v4388_v42 = vadd.f32 0.00028619796, %v4387_v33 }
 0x70f   : > { %v3949_v4 = vpop.permute.xlu0 %3948 }
 0x710   : > { %v3971_v55 = vmul.f32 %v3949_v4, %v7955_v10  ;;  %v3972_v10 = vmul.f32 %v3949_v4, %v7957_v35  ;;  %v8201_v35 = vmul.f32 0.70710677, %v8189_v48 }
 0x712   : > { %9388 = vst [vmem:[#allocation45_spill] sm:$0xff] %v8201_v35  ;;  %v4425_v39 = vmul.f32 %v8201_v35, %v8201_v35 }
 0x713   : > { %v4005_v32 = vpop.permute.xlu1 %4004 }
 0x714   : > { %v8170_v63 = vadd.f32 %v4005_v32, %v3971_v55  ;;  %v8187_v60 = vadd.f32 %v4005_v32, %v3972_v10  ;;  %v8224_v16 = vmin.f32 %v4425_v39, 16.0  ;;  %v4389_v55 = vmul.f32 %v4388_v42, %v8216_v17 }
 0x716   : > { %v8173_v26 = vmul.f32 0.70710677, %v8170_v63  ;;  %v8196_v11 = vmul.f32 0.70710677, %v8187_v60  ;;  %v4427_v61 = vmul.f32 2.1237322e-06, %v8224_v16 }
 0x717   : > { %v3954_v0 = vpop.permute.xlu0 %3953 }
 0x718   : > { %v4465_v15 = vmul.f32 %v8173_v26, %v8173_v26  ;;  %v3973_v52 = vmul.f32 %v3954_v0, %v7959_v47  ;;  %v4505_v47 = vmul.f32 %v8196_v11, %v8196_v11  ;;  %v3974_v45 = vmul.f32 %v3954_v0, %v7961_v62 }
 0x719   : > { %v4428_v43 = vadd.f32 0.00028619796, %v4427_v61 }
 0x71a   : > { %v8179_v5 = vmin.f32 %v4465_v15, 16.0  ;;  %v8198_v51 = vadd.f32 %v4010_v54, %v3973_v52  ;;  %v8220_v6 = vmin.f32 %v4505_v47, 16.0  ;;  %v8222_v1 = vadd.f32 %v4010_v54, %v3974_v45 }
 0x71b   : > { %v4390_v52 = vadd.f32 0.0036580483, %v4389_v55 }
 0x71c   : > { %v4478_v21 = vmul.f32 3.8918573e-05, %v8179_v5  ;;  %v8207_v13 = vmul.f32 0.70710677, %v8198_v51  ;;  %v4467_v20 = vmul.f32 2.1237322e-06, %v8179_v5 }
 0x71d   : > { %v4518_v8 = vmul.f32 3.8918573e-05, %v8220_v6  ;;  %v8232_v24 = vmul.f32 0.70710677, %v8222_v1  ;;  %v4507_v3 = vmul.f32 2.1237322e-06, %v8220_v6 }
 0x71e   : > { %v4479_v53 = vadd.f32 0.001143296, %v4478_v21  ;;  %v4545_v37 = vmul.f32 %v8207_v13, %v8207_v13  ;;  %v4468_v49 = vadd.f32 0.00028619796, %v4467_v20  ;;  %v4429_v21 = vmul.f32 %v4428_v43, %v8224_v16 }
 0x71f   : > { %v4519_v44 = vadd.f32 0.001143296, %v4518_v8  ;;  %v4585_v9 = vmul.f32 %v8232_v24, %v8232_v24  ;;  %v4015_v43 = vpop.permute.xlu0 %4014 }
 0x720   : > { %v4480_v2 = vmul.f32 %v4479_v53, %v8179_v5  ;;  %v8218_v19 = vmin.f32 %v4545_v37, 16.0  ;;  %v4469_v15 = vmul.f32 %v4468_v49, %v8179_v5  ;;  %v4430_v45 = vadd.f32 0.0036580483, %v4429_v21 }
 0x721   : > { %v8239_v32 = vmin.f32 %v4585_v9, 16.0  ;;  %v4520_v40 = vmul.f32 %v4519_v44, %v8220_v6  ;;  %v4391_v37 = vmul.f32 %v4390_v52, %v8216_v17  ;;  %v3959_v9 = vpop.permute.xlu1 %3958 }
 0x722   : > { %v4481_v14 = vadd.f32 0.014752088, %v4480_v2  ;;  %v4558_v62 = vmul.f32 3.8918573e-05, %v8218_v19  ;;  %v4470_v54 = vadd.f32 0.0036580483, %v4469_v15  ;;  %v3975_v55 = vmul.f32 %v3959_v9, %v7963_v12 }
 0x723   : > { %v4598_v38 = vmul.f32 3.8918573e-05, %v8239_v32  ;;  %v4508_v2 = vadd.f32 0.00028619796, %v4507_v3  ;;  %v4521_v59 = vadd.f32 0.014752088, %v4520_v40 }
 0x724   : > { %v4482_v41 = vmul.f32 %v4481_v14, %v8179_v5  ;;  %v4559_v58 = vadd.f32 0.001143296, %v4558_v62  ;;  %v4547_v15 = vmul.f32 2.1237322e-06, %v8218_v19  ;;  %v8264_v21 = vadd.f32 %v4015_v43, %v3975_v55 }
 0x725   : > { %v4599_v0 = vadd.f32 0.001143296, %v4598_v38  ;;  %v4509_v33 = vmul.f32 %v4508_v2, %v8220_v6  ;;  %v4522_v20 = vmul.f32 %v4521_v59, %v8220_v6 }
 0x726   : > { %v4483_v18 = vadd.f32 0.112945676, %v4482_v41  ;;  %v4560_v50 = vmul.f32 %v4559_v58, %v8218_v19  ;;  %v4471_v41 = vmul.f32 %v4470_v54, %v8179_v5  ;;  %v4431_v58 = vmul.f32 %v4430_v45, %v8224_v16 }
 0x727   : > { %v4600_v47 = vmul.f32 %v4599_v0, %v8239_v32  ;;  %v4510_v49 = vadd.f32 0.0036580483, %v4509_v33  ;;  %v4523_v44 = vadd.f32 0.112945676, %v4522_v20  ;;  %v8271_v54 = vmul.f32 0.70710677, %v8264_v21 }
 0x728   : > { %v4484_v25 = vmul.f32 %v4483_v18, %v8179_v5  ;;  %v4561_v4 = vadd.f32 0.014752088, %v4560_v50  ;;  %v4392_v18 = vadd.f32 0.05243302, %v4391_v37  ;;  %v4472_v50 = vadd.f32 0.05243302, %v4471_v41 }
 0x729   : > { %v4601_v62 = vadd.f32 0.014752088, %v4600_v47  ;;  %v4548_v12 = vadd.f32 0.00028619796, %v4547_v15  ;;  %v8280_v41 = vmul.f32 %v8175_v56, %v7947_v46  ;;  %v4587_v20 = vmul.f32 2.1237322e-06, %v8239_v32 }
 0x72a   : > { %v4485_v10 = vadd.f32 0.4994258, %v4484_v25  ;;  %v4562_v53 = vmul.f32 %v4561_v4, %v8218_v19  ;;  %v4432_v25 = vadd.f32 0.05243302, %v4431_v58  ;;  %v4393_v3 = vmul.f32 %v4392_v18, %v8216_v17 }
 0x72b   : > { %v4602_v42 = vmul.f32 %v4601_v62, %v8239_v32  ;;  %v4473_v40 = vmul.f32 %v4472_v50, %v8179_v5  ;;  %v3976_v18 = vmul.f32 %v3959_v9, %v7965_v28  ;;  %v3965_v28 = vmul.f32 %v8167_v23, %v7943_v36 }
 0x72c   : > { %v4486_v39 = vmul.f32 %v4485_v10, %v8179_v5  ;;  %v4563_v14 = vadd.f32 0.112945676, %v4562_v53  ;;  %v4511_v10 = vmul.f32 %v4510_v49, %v8220_v6  ;;  %v4524_v53 = vmul.f32 %v4523_v44, %v8220_v6 }
 0x72d   : > { %v4603_v38 = vadd.f32 0.112945676, %v4602_v42  ;;  %v4433_v0 = vmul.f32 %v4432_v25, %v8224_v16  ;;  %v4394_v59 = vadd.f32 0.18741608, %v4393_v3  ;;  %v4474_v47 = vadd.f32 0.18741608, %v4473_v40 }
 0x72e   : > { %v8255_v8 = vadd.f32 1.0, %v4486_v39  ;;  %v4564_v61 = vmul.f32 %v4563_v14, %v8218_v19  ;;  %v4625_v39 = vmul.f32 %v8271_v54, %v8271_v54  ;;  %v4512_v14 = vadd.f32 0.05243302, %v4511_v10 }
 0x72f   : > { %v4604_v45 = vmul.f32 %v4603_v38, %v8239_v32  ;;  %v4525_v37 = vadd.f32 0.4994258, %v4524_v53  ;;  %v4434_v62 = vadd.f32 0.18741608, %v4433_v0  ;;  %v8293_v42 = vmul.f32 %v8175_v56, %v7949_v27  ;;  %v3924_v56 = vpop.permute.xlu2 %3923 }
 0x730   : > { %5356 = vrcp.f32 %v8255_v8  ;;  %v4565_v4 = vadd.f32 0.4994258, %v4564_v61  ;;  %v4549_v61 = vmul.f32 %v4548_v12, %v8218_v19  ;;  %v8289_v50 = vmin.f32 %v4625_v39, 16.0 }
 0x731   : > { %v4395_v46 = vmul.f32 %v4394_v59, %v8216_v17  ;;  %v4475_v49 = vmul.f32 %v4474_v47, %v8179_v5  ;;  %v4605_v44 = vadd.f32 0.4994258, %v4604_v45  ;;  %v4513_v25 = vmul.f32 %v4512_v14, %v8220_v6 }
 0x732   : > { %v4566_v52 = vmul.f32 %v4565_v4, %v8218_v19  ;;  %v4526_v4 = vmul.f32 %v4525_v37, %v8220_v6  ;;  %v8299_v55 = vadd.f32 %v4015_v43, %v3976_v18  ;;  %v4638_v15 = vmul.f32 3.8918573e-05, %v8289_v50 }
 0x733   : > { %v3966_v27 = vmul.f32 %v8167_v23, %v7945_v30  ;;  %v4588_v9 = vadd.f32 0.00028619796, %v4587_v20  ;;  %v4435_v5 = vmul.f32 %v4434_v62, %v8224_v16  ;;  %v4550_v40 = vadd.f32 0.0036580483, %v4549_v61 }
 0x734   : > { %v8282_v33 = vadd.f32 1.0, %v4566_v52  ;;  %v4639_v38 = vadd.f32 0.001143296, %v4638_v15  ;;  %v8309_v43 = vmul.f32 0.5, %v8185_v57  ;;  %v4396_v10 = vadd.f32 1.1283791, %v4395_v46 }
 0x735   : > { %v4476_v53 = vadd.f32 1.1283791, %v4475_v49  ;;  %v4606_v0 = vmul.f32 %v4605_v44, %v8239_v32  ;;  %v8313_v36 = vmul.f32 %v3924_v56, %v7935_v31  ;;  %v4514_v30 = vadd.f32 0.18741608, %v4513_v25 }
 0x736   : > { %v8273_v2 = vpop.eup %5356  ;;  %5358 = vrcp.f32 %v8282_v33  ;;  %9389 = vst [vmem:[#allocation53_spill] sm:$0xff] %v8309_v43  ;;  %v8315_v23 = vadd.f32 1.0, %v4526_v4  ;;  %v8318_v52 = vmul.f32 0.70710677, %v8299_v55  ;;  %v8321_v12 = vmul.f32 %v3924_v56, %v7937_v34 }
 0x737   : > { %v4489_v58 = vmul.f32 %v8273_v2, %v8255_v8  ;;  %v8324_v59 = vmul.f32 0.5, %v8170_v63  ;;  %v4589_v57 = vmul.f32 %v4588_v9, %v8239_v32  ;;  %v4640_v47 = vmul.f32 %v4639_v38, %v8289_v50 }
 0x738   : > { %v8328_v45 = vadd.f32 1.1283791, %v4435_v5  ;;  %v8331_v31 = vmul.f32 0.5, %v8187_v60  ;;  %v4551_v14 = vmul.f32 %v4550_v40, %v8218_v19  ;;  %v8338_v34 = vmul.f32 %v4396_v10, %v8193_v7 }
 0x739   : > { %v4490_v3 = vsub.f32 1.0, %v4489_v58  ;;  %v4477_v63 = vmul.f32 %v4476_v53, %v8173_v26  ;;  %v8341_v62 = vadd.f32 1.0, %v4606_v0  ;;  %v4641_v20 = vadd.f32 0.014752088, %v4640_v47  ;;  %v3990_v58 = vpop.permute.xlu1 %3989 }
 0x73a   : > { %9390 = vst [vmem:[#allocation69_spill] sm:$0xff] %v8328_v45  ;;  %vm4494_vm11 = vweird.f32 %v8273_v2  ;;  %v4515_v60 = vmul.f32 %v4514_v30, %v8220_v6  ;;  %5360 = vrcp.f32 %v8315_v23  ;;  %v4665_v61 = vmul.f32 %v8318_v52, %v8318_v52 }
 0x73b   : > { %9391 = vst [vmem:[#allocation54_spill] sm:$0xff] %v8331_v31  ;;  %v4491_v39 = vmul.f32 %v8273_v2, %v4490_v3  ;;  %v4590_v18 = vadd.f32 0.0036580483, %v4589_v57  ;;  %v4642_v46 = vmul.f32 %v4641_v20, %v8289_v50  ;;  %v8349_v7 = vadd.f32 %v3990_v58, %v3965_v28 }
 0x73c   : > { %v8335_v37 = vpop.eup %5358  ;;  %v8351_v49 = vadd.f32 %v3990_v58, %v3966_v27  ;;  %v4552_v44 = vadd.f32 0.05243302, %v4551_v14  ;;  %v8356_v4 = vmin.f32 %v4665_v61, 16.0  ;;  %5362 = vrcp.f32 %v8341_v62 }
 0x73d   : > { %9392 = vst [vmem:[#allocation66_spill] sm:$0xff] %v8349_v7  ;;  %v4492_v26 = vadd.f32 %v8273_v2, %v4491_v39  ;;  %v4569_v25 = vmul.f32 %v8335_v37, %v8282_v33  ;;  %v4627_v6 = vmul.f32 2.1237322e-06, %v8289_v50  ;;  %v4643_v15 = vadd.f32 0.112945676, %v4642_v46 }
 0x73e   : > { %v8361_v56 = vmul.f32 0.70710677, %v8349_v7  ;;  %vm4493_vm0 = vweird.f32 %v8255_v8  ;;  %v4497_v28 = vand.u32 2147483647, %v8255_v8  ;;  %v4499_v27 = vand.u32 2147483648, %v8255_v8 }
 0x73f   : > { %v4678_v9 = vmul.f32 3.8918573e-05, %v8356_v4  ;;  %vm8369_vm9 = vmor %vm4493_vm0, %vm4494_vm11  ;;  %v4591_v3 = vmul.f32 %v4590_v18, %v8239_v32  ;;  %v4644_v40 = vmul.f32 %v4643_v15, %v8289_v50  ;;  %v8376_v38 = vmul.f32 0.70710677, %v8351_v49 }
 0x740   : > { %v4225_v10 = vmul.f32 %v8361_v56, %v8361_v56  ;;  %v8380_v53 = vpop.eup %5360  ;;  %v4496_v8 = vsel %vm8369_vm9, %v8273_v2, %v4492_v26  ;;  %v4516_v0 = vadd.f32 1.1283791, %v4515_v60  ;;  %v4553_v30 = vmul.f32 %v4552_v44, %v8218_v19 }
 0x741   : > { %v4679_v57 = vadd.f32 0.001143296, %v4678_v9  ;;  %v4570_v47 = vsub.f32 1.0, %v4569_v25  ;;  %v4628_v39 = vadd.f32 0.00028619796, %v4627_v6  ;;  %v4265_v20 = vmul.f32 %v8376_v38, %v8376_v38 }
 0x742   : > { %v8386_v14 = vmin.f32 %v4225_v10, 16.0  ;;  %vm4498_vm2 = vcmp.eq.f32.partialorder %v4497_v28, 8.507059e+37  ;;  %v4500_v58 = vor.u32 1.1754944e-38, %v4499_v27  ;;  %v4645_v61 = vadd.f32 0.4994258, %v4644_v40  ;;  %v8391_v46 = vpop.eup %5362 }
 0x743   : > { %v4680_v18 = vmul.f32 %v4679_v57, %v8356_v4  ;;  %v4529_v2 = vmul.f32 %v8380_v53, %v8315_v23  ;;  %v8396_v60 = vmul.f32 0.5, %v8198_v51  ;;  %v4592_v26 = vadd.f32 0.05243302, %v4591_v3 }
 0x744   : > { %v4238_v44 = vmul.f32 3.8918573e-05, %v8386_v14  ;;  %v4501_v25 = vsel %vm4498_vm2, %v4500_v58, %v4496_v8  ;;  %v8400_v6 = vmul.f32 %v4516_v0, %v8196_v11  ;;  %v8403_v15 = vmul.f32 0.5, %v8222_v1 }
 0x745   : > { %v4554_v28 = vadd.f32 0.18741608, %v4553_v30  ;;  %v4571_v27 = vmul.f32 %v8335_v37, %v4570_v47  ;;  %v4629_v9 = vmul.f32 %v4628_v39, %v8289_v50  ;;  %v4681_v5 = vadd.f32 0.014752088, %v4680_v18 }
 0x746   : > { %v8407_v40 = vmin.f32 %v4265_v20, 16.0  ;;  %v4609_v10 = vmul.f32 %v8391_v46, %v8341_v62  ;;  %v4646_v11 = vmul.f32 %v4645_v61, %v8289_v50  ;;  %v8414_v8 = vmul.f32 %v4501_v25, %v4477_v63 }
 0x747   : > { %v4530_v1 = vsub.f32 1.0, %v4529_v2  ;;  %v4593_v0 = vmul.f32 %v4592_v26, %v8239_v32  ;;  %v4239_v30 = vadd.f32 0.001143296, %v4238_v44  ;;  %v4555_v57 = vmul.f32 %v4554_v28, %v8218_v19  ;;  %v3995_v19 = vpop.permute.xlu0 %3994 }
 0x748   : > { %vm4573_vm10 = vweird.f32 %v8282_v33  ;;  %v4577_v47 = vand.u32 2147483647, %v8282_v33  ;;  %v4682_v39 = vmul.f32 %v4681_v5, %v8356_v4  ;;  %v4572_v20 = vadd.f32 %v8335_v37, %v4571_v27 }
 0x749   : > { %vm4574_vm4 = vweird.f32 %v8335_v37  ;;  %v4630_v58 = vadd.f32 0.0036580483, %v4629_v9  ;;  %v4278_v63 = vmul.f32 3.8918573e-05, %v8407_v40  ;;  %v4610_v61 = vsub.f32 1.0, %v4609_v10 }
 0x74a   : > { %v8424_v18 = vadd.f32 1.0, %v4646_v11  ;;  %v4667_v2 = vmul.f32 2.1237322e-06, %v8356_v4  ;;  %v4683_v26 = vadd.f32 0.112945676, %v4682_v39  ;;  %v4579_v44 = vand.u32 2147483648, %v8282_v33  ;;  %vm8435_vm7 = vmor %vm4573_vm10, %vm4574_vm4 }
 0x74b   : > { %v4594_v25 = vadd.f32 0.18741608, %v4593_v0  ;;  %v4240_v28 = vmul.f32 %v4239_v30, %v8386_v14  ;;  %v4279_v5 = vadd.f32 0.001143296, %v4278_v63  ;;  %v4531_v51 = vmul.f32 %v8380_v53, %v4530_v1 }
 0x74c   : > { %v4556_v9 = vadd.f32 1.1283791, %v4555_v57  ;;  %v4684_v11 = vmul.f32 %v4683_v26, %v8356_v4  ;;  %v4576_v0 = vsel %vm8435_vm7, %v8335_v37, %v4572_v20  ;;  %v4631_v30 = vmul.f32 %v4630_v58, %v8289_v50 }
 0x74d   : > { %v4280_v39 = vmul.f32 %v4279_v5, %v8407_v40  ;;  %v8446_v1 = vadd.f32 %v3995_v19, %v8280_v41  ;;  %v4611_v57 = vmul.f32 %v8391_v46, %v4610_v61  ;;  %5364 = vrcp.f32 %v8424_v18 }
 0x74e   : > { %v4668_v33 = vadd.f32 0.00028619796, %v4667_v2  ;;  %v4685_v63 = vadd.f32 0.4994258, %v4684_v11  ;;  %vm4578_vm1 = vcmp.eq.f32.partialorder %v4577_v47, 8.507059e+37  ;;  %v4580_v27 = vor.u32 1.1754944e-38, %v4579_v44 }
 0x74f   : > { %9397 = vst [vmem:[#allocation68_spill] sm:$0xff] %v8446_v1  ;;  %v4595_v26 = vmul.f32 %v4594_v25, %v8239_v32  ;;  %v4241_v3 = vadd.f32 0.014752088, %v4240_v28  ;;  %v4619_v37 = vand.u32 2147483648, %v8341_v62  ;;  %v4267_v58 = vmul.f32 2.1237322e-06, %v8407_v40 }
 0x750   : > { %v4686_v20 = vmul.f32 %v4685_v63, %v8356_v4  ;;  %v4281_v5 = vadd.f32 0.014752088, %v4280_v39  ;;  %vm4534_vm14 = vweird.f32 %v8380_v53  ;;  %v4581_v41 = vsel %vm4578_vm1, %v4580_v27, %v4576_v0 }
 0x751   : > { %vm4614_vm5 = vweird.f32 %v8391_v46  ;;  %v4632_v61 = vadd.f32 0.05243302, %v4631_v30  ;;  %v8457_v2 = vmul.f32 0.70710677, %v8446_v1  ;;  %v4612_v47 = vadd.f32 %v8391_v46, %v4611_v57 }
 0x752   : > { %v4669_v32 = vmul.f32 %v4668_v33, %v8356_v4  ;;  %v4282_v44 = vmul.f32 %v4281_v5, %v8407_v40  ;;  %v8463_v25 = vadd.f32 %v3995_v19, %v8293_v42  ;;  %vm4533_vm12 = vweird.f32 %v8315_v23 }
 0x753   : > { %v4557_v28 = vmul.f32 %v4556_v9, %v8207_v13  ;;  %v8467_v27 = vadd.f32 1.0, %v4686_v20  ;;  %v4227_v10 = vmul.f32 2.1237322e-06, %v8386_v14  ;;  %v4242_v11 = vmul.f32 %v4241_v3, %v8386_v14  ;;  %v8471_v0 = vpop.eup %5364  ;;  %vm8515_vm3 = vmor %vm4533_vm12, %vm4534_vm14 }
 0x754   : > { %v4596_v30 = vadd.f32 1.1283791, %v4595_v26  ;;  %vm4613_vm6 = vweird.f32 %v8341_v62  ;;  %v4617_v39 = vand.u32 2147483647, %v8341_v62  ;;  %v4268_v57 = vadd.f32 0.00028619796, %v4267_v58 }
 0x755   : > { %v4582_v42 = vmul.f32 %v4581_v41, %v4557_v28  ;;  %vm8477_vm8 = vmor %vm4613_vm6, %vm4614_vm5  ;;  %v4620_v13 = vor.u32 1.1754944e-38, %v4619_v37  ;;  %v4633_v9 = vmul.f32 %v4632_v61, %v8289_v50  ;;  %v4305_v3 = vmul.f32 %v8457_v2, %v8457_v2 }
 0x756   : > { %v4616_v33 = vsel %vm8477_vm8, %v8391_v46, %v4612_v47  ;;  %v4670_v63 = vadd.f32 0.0036580483, %v4669_v32  ;;  %v4283_v62 = vadd.f32 0.112945676, %v4282_v44  ;;  %v8488_v26 = vmul.f32 0.70710677, %v8463_v25 }
 0x757   : > { %v4649_v20 = vmul.f32 %v8471_v0, %v8424_v18  ;;  %5366 = vrcp.f32 %v8467_v27  ;;  %v4228_v37 = vadd.f32 0.00028619796, %v4227_v10  ;;  %v4243_v58 = vadd.f32 0.112945676, %v4242_v11 }
 0x758   : > { %v8494_v5 = vadd.f32 %v8380_v53, %v4531_v51  ;;  %vm4618_vm15 = vcmp.eq.f32.partialorder %v4617_v39, 8.507059e+37  ;;  %v4269_v41 = vmul.f32 %v4268_v57, %v8407_v40  ;;  %v4398_v46 = vmul.f32 3.8918573e-05, %v8216_v17 }
 0x759   : > { %v4621_v61 = vsel %vm4618_vm15, %v4620_v13, %v4616_v33  ;;  %v4634_v47 = vadd.f32 0.18741608, %v4633_v9  ;;  %v4284_v32 = vmul.f32 %v4283_v62, %v8407_v40  ;;  %v8499_v44 = vmin.f32 %v4305_v3, 16.0 }
 0x75a   : > { %v5241_v28 = vclamps-f32 %v4582_v42, 1.0  ;;  %v4597_v19 = vmul.f32 %v4596_v30, %v8232_v24  ;;  %v4671_v10 = vmul.f32 %v4670_v63, %v8356_v4  ;;  %v4345_v51 = vmul.f32 %v8488_v26, %v8488_v26 }
 0x75b   : > { %v9400_v11 = vand.u32 2147483648, %v8315_v23  ;;  %v4650_v57 = vsub.f32 1.0, %v4649_v20  ;;  %v4229_v13 = vmul.f32 %v4228_v37, %v8386_v14  ;;  %v4244_v9 = vmul.f32 %v4243_v58, %v8386_v14 }
 0x75c   : > { %v9403_v30 = vclamps-f32 %v8414_v8, 1.0  ;;  %v4622_v3 = vmul.f32 %v4621_v61, %v4597_v19  ;;  %v4270_v33 = vadd.f32 0.0036580483, %v4269_v41  ;;  %v4399_v63 = vadd.f32 0.001143296, %v4398_v46 }
 0x75d   : > { %v8507_v39 = vor.u32 1.1754944e-38, %v9400_v11  ;;  %v8523_v62 = vpop.eup %5366  ;;  %v4635_v37 = vmul.f32 %v4634_v47, %v8289_v50  ;;  %v4285_v58 = vadd.f32 0.4994258, %v4284_v32  ;;  %v4318_v11 = vmul.f32 3.8918573e-05, %v8499_v44 }
 0x75e   : > { %v8521_v42 = vadd.f32 1.0, %v9403_v30  ;;  %v8531_v31 = vadd.f32 1.0, %v5241_v28  ;;  %v8534_v8 = vmul.f32 0.5, %v8264_v21  ;;  %v4672_v61 = vadd.f32 0.05243302, %v4671_v10 }
 0x75f   : > { %v8536_v41 = vmin.f32 %v4345_v51, 16.0  ;;  %v4651_v46 = vmul.f32 %v8471_v0, %v4650_v57  ;;  %v4230_v19 = vadd.f32 0.0036580483, %v4229_v13  ;;  %v4245_v30 = vadd.f32 0.4994258, %v4244_v9 }
 0x760   : > { %v4319_v48 = vadd.f32 0.001143296, %v4318_v11  ;;  %v5242_v45 = vclamps-f32 %v4622_v3, 1.0  ;;  %v4689_v50 = vmul.f32 %v8523_v62, %v8467_v27  ;;  %v4271_v47 = vmul.f32 %v4270_v33, %v8407_v40 }
 0x761   : > { %v4400_v32 = vmul.f32 %v4399_v63, %v8216_v17  ;;  %v4636_v28 = vadd.f32 1.1283791, %v4635_v37  ;;  %v4657_v21 = vand.u32 2147483647, %v8424_v18  ;;  %v4286_v10 = vmul.f32 %v4285_v58, %v8407_v40 }
 0x762   : > { %v4307_v51 = vmul.f32 2.1237322e-06, %v8499_v44  ;;  %v4673_v57 = vmul.f32 %v4672_v61, %v8356_v4  ;;  %v4320_v13 = vmul.f32 %v4319_v48, %v8499_v44  ;;  %v4347_v9 = vmul.f32 2.1237322e-06, %v8536_v41 }
 0x763   : > { %v4358_v3 = vmul.f32 3.8918573e-05, %v8536_v41  ;;  %v4652_v11 = vadd.f32 %v8471_v0, %v4651_v46  ;;  %vm4654_vm13 = vweird.f32 %v8471_v0  ;;  %v4231_v33 = vmul.f32 %v4230_v19, %v8386_v14 }
 0x764   : > { %v4246_v63 = vmul.f32 %v4245_v30, %v8386_v14  ;;  %v4659_v37 = vand.u32 2147483648, %v8424_v18  ;;  %v4690_v58 = vsub.f32 1.0, %v4689_v50  ;;  %v4272_v20 = vadd.f32 0.05243302, %v4271_v47 }
 0x765   : > { %v4321_v35 = vadd.f32 0.014752088, %v4320_v13  ;;  %vm4653_vm11 = vweird.f32 %v8424_v18  ;;  %v8556_v48 = vadd.f32 1.0, %v4286_v10  ;;  %v4308_v61 = vadd.f32 0.00028619796, %v4307_v51 }
 0x766   : > { %v4359_v43 = vadd.f32 0.001143296, %v4358_v3  ;;  %v4718_v7 = vadd.f32 1.0, %v5242_v45  ;;  %v4637_v46 = vmul.f32 %v4636_v28, %v8271_v54  ;;  %vm8559_vm0 = vmor %vm4653_vm11, %vm4654_vm13  ;;  %v4348_v30 = vadd.f32 0.00028619796, %v4347_v9 }
 0x767   : > { %v4322_v19 = vmul.f32 %v4321_v35, %v8499_v44  ;;  %v4656_v50 = vsel %vm8559_vm0, %v8471_v0, %v4652_v11  ;;  %v4674_v47 = vadd.f32 0.18741608, %v4673_v57  ;;  %v4232_v18 = vadd.f32 0.05243302, %v4231_v33 }
 0x768   : > { %v8567_v10 = vadd.f32 1.0, %v4246_v63  ;;  %v4660_v51 = vor.u32 1.1754944e-38, %v4659_v37  ;;  %v4691_v45 = vmul.f32 %v8523_v62, %v4690_v58  ;;  %v4360_v54 = vmul.f32 %v4359_v43, %v8536_v41 }
 0x769   : > { %v4323_v13 = vadd.f32 0.112945676, %v4322_v19  ;;  %vm4658_vm9 = vcmp.eq.f32.partialorder %v4657_v21, 8.507059e+37  ;;  %v4273_v28 = vmul.f32 %v4272_v20, %v8407_v40  ;;  %5368 = vrcp.f32 %v8556_v48 }
 0x76a   : > { %v4309_v35 = vmul.f32 %v4308_v61, %v8499_v44  ;;  %v4661_v9 = vsel %vm4658_vm9, %v4660_v51, %v4656_v50  ;;  %v4349_v0 = vmul.f32 %v4348_v30, %v8536_v41  ;;  %v4361_v57 = vadd.f32 0.014752088, %v4360_v54  ;;  %v3980_v54 = vpop.permute.xlu0 %3979 }
 0x76b   : > { %v4324_v1 = vmul.f32 %v4323_v13, %v8499_v44  ;;  %v4675_v3 = vmul.f32 %v4674_v47, %v8356_v4  ;;  %v4699_v11 = vand.u32 2147483648, %v8467_v27  ;;  %v4233_v33 = vmul.f32 %v4232_v18, %v8386_v14 }
 0x76c   : > { %5370 = vrcp.f32 %v8567_v10  ;;  %v4692_v43 = vadd.f32 %v8523_v62, %v4691_v45  ;;  %vm4694_vm2 = vweird.f32 %v8523_v62  ;;  %v4362_v21 = vmul.f32 %v4361_v57, %v8536_v41 }
 0x76d   : > { %v4325_v20 = vadd.f32 0.4994258, %v4324_v1  ;;  %v4662_v63 = vmul.f32 %v4661_v9, %v4637_v46  ;;  %vm4693_vm10 = vweird.f32 %v8467_v27  ;;  %v4697_v37 = vand.u32 2147483647, %v8467_v27  ;;  %v3929_v9 = vpop.permute.xlu1 %3928 }
 0x76e   : > { %v4310_v58 = vadd.f32 0.0036580483, %v4309_v35  ;;  %v4274_v4 = vadd.f32 0.18741608, %v4273_v28  ;;  %v4350_v19 = vadd.f32 0.0036580483, %v4349_v0  ;;  %v8590_v47 = vmul.f32 %v8531_v31, %v8396_v60  ;;  %vm8600_vm4 = vmor %vm4693_vm10, %vm4694_vm2 }
 0x76f   : > { %v4326_v61 = vmul.f32 %v4325_v20, %v8499_v44  ;;  %v4363_v30 = vadd.f32 0.112945676, %v4362_v21  ;;  %v8586_v50 = vpop.eup %5368  ;;  %v8593_v18 = vmul.f32 %v4718_v7, %v8403_v15  ;;  %v8596_v46 = vmul.f32 0.5, %v8299_v55 }
 0x770   : > { %v4401_v51 = vadd.f32 0.014752088, %v4400_v32  ;;  %v4676_v45 = vadd.f32 1.1283791, %v4675_v3  ;;  %v4696_v13 = vsel %vm8600_vm4, %v8523_v62, %v4692_v43  ;;  %v4700_v31 = vor.u32 1.1754944e-38, %v4699_v11 }
 0x771   : > { %v4234_v60 = vadd.f32 0.18741608, %v4233_v33  ;;  %v5243_v15 = vclamps-f32 %v4662_v63, 1.0  ;;  %v4311_v55 = vmul.f32 %v4310_v58, %v8499_v44  ;;  %v8610_v28 = vadd.f32 1.0, %v4326_v61 }
 0x772   : > { %v8607_v7 = vpop.eup %5370  ;;  %v4364_v35 = vmul.f32 %v4363_v30, %v8536_v41  ;;  %vm4698_vm7 = vcmp.eq.f32.partialorder %v4697_v37, 8.507059e+37  ;;  %v4275_v32 = vmul.f32 %v4274_v4, %v8407_v40  ;;  %v4289_v1 = vmul.f32 %v8586_v50, %v8556_v48 }
 0x773   : > { %v4351_v62 = vmul.f32 %v4350_v19, %v8536_v41  ;;  %v4701_v0 = vsel %vm4698_vm7, %v4700_v31, %v4696_v13  ;;  %v8618_v3 = vadd.f32 %v3980_v54, %v8313_v36  ;;  %v8621_v11 = vadd.f32 %v3980_v54, %v8321_v12 }
 0x774   : > { %v4365_v57 = vadd.f32 0.4994258, %v4364_v35  ;;  %v4677_v33 = vmul.f32 %v4676_v45, %v8318_v52  ;;  %v4235_v43 = vmul.f32 %v4234_v60, %v8386_v14  ;;  %v4249_v40 = vmul.f32 %v8607_v7, %v8567_v10 }
 0x775   : > { %v3963_v20 = vmul.f32 %v3929_v9, %v7939_v29  ;;  %v4719_v21 = vadd.f32 1.0, %v5243_v15  ;;  %v4312_v63 = vadd.f32 0.05243302, %v4311_v55  ;;  %5372 = vrcp.f32 %v8610_v28  ;;  %v3985_v29 = vpop.permute.xlu2 %3984 }
 0x776   : > { %v4366_v37 = vmul.f32 %v4365_v57, %v8536_v41  ;;  %v4702_v36 = vmul.f32 %v4701_v0, %v4677_v33  ;;  %v4276_v58 = vadd.f32 1.1283791, %v4275_v32  ;;  %v4290_v4 = vsub.f32 1.0, %v4289_v1 }
 0x777   : > { %v4352_v12 = vadd.f32 0.05243302, %v4351_v62  ;;  %v3964_v52 = vmul.f32 %v3929_v9, %v7941_v22  ;;  %v8634_v14 = vmul.f32 0.70710677, %v8618_v3  ;;  %v8637_v19 = vmul.f32 0.70710677, %v8621_v11 }
 0x778   : > { %v8630_v61 = vadd.f32 1.0, %v4366_v37  ;;  %v8639_v30 = vadd.f32 1.1283791, %v4235_v43  ;;  %v4250_v27 = vsub.f32 1.0, %v4249_v40  ;;  %v4259_v13 = vand.u32 2147483648, %v8567_v10 }
 0x779   : > { %v8644_v31 = vmul.f32 %v4719_v21, %v8534_v8  ;;  %v4313_v60 = vmul.f32 %v4312_v63, %v8499_v44  ;;  %v8648_v22 = vadd.f32 %v3985_v29, %v3963_v20  ;;  %v5244_v54 = vclamps-f32 %v4702_v36, 1.0 }
 0x77a   : > { %5374 = vrcp.f32 %v8630_v61  ;;  %v8651_v15 = vmul.f32 %v4276_v58, %v8376_v38  ;;  %v4291_v55 = vmul.f32 %v8586_v50, %v4290_v4  ;;  %v4065_v35 = vmul.f32 %v8634_v14, %v8634_v14 }
 0x77b   : > { %v8656_v9 = vpop.eup %5372  ;;  %v4353_v8 = vmul.f32 %v4352_v12, %v8536_v41  ;;  %v8659_v32 = vadd.f32 %v3985_v29, %v3964_v52  ;;  %v4105_v1 = vmul.f32 %v8637_v19, %v8637_v19  ;;  %v4402_v62 = vmul.f32 %v4401_v51, %v8216_v17 }
 0x77c   : > { %v4251_v0 = vmul.f32 %v8607_v7, %v4250_v27  ;;  %v4297_v38 = vand.u32 2147483647, %v8556_v48  ;;  %v4299_v57 = vand.u32 2147483648, %v8556_v48  ;;  %v8667_v33 = vmin.f32 %v4065_v35, 16.0 }
 0x77d   : > { %vm4294_vm1 = vweird.f32 %v8586_v50  ;;  %v4314_v43 = vadd.f32 0.18741608, %v4313_v60  ;;  %v8671_v40 = vmul.f32 0.70710677, %v8648_v22  ;;  %v8673_v20 = vmin.f32 %v4105_v1, 16.0 }
 0x77e   : > { %v4720_v21 = vadd.f32 1.0, %v5244_v54  ;;  %v4292_v63 = vadd.f32 %v8586_v50, %v4291_v55  ;;  %v4329_v51 = vmul.f32 %v8656_v9, %v8610_v28  ;;  %v4078_v37 = vmul.f32 3.8918573e-05, %v8667_v33 }
 0x77f   : > { %vm4293_vm14 = vweird.f32 %v8556_v48  ;;  %v4354_v58 = vadd.f32 0.18741608, %v4353_v8  ;;  %v8681_v4 = vmul.f32 0.70710677, %v8659_v32  ;;  %v4403_v12 = vadd.f32 0.112945676, %v4402_v62 }
 0x780   : > { %v5375_v36 = vpop.eup %5374  ;;  %vm8683_vm5 = vcmp.eq.f32.partialorder %v4297_v38, 8.507059e+37  ;;  %v4300_v29 = vor.u32 1.1754944e-38, %v4299_v57  ;;  %v4118_v60 = vmul.f32 3.8918573e-05, %v8673_v20  ;;  %v8690_v54 = vadd.f32 %v8607_v7, %v4251_v0  ;;  %vm8694_vm12 = vmor %vm4293_vm14, %vm4294_vm1 }
 0x781   : > { %v4369_v27 = vmul.f32 %v5375_v36, %v8630_v61  ;;  %v4315_v55 = vmul.f32 %v4314_v43, %v8499_v44  ;;  %v4145_v35 = vmul.f32 %v8671_v40, %v8671_v40  ;;  %v4079_v8 = vadd.f32 0.001143296, %v4078_v37 }
 0x782   : > { %v4736_v1 = vmul.f32 %v4720_v21, %v8596_v46  ;;  %vm4254_vm6 = vweird.f32 %v8607_v7  ;;  %v4296_v62 = vsel %vm8694_vm12, %v8586_v50, %v4292_v63  ;;  %v4330_v0 = vsub.f32 1.0, %v4329_v51 }
 0x783   : > { %v4370_v38 = vsub.f32 1.0, %v4369_v27  ;;  %v4355_v57 = vmul.f32 %v4354_v58, %v8536_v41  ;;  %v4185_v45 = vmul.f32 %v8681_v4, %v8681_v4  ;;  %v4080_v44 = vmul.f32 %v4079_v8, %v8667_v33 }
 0x784   : > { %v4404_v43 = vmul.f32 %v4403_v12, %v8216_v17  ;;  %vm4253_vm8 = vweird.f32 %v8567_v10  ;;  %vm4374_vm15 = vweird.f32 %v5375_v36  ;;  %v4379_v21 = vand.u32 2147483648, %v8630_v61 }
 0x785   : > { %v4371_v46 = vmul.f32 %v5375_v36, %v4370_v38  ;;  %v4119_v37 = vadd.f32 0.001143296, %v4118_v60  ;;  %v4301_v50 = vsel %vm8683_vm5, %v4300_v29, %v4296_v62  ;;  %v4377_v63 = vand.u32 2147483647, %v8630_v61  ;;  %vm8747_vm10 = vmor %vm4253_vm8, %vm4254_vm6 }
 0x786   : > { %v8716_v41 = vmin.f32 %v4145_v35, 16.0  ;;  %v4081_v51 = vadd.f32 0.014752088, %v4080_v44  ;;  %v4331_v58 = vmul.f32 %v8656_v9, %v4330_v0  ;;  %vm4373_vm13 = vweird.f32 %v8630_v61 }
 0x787   : > { %v4372_v27 = vadd.f32 %v5375_v36, %v4371_v46  ;;  %v4120_v12 = vmul.f32 %v4119_v37, %v8673_v20  ;;  %v4337_v48 = vand.u32 2147483647, %v8610_v28  ;;  %v4356_v8 = vadd.f32 1.1283791, %v4355_v57  ;;  %vm4375_vm11 = vmor %vm4373_vm13, %vm4374_vm15 }
 0x788   : > { %v4082_v60 = vmul.f32 %v4081_v51, %v8667_v33  ;;  %v4405_v52 = vadd.f32 0.4994258, %v4404_v43  ;;  %v4380_v62 = vor.u32 1.1754944e-38, %v4379_v21  ;;  %v4438_v35 = vmul.f32 3.8918573e-05, %v8224_v16 }
 0x789   : > { %v4376_v29 = vsel %vm4375_vm11, %v5375_v36, %v4372_v27  ;;  %v4121_v38 = vadd.f32 0.014752088, %v4120_v12  ;;  %v4302_v44 = vmul.f32 %v4301_v50, %v8651_v15  ;;  %vm4378_vm0 = vcmp.eq.f32.partialorder %v4377_v63, 8.507059e+37 }
 0x78a   : > { %v4067_v0 = vmul.f32 2.1237322e-06, %v8667_v33  ;;  %v4083_v61 = vadd.f32 0.112945676, %v4082_v60  ;;  %v4332_v46 = vadd.f32 %v8656_v9, %v4331_v58  ;;  %vm4334_vm9 = vweird.f32 %v8656_v9 }
 0x78b   : > { %v4381_v57 = vsel %vm4378_vm0, %v4380_v62, %v4376_v29  ;;  %v4122_v37 = vmul.f32 %v4121_v38, %v8673_v20  ;;  %v4745_v36 = vpack.c.bf16 %v8644_v31, %v8590_v47  ;;  %v4746_v21 = vpack.c.bf16 %v4736_v1, %v8593_v18 }
 0x78c   : > { %v4084_v43 = vmul.f32 %v4083_v61, %v8667_v33  ;;  %v4406_v15 = vmul.f32 %v4405_v52, %v8216_v17  ;;  %v9412_v50 = vand.u32 2147483647, %v8315_v23  ;;  %v4339_v51 = vand.u32 2147483648, %v8610_v28 }
 0x78d   : > { %v4357_v58 = vmul.f32 %v4356_v8, %v8488_v26  ;;  %v4147_v27 = vmul.f32 2.1237322e-06, %v8716_v41  ;;  %v4123_v12 = vadd.f32 0.112945676, %v4122_v37  ;;  %vm4333_vm4 = vweird.f32 %v8610_v28  ;;  %4759 = vmatpush.bf16.msrb.mxu0 %v4745_v36  ;;  %4773 = vmatpush.bf16.msrb.mxu1 %v4746_v21 }
 0x78e   : > { %vm8736_vm2 = vcmp.eq.f32.partialorder %v9412_v50, 8.507059e+37  ;;  %v4068_v17 = vadd.f32 0.00028619796, %v4067_v0  ;;  %v8752_v23 = vadd.f32 1.0, %v4406_v15  ;;  %v4439_v18 = vadd.f32 0.001143296, %v4438_v35  ;;  %vm8760_vm7 = vmor %vm4333_vm4, %vm4334_vm9 }
 0x78f   : > { %v4256_v26 = vsel %vm8747_vm10, %v8607_v7, %v8690_v54  ;;  %v4316_v31 = vadd.f32 1.1283791, %v4315_v55  ;;  %v4382_v8 = vmul.f32 %v4381_v57, %v4357_v58  ;;  %v4124_v28 = vmul.f32 %v4123_v12, %v8673_v20 }
 0x790   : > { %v4336_v60 = vsel %vm8760_vm7, %v8656_v9, %v4332_v46  ;;  %v8768_v52 = vmin.f32 %v4185_v45, 16.0  ;;  %v4085_v29 = vadd.f32 0.4994258, %v4084_v43  ;;  %5376 = vrcp.f32 %v8752_v23 }
 0x791   : > { %v5234_v7 = vclamps-f32 %v4302_v44, 1.0  ;;  %v4340_v54 = vor.u32 1.1754944e-38, %v4339_v51  ;;  %v4148_v55 = vadd.f32 0.00028619796, %v4147_v27  ;;  %v4107_v62 = vmul.f32 2.1237322e-06, %v8673_v20 }
 0x792   : > { %v4260_v38 = vor.u32 1.1754944e-38, %v4259_v13  ;;  %vm4338_vm1 = vcmp.eq.f32.partialorder %v4337_v48, 8.507059e+37  ;;  %v4069_v35 = vmul.f32 %v4068_v17, %v8667_v33  ;;  %v4440_v0 = vmul.f32 %v4439_v18, %v8224_v16 }
 0x793   : > { %v9419_v9 = vand.u32 2147483647, %v8567_v10  ;;  %v4341_v45 = vsel %vm4338_vm1, %v4340_v54, %v4336_v60  ;;  %v5236_v61 = vclamps-f32 %v4382_v8, 1.0  ;;  %v4125_v46 = vadd.f32 0.4994258, %v4124_v28 }
 0x794   : > { %v4317_v44 = vmul.f32 %v4316_v31, %v8457_v2  ;;  %v4187_v37 = vmul.f32 2.1237322e-06, %v8768_v52  ;;  %v4086_v43 = vmul.f32 %v4085_v29, %v8667_v33  ;;  %v4710_v36 = vadd.f32 1.0, %v5234_v7 }
 0x795   : > { %vm4258_vm14 = vcmp.eq.f32.partialorder %v9419_v9, 8.507059e+37  ;;  %v4149_v13 = vmul.f32 %v4148_v55, %v8716_v41  ;;  %v4108_v48 = vadd.f32 0.00028619796, %v4107_v62  ;;  %v4441_v21 = vadd.f32 0.014752088, %v4440_v0 }
 0x796   : > { %v4261_v57 = vsel %vm4258_vm14, %v4260_v38, %v4256_v26  ;;  %v5377_v15 = vpop.eup %5376  ;;  %v9420_v10 = vsel %vm8515_vm3, %v8380_v53, %v8494_v5  ;;  %v4237_v2 = vmul.f32 %v8639_v30, %v8361_v56  ;;  %v4342_v51 = vmul.f32 %v4341_v45, %v4317_v44 }
 0x797   : > { %v4541_v50 = vsel %vm8736_vm2, %v8507_v39, %v9420_v10  ;;  %v4070_v58 = vadd.f32 0.0036580483, %v4069_v35  ;;  %v4038_v27 = vmul.f32 0.5, %v8351_v49  ;;  %v4040_v12 = vmul.f32 0.5, %v8463_v25 }
 0x798   : > { %v4712_v47 = vadd.f32 1.0, %v5236_v61  ;;  %v4126_v17 = vmul.f32 %v4125_v46, %v8673_v20  ;;  %v4262_v24 = vmul.f32 %v4261_v57, %v4237_v2  ;;  %v8795_v18 = vadd.f32 1.0, %v4086_v43 }
 0x799   : > { %v4409_v53 = vmul.f32 %v5377_v15, %v8752_v23  ;;  %v4442_v5 = vmul.f32 %v4441_v21, %v8224_v16  ;;  %v8799_v39 = vmul.f32 %v4710_v36, %v4038_v27  ;;  %v4150_v63 = vadd.f32 0.0036580483, %v4149_v13 }
 0x79a   : > { %v4188_v56 = vadd.f32 0.00028619796, %v4187_v37  ;;  %v4109_v30 = vmul.f32 %v4108_v48, %v8673_v20  ;;  %v5235_v26 = vclamps-f32 %v4342_v51, 1.0  ;;  %v4071_v49 = vmul.f32 %v4070_v58, %v8667_v33 }
 0x79b   : > { %v4410_v25 = vsub.f32 1.0, %v4409_v53  ;;  %v4443_v31 = vadd.f32 0.112945676, %v4442_v5  ;;  %v8803_v1 = vmul.f32 %v4712_v47, %v4040_v12  ;;  %v8805_v8 = vadd.f32 1.0, %v4126_v17  ;;  %v9421_v53 = vld [vmem:[#allocation68_spill] sm:$0xff] }
 0x79c   : > { %v4417_v28 = vand.u32 2147483647, %v8752_v23  ;;  %v4419_v60 = vand.u32 2147483648, %v8752_v23  ;;  %5378 = vrcp.f32 %v8795_v18  ;;  %vm4414_vm3 = vweird.f32 %v5377_v15 }
 0x79d   : > { %v4411_v29 = vmul.f32 %v5377_v15, %v4410_v25  ;;  %v4444_v7 = vmul.f32 %v4443_v31, %v8224_v16  ;;  %v4189_v54 = vmul.f32 %v4188_v56, %v8768_v52  ;;  %v4110_v55 = vadd.f32 0.0036580483, %v4109_v30 }
 0x79e   : > { %v4158_v62 = vmul.f32 3.8918573e-05, %v8716_v41  ;;  %v4198_v38 = vmul.f32 3.8918573e-05, %v8768_v52  ;;  %v4072_v35 = vadd.f32 0.05243302, %v4071_v49  ;;  %vm4413_vm5 = vweird.f32 %v8752_v23 }
 0x79f   : > { %v4412_v0 = vadd.f32 %v5377_v15, %v4411_v29  ;;  %v4445_v9 = vadd.f32 0.4994258, %v4444_v7  ;;  %5380 = vrcp.f32 %v8805_v8  ;;  %vm4415_vm12 = vmor %vm4413_vm5, %vm4414_vm3  ;;  %v4420_v45 = vor.u32 1.1754944e-38, %v4419_v60  ;;  %v9422_v49 = vld [vmem:[#allocation66_spill] sm:$0xff]  ;;  %v9423_v60 = vld [vmem:[#allocation53_spill] sm:$0xff] }
 0x7a0   : > { %v4742_v61 = vpack.c.bf16 %v8803_v1, %v8799_v39  ;;  %v4159_v46 = vadd.f32 0.001143296, %v4158_v62  ;;  %vm4418_vm6 = vcmp.eq.f32.partialorder %v4417_v28, 8.507059e+37  ;;  %v4199_v37 = vadd.f32 0.001143296, %v4198_v38 }
 0x7a1   : > { %v4416_v57 = vsel %vm4415_vm12, %v5377_v15, %v4412_v0  ;;  %v4446_v44 = vmul.f32 %v4445_v9, %v8224_v16  ;;  %v5233_v43 = vclamps-f32 %v4262_v24, 1.0  ;;  %v4190_v36 = vadd.f32 0.0036580483, %v4189_v54 }
 0x7a2   : > { %v4421_v13 = vsel %vm4418_vm6, %v4420_v45, %v4416_v57  ;;  %v4160_v48 = vmul.f32 %v4159_v46, %v8716_v41  ;;  %v8820_v23 = vpop.eup %5378  ;;  %v4151_v21 = vmul.f32 %v4150_v63, %v8716_v41  ;;  %v4200_v51 = vmul.f32 %v4199_v37, %v8768_v52  ;;  %v9425_v37 = vld [vmem:[#allocation69_spill] sm:$0xff] }
 0x7a3   : > { %v4422_v10 = vmul.f32 %v4421_v13, %v8338_v34  ;;  %v8824_v2 = vadd.f32 1.0, %v4446_v44  ;;  %v4711_v15 = vadd.f32 1.0, %v5235_v26  ;;  %v4073_v58 = vmul.f32 %v4072_v35, %v8667_v33  ;;  %v9424_v44 = vld [vmem:[#allocation45_spill] sm:$0xff] }
 0x7a4   : > { %v4111_v16 = vmul.f32 %v4110_v55, %v8673_v20  ;;  %v4161_v27 = vadd.f32 0.014752088, %v4160_v48  ;;  %v4542_v12 = vmul.f32 %v4541_v50, %v8400_v6  ;;  %v4731_v47 = vmul.f32 %v8521_v42, %v8324_v59 }
 0x7a5   : > { %v5237_v17 = vclamps-f32 %v4422_v10, 1.0  ;;  %5382 = vrcp.f32 %v8824_v2  ;;  %v8833_v24 = vpop.eup %5380  ;;  %v4709_v34 = vadd.f32 1.0, %v5233_v43  ;;  %v4039_v5 = vmul.f32 0.5, %v9421_v53 }
 0x7a6   : > { %v4191_v63 = vmul.f32 %v4190_v36, %v8768_v52  ;;  %v4089_v56 = vmul.f32 %v8820_v23, %v8795_v18  ;;  %v4152_v30 = vadd.f32 0.05243302, %v4151_v21  ;;  %v4162_v6 = vmul.f32 %v4161_v27, %v8716_v41 }
 0x7a7   : > { %v4713_v26 = vadd.f32 1.0, %v5237_v17  ;;  %v4201_v50 = vadd.f32 0.014752088, %v4200_v51  ;;  %v4037_v59 = vmul.f32 0.5, %v9422_v49  ;;  %v4727_v42 = vmul.f32 %v4711_v15, %v4039_v5 }
 0x7a8   : > { %v4074_v25 = vadd.f32 0.18741608, %v4073_v58  ;;  %v4112_v31 = vadd.f32 0.05243302, %v4111_v16  ;;  %v4129_v28 = vmul.f32 %v8833_v24, %v8805_v8  ;;  %v4163_v7 = vadd.f32 0.112945676, %v4162_v6 }
 0x7a9   : > { %v4729_v29 = vmul.f32 %v4713_v26, %v9423_v60  ;;  %v4202_v54 = vmul.f32 %v4201_v50, %v8768_v52  ;;  %v5240_v55 = vclamps-f32 %v4542_v12, 1.0  ;;  %v4725_v62 = vmul.f32 %v4709_v34, %v4037_v59 }
 0x7aa   : > { %v4192_v38 = vadd.f32 0.05243302, %v4191_v63  ;;  %v4090_v35 = vsub.f32 1.0, %v4089_v56  ;;  %v4153_v9 = vmul.f32 %v4152_v30, %v8716_v41  ;;  %v4164_v46 = vmul.f32 %v4163_v7, %v8716_v41 }
 0x7ab   : > { %v5383_v0 = vpop.eup %5382  ;;  %v4743_v45 = vpack.c.bf16 %v4731_v47, %v4729_v29  ;;  %v4203_v57 = vadd.f32 0.112945676, %v4202_v54  ;;  %v4437_v43 = vmul.f32 %v9425_v37, %v9424_v44  ;;  %v4075_v36 = vmul.f32 %v4074_v25, %v8667_v33 }
 0x7ac   : > { %v4113_v13 = vmul.f32 %v4112_v31, %v8673_v20  ;;  %v4449_v48 = vmul.f32 %v5383_v0, %v8824_v2  ;;  %v4130_v21 = vsub.f32 1.0, %v4129_v28  ;;  %v4741_v10 = vpack.c.bf16 %v4727_v42, %v4725_v62 }
 0x7ad   : > { %4760 = vmatpush.bf16.msrb.mxu0 %v4743_v45  ;;  %v4165_v51 = vadd.f32 0.4994258, %v4164_v46  ;;  %v4204_v15 = vmul.f32 %v4203_v57, %v8768_v52  ;;  %v4716_v58 = vadd.f32 1.0, %v5240_v55  ;;  %v4193_v16 = vmul.f32 %v4192_v38, %v8768_v52 }
 0x7ae   : > { %v4091_v27 = vmul.f32 %v8820_v23, %v4090_v35  ;;  %v4450_v12 = vsub.f32 1.0, %v4449_v48  ;;  %v4154_v47 = vadd.f32 0.18741608, %v4153_v9  ;;  %v4459_v17 = vand.u32 2147483648, %v8824_v2  ;;  %v9428_v35 = vld [vmem:[#allocation43_spill] sm:$0xff]  ;;  %v9429_v9 = vld [vmem:[#allocation54_spill] sm:$0xff] }
 0x7af   : > { %v4166_v33 = vmul.f32 %v4165_v51, %v8716_v41  ;;  %v4205_v34 = vadd.f32 0.4994258, %v4204_v15  ;;  %v4114_v53 = vadd.f32 0.18741608, %v4113_v13  ;;  %vm4454_vm8 = vweird.f32 %v5383_v0 }
 0x7b0   : > { %v4451_v5 = vmul.f32 %v5383_v0, %v4450_v12  ;;  %v4457_v63 = vand.u32 2147483647, %v8824_v2  ;;  %v4076_v56 = vadd.f32 1.1283791, %v4075_v36  ;;  %v4131_v30 = vmul.f32 %v8833_v24, %v4130_v21 }
 0x7b1   : > { %4761 = vmatpush.bf16.msrb.mxu0 %v4741_v10  ;;  %v8859_v26 = vadd.f32 1.0, %v4166_v33  ;;  %v4206_v6 = vmul.f32 %v4205_v34, %v8768_v52  ;;  %v4092_v50 = vadd.f32 %v8820_v23, %v4091_v27  ;;  %vm4094_vm15 = vweird.f32 %v8820_v23 }
 0x7b2   : > { %v4452_v49 = vadd.f32 %v5383_v0, %v4451_v5  ;;  %vm4453_vm13 = vweird.f32 %v8824_v2  ;;  %vm4093_vm11 = vweird.f32 %v8795_v18  ;;  %v4099_v59 = vand.u32 2147483648, %v8795_v18 }
 0x7b3   : > { %vm4455_vm0 = vmor %vm4453_vm13, %vm4454_vm8  ;;  %v4460_v42 = vor.u32 1.1754944e-38, %v4459_v17  ;;  %5384 = vrcp.f32 %v8859_v26  ;;  %v4097_v25 = vand.u32 2147483647, %v8795_v18  ;;  %vm4458_vm9 = vcmp.eq.f32.partialorder %v4457_v63, 8.507059e+37 }
 0x7b4   : > { %v4456_v31 = vsel %vm4455_vm0, %v5383_v0, %v4452_v49  ;;  %v8869_v28 = vadd.f32 1.0, %v4206_v6  ;;  %vm8871_vm2 = vmor %vm4093_vm11, %vm4094_vm15  ;;  %v4115_v2 = vmul.f32 %v4114_v53, %v8673_v20  ;;  %v4132_v29 = vadd.f32 %v8833_v24, %v4131_v30 }
 0x7b5   : > { %vm4134_vm10 = vweird.f32 %v8833_v24  ;;  %v4461_v7 = vsel %vm4458_vm9, %v4460_v42, %v4456_v31  ;;  %v4096_v54 = vsel %vm8871_vm2, %v8820_v23, %v4092_v50  ;;  %v4139_v18 = vand.u32 2147483648, %v8805_v8 }
 0x7b6   : > { %v4462_v55 = vmul.f32 %v4461_v7, %v4437_v43  ;;  %5386 = vrcp.f32 %v8869_v28  ;;  %v4194_v62 = vadd.f32 0.18741608, %v4193_v16  ;;  %v4100_v38 = vor.u32 1.1754944e-38, %v4099_v59 }
 0x7b7   : > { %vm4133_vm4 = vweird.f32 %v8805_v8  ;;  %v4137_v20 = vand.u32 2147483647, %v8805_v8  ;;  %v4042_v0 = vmul.f32 0.5, %v9428_v35  ;;  %v4732_v45 = vmul.f32 %v4716_v58, %v9429_v9 }
 0x7b8   : > { %vm4098_vm7 = vcmp.eq.f32.partialorder %v4097_v25, 8.507059e+37  ;;  %vm8887_vm1 = vmor %vm4133_vm4, %vm4134_vm10  ;;  %v5238_v23 = vclamps-f32 %v4462_v55, 1.0  ;;  %v4155_v44 = vmul.f32 %v4154_v47, %v8716_v41  ;;  %v4116_v43 = vadd.f32 1.1283791, %v4115_v2 }
 0x7b9   : > { %v5385_v57 = vpop.eup %5384  ;;  %v4101_v37 = vsel %vm4098_vm7, %v4100_v38, %v4096_v54  ;;  %v4136_v36 = vsel %vm8887_vm1, %v8833_v24, %v4132_v29  ;;  %v4077_v8 = vmul.f32 %v4076_v56, %v8634_v14  ;;  %v4140_v13 = vor.u32 1.1754944e-38, %v4139_v18 }
 0x7ba   : > { %v4714_v48 = vadd.f32 1.0, %v5238_v23  ;;  %v4169_v21 = vmul.f32 %v5385_v57, %v8859_v26  ;;  %v4195_v10 = vmul.f32 %v4194_v62, %v8768_v52  ;;  %vm4138_vm14 = vcmp.eq.f32.partialorder %v4137_v20, 8.507059e+37  ;;  %v4783_v23 = vld [vmem:[%s8990_s12] sm:$0xff] }
 0x7bb   : > { %v4102_v15 = vmul.f32 %v4101_v37, %v4077_v8  ;;  %v4141_v58 = vsel %vm4138_vm14, %v4140_v13, %v4136_v36  ;;  %v4156_v27 = vadd.f32 1.1283791, %v4155_v44  ;;  %v4117_v12 = vmul.f32 %v4116_v43, %v8637_v19  ;;  %v4784_v36 = vld [vmem:[%s8990_s12 + $0x8] sm:$0xff] }
 0x7bc   : > { %v5387_v51 = vpop.eup %5386  ;;  %v4730_v16 = vmul.f32 %v4714_v48, %v4042_v0  ;;  %v4170_v41 = vsub.f32 1.0, %v4169_v21  ;;  %v4179_v47 = vand.u32 2147483648, %v8859_v26  ;;  %vm4174_vm3 = vweird.f32 %v5385_v57 }
 0x7bd   : > { %v4209_v24 = vmul.f32 %v5387_v51, %v8869_v28  ;;  %v4177_v33 = vand.u32 2147483647, %v8859_v26  ;;  %v4196_v34 = vadd.f32 1.1283791, %v4195_v10  ;;  %v4142_v52 = vmul.f32 %v4141_v58, %v4117_v12 }
 0x7be   : > { %v4744_v14 = vpack.c.bf16 %v4732_v45, %v4730_v16  ;;  %v4171_v17 = vmul.f32 %v5385_v57, %v4170_v41  ;;  %v5229_v5 = vclamps-f32 %v4102_v15, 1.0  ;;  %vm4173_vm5 = vweird.f32 %v8859_v26 }
 0x7bf   : > { %v4210_v53 = vsub.f32 1.0, %v4209_v24  ;;  %v4219_v56 = vand.u32 2147483648, %v8869_v28  ;;  %vm4175_vm12 = vmor %vm4173_vm5, %vm4174_vm3  ;;  %v4180_v19 = vor.u32 1.1754944e-38, %v4179_v47  ;;  %vm4214_vm6 = vweird.f32 %v5387_v51 }
 0x7c0   : > { %4774 = vmatpush.bf16.msrb.mxu1 %v4744_v14  ;;  %v4172_v63 = vadd.f32 %v5385_v57, %v4171_v17  ;;  %v4217_v6 = vand.u32 2147483647, %v8869_v28  ;;  %v4157_v50 = vmul.f32 %v4156_v27, %v8671_v40  ;;  %vm4178_vm8 = vcmp.eq.f32.partialorder %v4177_v33, 8.507059e+37 }
 0x7c1   : > { %v4211_v30 = vmul.f32 %v5387_v51, %v4210_v53  ;;  %v5230_v59 = vclamps-f32 %v4142_v52, 1.0  ;;  %vm4213_vm15 = vweird.f32 %v8869_v28  ;;  %v4705_v31 = vadd.f32 1.0, %v5229_v5 }
 0x7c2   : > { %v4176_v49 = vsel %vm4175_vm12, %v5385_v57, %v4172_v63  ;;  %vm4215_vm13 = vmor %vm4213_vm15, %vm4214_vm6  ;;  %v4220_v60 = vor.u32 1.1754944e-38, %v4219_v56  ;;  %v4197_v2 = vmul.f32 %v4196_v34, %v8681_v4  ;;  %vm4218_vm11 = vcmp.eq.f32.partialorder %v4217_v6, 8.507059e+37 }
 0x7c3   : > { %v4181_v42 = vsel %vm4178_vm8, %v4180_v19, %v4176_v49  ;;  %v4212_v25 = vadd.f32 %v5387_v51, %v4211_v30  ;;  %v4033_v40 = vmul.f32 0.5, %v8618_v3  ;;  %v4706_v18 = vadd.f32 1.0, %v5230_v59  ;;  %v5271_v3 = vld [vmem:[%s8986_s8] sm:$0xff] }
 0x7c4   : > { %4775 = vmatpush.bf16.msrb.mxu1 %v4742_v61  ;;  %v4182_v26 = vmul.f32 %v4181_v42, %v4157_v50  ;;  %v4035_v28 = vmul.f32 0.5, %v8648_v22  ;;  %v4034_v39 = vmul.f32 0.5, %v8621_v11  ;;  %v4036_v20 = vmul.f32 0.5, %v8659_v32 }
 0x7c5   : > { %v4216_v29 = vsel %vm4215_vm13, %v5387_v51, %v4212_v25  ;;  %v4721_v62 = vmul.f32 %v4705_v31, %v4033_v40  ;;  %vm9432_vm0 = vcmask 523264   ;;  %vm9434_vm2 = vcmask 130048  }
 0x7c6   : > { %v5231_v7 = vclamps-f32 %v4182_v26, 1.0  ;;  %v4221_v54 = vsel %vm4218_vm11, %v4220_v60, %v4216_v29  ;;  %v4722_v35 = vmul.f32 %v4706_v18, %v4034_v39  ;;  %vm9433_vm9 = vmmov %vm9432_vm0  ;;  %v4785_v29 = vld [vmem:[%s8987_s9] sm:$0xff] }
 0x7c7   : > { %v4222_v55 = vmul.f32 %v4221_v54, %v4197_v2  ;;  %vm9435_vm10 = vmmov %vm9434_vm2 }
 0x7c8   : > { %v4707_v38 = vadd.f32 1.0, %v5231_v7  ;;  %vm9436_vm4 = vmmov %vm9434_vm2 }
 0x7c9   : > { %v5232_v1 = vclamps-f32 %v4222_v55, 1.0  ;;  %vm9437_vm7 = vmmov %vm9434_vm2 }
 0x7ca   : > { %v4723_v61 = vmul.f32 %v4707_v38, %v4035_v28  ;;  %vm9438_vm1 = vmmov %vm9434_vm2  ;;  %v4787_v28 = vld [vmem:[%s8988_s10] sm:$0xff] }
 0x7cb   : > { %v4708_v4 = vadd.f32 1.0, %v5232_v1  ;;  %vm9439_vm14 = vmmov %vm9438_vm1  ;;  %v4786_v1 = vld [vmem:[%s8987_s9 + $0x8] sm:$0xff] }
 0x7cc   : > { %v4739_v0 = vpack.c.bf16 %v4723_v61, %v4721_v62  ;;  %vm9440_vm3 = vmmov %vm9438_vm1 }
 0x7cd   : > { %v4724_v9 = vmul.f32 %v4708_v4, %v4036_v20  ;;  %vm9441_vm5 = vmmov %vm9438_vm1  ;;  %v4788_v4 = vld [vmem:[%s8988_s10 + $0x8] sm:$0xff] }
 0x7ce   : > { %4762 = vmatpush.bf16.msrb.mxu0 %v4739_v0 }
 0x7cf   : > { %v4740_v45 = vpack.c.bf16 %v4724_v9, %v4722_v35 }
 0x7d1   : > { %4776 = vmatpush.bf16.msrb.mxu1 %v4740_v45  ;;  %5249 = vmatmul.msk.bf16.vlgmr.msrb.gmra.mxu0 %vm9432_vm0, %v5271_v3 }
 0x7d4   : > { %5250 = vmatmul.msk.bf16.vlgmr.msrb.gmra.mxu1 %vm9433_vm9, %v5271_v3 }
 0x84e   : > { %v8920_v11 = vpop.f32.mrf.mxu0 }
 0x84f   : > { %v4841_v57 = vmul.f32 %v8920_v11, %v8920_v11 }
 0x851   : > { %v8922_v22 = vpop.f32.mrf.mxu1 }
 0x852   : > { %v4842_v43 = vmul.f32 %v8922_v22, %v8922_v22 }
 0x856   : > { %v8924_v32 = vpop.f32.mrf.mxu0 }
 0x857   : > { %v4843_v46 = vmul.f32 %v8924_v32, %v8924_v32  ;;  %4809 = vmatpush.msrb.mxu2 %v8924_v32 }
 0x859   : > { %v8934_v44 = vpop.f32.mrf.mxu1  ;;  %4810 = vmatpush.msrb.mxu2 %v8920_v11  ;;  %4859 = vmatpush.msra.mxu0 %v4843_v46 }
 0x85a   : > { %v4844_v37 = vmul.f32 %v8934_v44, %v8934_v44  ;;  %4832 = vmatpush.msrb.mxu3 %v8934_v44  ;;  %5251 = vmatmul.msk.f32.vlgmr.msrb.gmra.mxu2 %vm9434_vm2, %v4783_v23 }
 0x85b   : > { %4860 = vmatpush.msra.mxu0 %v4841_v57 }
 0x85c   : > { %4833 = vmatpush.msrb.mxu3 %v8922_v22  ;;  %4882 = vmatpush.msra.mxu1 %v4844_v37 }
 0x85d   : > { %5253 = vmatmul.msk.f32.vlgmr.msrb.gmra.mxu3 %vm9435_vm10, %v4783_v23  ;;  %5255 = vmatmul.msk.f32.vlgmr.msra.gmra.mxu0 %vm9436_vm4, %v4783_v23 }
 0x85e   : > { %4883 = vmatpush.msra.mxu1 %v4842_v43 }
 0x85f   : > { %5257 = vmatmul.msk.f32.vlgmr.msra.gmra.mxu1 %vm9437_vm7, %v4783_v23 }
 0x862   : > { %5252 = vmatmul.msk.f32.gmra.mxu2 %vm9438_vm1, %v4784_v36 }
 0x865   : > { %5254 = vmatmul.msk.f32.gmra.mxu3 %vm9439_vm14, %v4784_v36  ;;  %5256 = vmatmul.msk.f32.gmra.mxu0 %vm9440_vm3, %v4784_v36 }
 0x867   : > { %5258 = vmatmul.msk.f32.gmra.mxu1 %vm9441_vm5, %v4784_v36 }
 0x8da   : > { %v4862_v8 = vpop.f32.mrf.mxu0 }
 0x8dc   : > { %v4885_v13 = vpop.f32.mrf.mxu1 }
 0x8dd   : > { %v4812_v48 = vpop.f32.mrf.mxu2  ;;  %v4899_v21 = vadd.f32 %v4885_v13, %v4862_v8 }
 0x8df   : > { %4900 = vadd.xlane.f32.xlu2 %v4899_v21 }
 0x8e0   : > { %v4835_v10 = vpop.f32.mrf.mxu3 }
 0x8e1   : > { %v4891_v51 = vadd.f32 %v4835_v10, %v4812_v48 }
 0x8e2   : > { %v4865_v15 = vpop.f32.mrf.mxu0 }
 0x8e3   : > { %4892 = vadd.xlane.f32.xlu1 %v4891_v51 }
 0x8e4   : > { %v4888_v58 = vpop.f32.mrf.mxu1 }
 0x8e5   : > { %v4815_v16 = vpop.f32.mrf.mxu2  ;;  %v4902_v41 = vadd.f32 %v4888_v58, %v4865_v15 }
 0x8e8   : > { %v4838_v27 = vpop.f32.mrf.mxu3 }
 0x8e9   : > { %v4894_v12 = vadd.f32 %v4838_v27, %v4815_v16 }
 0x8eb   : > { %4895 = vadd.xlane.f32.xlu0 %v4894_v12  ;;  %4903 = vadd.xlane.f32.xlu1 %v4902_v41 }
 0x952   : > { %v4901_v47 = vpop.xlane.xlu2 %4900 }
 0x953   : > { %v4905_v17 = vmul.f32 0.001953125, %v4901_v47 }
 0x956   : > { %v4893_v24 = vpop.xlane.xlu1 %4892 }
 0x957   : > { %v4897_v14 = vmul.f32 0.001953125, %v4893_v24 }
 0x959   : > { %v4907_v33 = vmul.f32 %v4897_v14, %v4897_v14 }
 0x95b   : > { %v4909_v34 = vsub.f32 %v4905_v17, %v4907_v33 }
 0x95d   : > { %v4911_v52 = vmax.f32 %v4909_v34, 0.0 }
 0x95e   : > { %v4896_v53 = vpop.xlane.xlu0 %4895  ;;  %v4904_v5 = vpop.xlane.xlu1 %4903 }
 0x95f   : > { %v4913_v63 = vadd.f32 1e-05, %v4911_v52  ;;  %v4898_v56 = vmul.f32 0.001953125, %v4896_v53  ;;  %v4906_v19 = vmul.f32 0.001953125, %v4904_v5 }
 0x961   : > { %5388 = vrsqrt.f32 %v4913_v63  ;;  %v4908_v30 = vmul.f32 %v4898_v56, %v4898_v56  ;;  %vm4921_vm6 = vweird.f32 %v4913_v63 }
 0x963   : > { %v4910_v6 = vsub.f32 %v4906_v19, %v4908_v30 }
 0x965   : > { %v4912_v50 = vmax.f32 %v4910_v6, 0.0 }
 0x967   : > { %v5389_v49 = vpop.eup %5388  ;;  %v4914_v59 = vadd.f32 1e-05, %v4912_v50 }
 0x968   : > { %v4916_v42 = vmul.f32 %v5389_v49, %v4913_v63  ;;  %vm4922_vm12 = vweird.f32 %v5389_v49 }
 0x969   : > { %5390 = vrsqrt.f32 %v4914_v59  ;;  %vm4923_vm8 = vmor %vm4921_vm6, %vm4922_vm12  ;;  %vm4931_vm13 = vweird.f32 %v4914_v59 }
 0x96a   : > { %v4917_v25 = vmul.f32 %v5389_v49, %v4916_v42 }
 0x96c   : > { %v4918_v31 = vmul.f32 0.5, %v4917_v25 }
 0x96e   : > { %v4919_v26 = vsub.f32 1.5, %v4918_v31 }
 0x96f   : > { %v5391_v60 = vpop.eup %5390 }
 0x970   : > { %v4926_v2 = vmul.f32 %v5391_v60, %v4914_v59  ;;  %v4920_v40 = vmul.f32 %v5389_v49, %v4919_v26  ;;  %vm4932_vm15 = vweird.f32 %v5391_v60 }
 0x971   : > { %vm4933_vm11 = vmor %vm4931_vm13, %vm4932_vm15 }
 0x972   : > { %v4927_v7 = vmul.f32 %v5391_v60, %v4926_v2  ;;  %v4924_v54 = vsel %vm4923_vm8, %v5389_v49, %v4920_v40 }
 0x973   : > { %v4935_v18 = vmul.f32 %v4924_v54, %v4785_v29 }
 0x974   : > { %v4928_v55 = vmul.f32 0.5, %v4927_v7 }
 0x975   : > { %4943 = vperm.xlu0 %5290, %v4935_v18   ;;  %v4937_v62 = vmul.f32 %v4935_v18, %v4897_v14 }
 0x976   : > { %v4929_v38 = vsub.f32 1.5, %v4928_v55 }
 0x977   : > { %v4939_v39 = vsub.f32 %v4787_v28, %v4937_v62 }
 0x978   : > { %v4930_v61 = vmul.f32 %v5391_v60, %v4929_v38 }
 0x979   : > { %4957 = vperm.xlu1 %5289, %v4939_v39  }
 0x97a   : > { %v4934_v20 = vsel %vm4933_vm11, %v5391_v60, %v4930_v61 }
 0x97b   : > { %v4936_v35 = vmul.f32 %v4934_v20, %v4786_v1 }
 0x97d   : > { %4948 = vperm.xlu2 %5291, %v4936_v35   ;;  %v4938_v0 = vmul.f32 %v4936_v35, %v4898_v56 }
 0x97f   : > { %v4940_v9 = vsub.f32 %v4788_v4, %v4938_v0 }
 0x981   : > { %4962 = vperm.xlu0 %5290, %v4940_v9  }
 0x9d7   : > { %v4949_v43 = vpop.permute.xlu2 %4948 }
 0x9d8   : > { %v4953_v36 = vmul.f32 %v4949_v43, %v8924_v32  ;;  %v4954_v8 = vmul.f32 %v4949_v43, %v8934_v44 }
 0x9e7   : > { %v4944_v3 = vpop.permute.xlu0 %4943 }
 0x9e8   : > { %v4951_v45 = vmul.f32 %v4944_v3, %v8920_v11  ;;  %v4952_v46 = vmul.f32 %v4944_v3, %v8922_v22 }
 0x9eb   : > { %v4958_v23 = vpop.permute.xlu1 %4957 }
 0x9ec   : > { %v4965_v57 = vadd.f32 %v4958_v23, %v4951_v45  ;;  %v4966_v37 = vadd.f32 %v4958_v23, %v4952_v46 }
 0x9ee   : > { %4969 = vst [vmem:[%s440_s30] sm:$0xff] %v4965_v57 }
 0x9ef   : > { %4970 = vst [vmem:[%s440_s30 + $0x8] sm:$0xff] %v4966_v37 }
 0x9f3   : > { %v4963_v13 = vpop.permute.xlu0 %4962 }
 0x9f4   : > { %v4967_v48 = vadd.f32 %v4963_v13, %v4953_v36  ;;  %v4968_v11 = vadd.f32 %v4963_v13, %v4954_v8 }
 0x9f6   : > { %4971 = vst [vmem:[%s440_s30 + $0x10] sm:$0xff] %v4967_v48 }
 0x9f7   : > { %4972 = vst [vmem:[%s440_s30 + $0x18] sm:$0xff] %v4968_v11 }
 0x9f8 PF: > { %s23_s25 = sadd.s32 1, %s5398_s25  }
 0x9f9   : > { %p20_p4 = scmp.ge.s32.totalorder %s23_s25, 4  }
 0x9fb   :  { %22 = sbr.rel (!%p20_p4) target bundleno = 1 (0x1), region = 110 }

</bundles_post_ra>
